<compile_context>
chip_gen: v7x
topology: tpu7x:2x2x1
jax: 0.10.0
libtpu: 0.0.40
codegen_flags: <defaults>
</compile_context>

<pallas_src>
import functools

import jax
import jax.numpy as jnp
from jax.experimental import pallas as pl
from jax.experimental.pallas import tpu as pltpu

NUM_HEADS = 4
_KEY_TILE_MAX = 512   # key-axis tile for the online-softmax loop


# ----------------------------------------------------------------------------
# Kernel
# ----------------------------------------------------------------------------
def _attn_prop_kernel(x_ref, src_ref,
                      wq_ref, bq_ref, wkv_ref, bkv_ref,
                      wm_ref, bm_ref,
                      w1a_ref, w1b_ref, s1_ref, t1_ref,
                      w2_ref, b2_ref,
                      out_ref, *, key_tile):
    bb, N, D = x_ref.shape
    H = NUM_HEADS
    hdim = D // H
    scale = 1.0 / float(hdim) ** 0.5
    n_kt = N // key_tile

    x32 = x_ref[...].astype(jnp.float32).reshape(bb * N, D)
    xbf = x32.astype(jnp.bfloat16)
    srcbf = src_ref[...].astype(jnp.bfloat16).reshape(bb * N, D)

    # 1x1-conv projections as bf16 MXU matmuls (K and V fused into one wide dot).
    q = jnp.dot(xbf, wq_ref[...], preferred_element_type=jnp.float32) + bq_ref[...]
    kv = jnp.dot(srcbf, wkv_ref[...], preferred_element_type=jnp.float32) + bkv_ref[...]

    # bf16 operands for the dominant O(N^2) attention matmuls (f32 accumulation).
    q3 = q.astype(jnp.bfloat16).reshape(bb, N, D)
    k3 = kv[:, :D].astype(jnp.bfloat16).reshape(bb, N, D)
    v3 = kv[:, D:].astype(jnp.bfloat16).reshape(bb, N, D)

    # Multi-head attention.  Head channels are contiguous (weights permuted in
    # the wrapper).  Flash-style online softmax over key tiles avoids ever
    # materializing a (bb, N, N) buffer; the head-concat is folded into the
    # merge conv by accumulating each head's contribution against its wm slab.
    # TODO(synk): v6e could additionally batch the 4 heads into one einsum
    # ('bhnd,bhmd->bhnm') to pipeline MXU pushes across heads.
    message = None
    for h in range(H):
        sl = slice(h * hdim, (h + 1) * hdim)
        qh, kh, vh = q3[:, :, sl], k3[:, :, sl], v3[:, :, sl]
        m_run = l_run = acc = None
        for t in range(n_kt):
            ks = kh[:, t * key_tile:(t + 1) * key_tile, :]
            vs = vh[:, t * key_tile:(t + 1) * key_tile, :]
            s = jnp.einsum('bnd,bmd->bnm', qh, ks,
                           preferred_element_type=jnp.float32) * scale
            m_t = jnp.max(s, axis=-1, keepdims=True)
            if t == 0:
                m_new = m_t
                p = jnp.exp(s - m_new)
                l_run = jnp.sum(p, axis=-1, keepdims=True)
                acc = jnp.einsum('bnm,bmd->bnd', p.astype(jnp.bfloat16), vs,
                                 preferred_element_type=jnp.float32)
            else:
                m_new = jnp.maximum(m_run, m_t)
                alpha = jnp.exp(m_run - m_new)
                p = jnp.exp(s - m_new)
                l_run = alpha * l_run + jnp.sum(p, axis=-1, keepdims=True)
                acc = alpha * acc + jnp.einsum('bnm,bmd->bnd',
                                               p.astype(jnp.bfloat16), vs,
                                               preferred_element_type=jnp.float32)
            m_run = m_new
        out_h = acc * pl.reciprocal(l_run, approx=True)          # (bb, N, hdim) f32
        contrib = jnp.dot(out_h.astype(jnp.bfloat16).reshape(bb * N, hdim),
                          wm_ref[sl, :],
                          preferred_element_type=jnp.float32)
        message = contrib if message is None else message + contrib
    message = message + bm_ref[...]

    # MLP([2D, 2D, D]) on concat([x, message]) + residual.  w1 is split into
    # (x-half, message-half) in the wrapper so no lane-axis concat is needed.
    h1 = (jnp.dot(xbf, w1a_ref[...], preferred_element_type=jnp.float32)
          + jnp.dot(message.astype(jnp.bfloat16), w1b_ref[...],
                    preferred_element_type=jnp.float32))
    # conv1 bias + BatchNorm1d folded into scale/shift (eval-mode running stats).
    # TODO(synk): training-mode BatchNorm1d (batch statistics) is not reproduced.
    h1 = h1 * s1_ref[...] + t1_ref[...]
    h1 = jnp.where(h1 > 0, h1, 0.2 * h1)                         # LeakyReLU(0.2)
    delta = jnp.dot(h1.astype(jnp.bfloat16), w2_ref[...],
                    preferred_element_type=jnp.float32) + b2_ref[...]

    out_ref[...] = (x32 + delta).reshape(bb, N, D).astype(out_ref.dtype)


# ----------------------------------------------------------------------------
# Wrapper-side heuristics
# ----------------------------------------------------------------------------
def _vmem_limit_bytes():
    """Generation-aware scoped VMEM limit (leave headroom below physical)."""
    try:
        cap = pltpu.get_tpu_info().vmem_capacity_bytes
        return max(32 * 1024 * 1024, min(cap * 3 // 4, 96 * 1024 * 1024))
    except Exception:
        return 48 * 1024 * 1024   # conservative: fits every generation incl. v7x


def _pick_key_tile(n):
    """Largest multiple-of-8 divisor of N that is <= _KEY_TILE_MAX."""
    if n <= _KEY_TILE_MAX:
        return n
    best = n
    for t in range(8, _KEY_TILE_MAX + 1, 8):
        if n % t == 0:
            best = t
    return best


def _pick_block_b(B, N, D, key_tile, vmem_limit_bytes):
    """Largest bb dividing B whose estimated working set fits the VMEM budget.
    bb must divide B so the cross-layer block rotation never straddles the
    desc0/desc1 boundary; the grid then always has >= 2 steps (>=1 per core
    on multi-TensorCore chips), and on 1-TC chips bb is simply maximized."""
    H = NUM_HEADS
    hdim = D // H
    weight_bytes = 20 * D * D + 40 * D                 # bf16 weights + f32 biases
    budget = max(0, int(vmem_limit_bytes * 0.6) - 2 * weight_bytes)
    f32, bf16 = 4, 2
    per_row = (3 * 2 * D * f32                         # x / src / out (double-buffered)
               + D * (f32 + 2 * bf16)                  # x32, xbf, srcbf
               + 3 * D * (f32 + bf16)                  # q, kv (+ bf16 copies)
               + 2 * key_tile * f32 + key_tile * bf16  # score / exp / prob tile
               + 2 * hdim * f32                        # online-softmax acc + head out
               + D * f32                               # message
               + 2 * D * (f32 + bf16)                  # h1 (+ bf16 cast)
               + D * f32)                              # delta
    row = N * per_row
    best = 1
    for bb in range(1, B + 1):
        if B % bb:
            continue
        if bb * row <= budget:
            best = bb
    return best


def _weight_spec(shape, single_buffer):
    # Constant-index weight blocks never change across grid steps; single-buffer
    # them to halve their VMEM footprint (matters inside v7x's 64 MiB).
    if single_buffer:
        return pl.BlockSpec(shape, lambda b: (0, 0), pipeline_mode=pl.Buffered(1))
    return pl.BlockSpec(shape, lambda b: (0, 0))


# ----------------------------------------------------------------------------
# Layer / module wrappers
# ----------------------------------------------------------------------------
def attn_prop_layer(desc, prepped, cross, *, single_buffer_weights, key_tile=None):
    """One AttentionalPropagation layer on the stacked [desc0; desc1] tensor."""
    BT, N, D = desc.shape
    assert BT % 2 == 0
    B = BT // 2
    assert N % 8 == 0, "N must be a multiple of 8 (pad keypoints + mask upstream)"
    assert D % NUM_HEADS == 0
    # TODO(synk): for lane-dense stores D should be a multiple of 128 at scale;
    # the wrapper should pad D (and mask padded keys) for production shapes.

    vmem_limit = _vmem_limit_bytes()
    kt = _pick_key_tile(N) if key_tile is None else key_tile
    assert N % kt == 0
    bb = _pick_block_b(B, N, D, kt, vmem_limit)
    nsteps = BT // bb
    half = nsteps // 2

    x_spec = pl.BlockSpec((bb, N, D), lambda b: (b, 0, 0))
    if cross:
        # Rotate the block index instead of copying/concatenating src in HBM:
        # desc0 blocks read desc1 blocks and vice versa.
        src_spec = pl.BlockSpec((bb, N, D), lambda b: ((b + half) % nsteps, 0, 0))
    else:
        src_spec = x_spec
    weight_specs = [_weight_spec(p.shape, single_buffer_weights) for p in prepped]

    kernel = functools.partial(_attn_prop_kernel, key_tile=kt)
    return pl.pallas_call(
        kernel,
        out_shape=jax.ShapeDtypeStruct((BT, N, D), desc.dtype),
        grid_spec=pltpu.PrefetchScalarGridSpec(
            num_scalar_prefetch=0,
            grid=(nsteps,),
            in_specs=[x_spec, src_spec] + weight_specs,
            out_specs=pl.BlockSpec((bb, N, D), lambda b: (b, 0, 0)),
        ),
        compiler_params=pltpu.CompilerParams(
            dimension_semantics=("parallel",),
            vmem_limit_bytes=vmem_limit,
        ),
    )(desc, desc, *prepped)


def prepare_layer_params(params, num_heads=NUM_HEADS, matmul_dtype=jnp.bfloat16):
    """Wrapper-side weight plumbing (zero kernel cost):
      * permute projection output channels (and merge-conv input channels) so
        head channels are contiguous: new channel h*hdim + d <- old d*H + h,
      * fuse K and V projections into one (D, 2D) weight,
      * split w1 into x-half / message-half (removes the MLP input concat),
      * store matmul weights in bf16 (halves weight DMA; f32 accumulation)."""
    (wq, bq, wk, bk, wv, bv, wm, bm, w1, s1, t1, w2, b2) = params
    D = wq.shape[0]
    hdim = D // num_heads
    perm = jnp.array([(c % hdim) * num_heads + c // hdim for c in range(D)],
                     dtype=jnp.int32)
    wq_p, bq_p = wq[:, perm], bq[:, perm]
    wk_p, bk_p = wk[:, perm], bk[:, perm]
    wv_p, bv_p = wv[:, perm], bv[:, perm]
    wm_p = wm[perm, :]
    wkv = jnp.concatenate([wk_p, wv_p], axis=1)
    bkv = jnp.concatenate([bk_p, bv_p], axis=1)
    w1a, w1b = w1[:D, :], w1[D:, :]
    md = matmul_dtype
    return (wq_p.astype(md), bq_p, wkv.astype(md), bkv,
            wm_p.astype(md), bm,
            w1a.astype(md), w1b.astype(md), s1, t1,
            w2.astype(md), b2)


def _run_layers(desc, prepped, layer_names, *, single_buffer_weights, key_tile):
    for params, name in zip(prepped, layer_names):
        desc = attn_prop_layer(desc, params, cross=(name == "cross"),
                               single_buffer_weights=single_buffer_weights,
                               key_tile=key_tile)
    return desc


def attentional_gnn(desc0, desc1, layer_params, layer_names, key_tile=None):
    """AttentionalGNN.forward.  desc0/desc1: (B, N, D) channel-last."""
    B = desc0.shape[0]
    prepped = [prepare_layer_params(p) for p in layer_params]
    # desc0 and desc1 share layer weights -> one fused pallas_call per layer.
    desc = jnp.concatenate([desc0, desc1], axis=0)        # (2B, N, D)
    try:
        out = _run_layers(desc, prepped, layer_names,
                          single_buffer_weights=True, key_tile=key_tile)
        out = jax.block_until_ready(out)
    except Exception:
        # TODO(synk): pl.Buffered(1) single-buffered weights unsupported on this
        # jax build -- fall back to default double-buffered weight blocks.
        out = _run_layers(desc, prepped, layer_names,
                          single_buffer_weights=False, key_tile=key_tile)
    return out[:B], out[B:]


# ----------------------------------------------------------------------------
# Synthetic parameters + pure-JAX reference (PyTorch semantics, f32)
# ----------------------------------------------------------------------------
def init_layer_params(key, feature_dim):
    """Deterministic synthetic parameters for one AttentionalPropagation layer.
    Conv1d(k=1) weights stored pre-transposed as (C_in, C_out); BatchNorm uses
    default running stats (mean=0, var=1) folded into scale/shift."""
    D = feature_dim
    ks = jax.random.split(key, 12)
    r = lambda k, shape, s=0.1: jax.random.normal(k, shape, jnp.float32) * s
    wq, bq = r(ks[0], (D, D)), r(ks[1], (1, D))
    wk, bk = r(ks[2], (D, D)), r(ks[3], (1, D))
    wv, bv = r(ks[4], (D, D)), r(ks[5], (1, D))
    wm, bm = r(ks[6], (D, D)), r(ks[7], (1, D))
    w1, b1 = r(ks[8], (2 * D, 2 * D)), r(ks[9], (1, 2 * D))
    gamma = 1.0 + r(ks[10], (1, 2 * D))
    beta = r(ks[11], (1, 2 * D))
    running_mean = jnp.zeros((1, 2 * D), jnp.float32)
    running_var = jnp.ones((1, 2 * D), jnp.float32)
    eps = 1e-5
    s1 = gamma / jnp.sqrt(running_var + eps)
    t1 = (b1 - running_mean) * s1 + beta
    w2 = r(jax.random.fold_in(key, 99), (2 * D, D))
    b2 = jnp.zeros((1, D), jnp.float32)     # nn.init.constant_(mlp[-1].bias, 0.0)
    return (wq, bq, wk, bk, wv, bv, wm, bm, w1, s1, t1, w2, b2)


def _ref_attn_prop(x, src, params):
    (wq, bq, wk, bk, wv, bv, wm, bm, w1, s1, t1, w2, b2) = params
    B, N, D = x.shape
    H, hd = NUM_HEADS, D // NUM_HEADS
    q = x @ wq + bq
    k = src @ wk + bk
    v = src @ wv + bv
    # PyTorch view(B, dim, H, N): channel c = d*H + h (d-major, h-minor).
    q4 = q.reshape(B, N, hd, H)
    k4 = k.reshape(B, N, hd, H)
    v4 = v.reshape(B, N, hd, H)
    s = jnp.einsum('bndh,bmdh->bhnm', q4, k4) / (hd ** 0.5)
    p = jax.nn.softmax(s, axis=-1)
    o = jnp.einsum('bhnm,bmdh->bndh', p, v4).reshape(B, N, D)
    message = o @ wm + bm
    cat = jnp.concatenate([x, message], axis=-1)
    h1 = (cat @ w1) * s1 + t1
    h1 = jnp.where(h1 > 0, h1, 0.2 * h1)
    delta = h1 @ w2 + b2
    return x + delta


def _ref_gnn(desc0, desc1, layer_params, layer_names):
    for params, name in zip(layer_params, layer_names):
        if name == "cross":
            src0, src1 = desc1, desc0
        else:
            src0, src1 = desc0, desc1
        d0 = _ref_attn_prop(desc0, src0, params)
        d1 = _ref_attn_prop(desc1, src1, params)
        desc0, desc1 = d0, d1
    return desc0, desc1


if __name__ == "__main__":
    B, N, D = 2, 16, 32         # batch, keypoints, feature_dim (4 heads -> head dim 8)
    layer_names = ["self", "cross"]

    key = jax.random.PRNGKey(0)
    k0, k1, kp = jax.random.split(key, 3)
    desc0 = jax.random.normal(k0, (B, N, D), jnp.float32)
    desc1 = jax.random.normal(k1, (B, N, D), jnp.float32)
    layer_keys = jax.random.split(kp, len(layer_names))
    params = [init_layer_params(k, D) for k in layer_keys]

    out0, out1 = attentional_gnn(desc0, desc1, params, layer_names)
    jax.block_until_ready((out0, out1))
    assert out0.shape == (B, N, D) and out1.shape == (B, N, D)

    ref0, ref1 = _ref_gnn(desc0, desc1, params, layer_names)
    err = max(float(jnp.max(jnp.abs(out0 - ref0))),
              float(jnp.max(jnp.abs(out1 - ref1))))
    assert err < 0.15, f"kernel vs reference mismatch: max abs err {err}"

    # Exercise the multi-tile online-softmax path (2 key tiles) on the same data.
    tt0, tt1 = attentional_gnn(desc0, desc1, params, layer_names, key_tile=8)
    jax.block_until_ready((tt0, tt1))
    err2 = max(float(jnp.max(jnp.abs(tt0 - ref0))),
               float(jnp.max(jnp.abs(tt1 - ref1))))
    assert err2 < 0.15, f"tiled-softmax mismatch: max abs err {err2}"

    print("KERNEL_OK")
</pallas_src>

<mosaic_0001>
module attributes {stable_mosaic.version = 11 : i64} {
  func.func @_attn_prop_kernel(%arg0: i32, %arg1: memref<2x16x32xf32, #tpu.memory_space<vmem>>, %arg2: memref<2x16x32xf32, #tpu.memory_space<vmem>>, %arg3: memref<32x32xbf16, #tpu.memory_space<vmem>>, %arg4: memref<1x32xf32, #tpu.memory_space<vmem>>, %arg5: memref<32x64xbf16, #tpu.memory_space<vmem>>, %arg6: memref<1x64xf32, #tpu.memory_space<vmem>>, %arg7: memref<32x32xbf16, #tpu.memory_space<vmem>>, %arg8: memref<1x32xf32, #tpu.memory_space<vmem>>, %arg9: memref<32x64xbf16, #tpu.memory_space<vmem>>, %arg10: memref<32x64xbf16, #tpu.memory_space<vmem>>, %arg11: memref<1x64xf32, #tpu.memory_space<vmem>>, %arg12: memref<1x64xf32, #tpu.memory_space<vmem>>, %arg13: memref<64x32xbf16, #tpu.memory_space<vmem>>, %arg14: memref<1x32xf32, #tpu.memory_space<vmem>>, %arg15: memref<2x16x32xf32, #tpu.memory_space<vmem>>) attributes {dimension_semantics = [#tpu.dimension_semantics<parallel>], iteration_bounds = array<i64: 2>, scalar_prefetch = 0 : i64, scratch_operands = 0 : i64, tpu.core_type = #tpu.core_type<tc>, window_params = [{transform_indices = @transform_0, window_bounds = array<i64: 2, 16, 32>}, {transform_indices = @transform_1, window_bounds = array<i64: 2, 16, 32>}, {pipeline_mode = #tpu.pipeline_mode<synchronous>, transform_indices = @transform_2, window_bounds = array<i64: 32, 32>}, {pipeline_mode = #tpu.pipeline_mode<synchronous>, transform_indices = @transform_3, window_bounds = array<i64: 1, 32>}, {pipeline_mode = #tpu.pipeline_mode<synchronous>, transform_indices = @transform_4, window_bounds = array<i64: 32, 64>}, {pipeline_mode = #tpu.pipeline_mode<synchronous>, transform_indices = @transform_5, window_bounds = array<i64: 1, 64>}, {pipeline_mode = #tpu.pipeline_mode<synchronous>, transform_indices = @transform_6, window_bounds = array<i64: 32, 32>}, {pipeline_mode = #tpu.pipeline_mode<synchronous>, transform_indices = @transform_7, window_bounds = array<i64: 1, 32>}, {pipeline_mode = #tpu.pipeline_mode<synchronous>, transform_indices = @transform_8, window_bounds = array<i64: 32, 64>}, {pipeline_mode = #tpu.pipeline_mode<synchronous>, transform_indices = @transform_9, window_bounds = array<i64: 32, 64>}, {pipeline_mode = #tpu.pipeline_mode<synchronous>, transform_indices = @transform_10, window_bounds = array<i64: 1, 64>}, {pipeline_mode = #tpu.pipeline_mode<synchronous>, transform_indices = @transform_11, window_bounds = array<i64: 1, 64>}, {pipeline_mode = #tpu.pipeline_mode<synchronous>, transform_indices = @transform_12, window_bounds = array<i64: 64, 32>}, {pipeline_mode = #tpu.pipeline_mode<synchronous>, transform_indices = @transform_13, window_bounds = array<i64: 1, 32>}, {transform_indices = @transform_14, window_bounds = array<i64: 2, 16, 32>}]} {
    %c0 = arith.constant 0 : index
    %c0_0 = arith.constant 0 : index
    %c0_1 = arith.constant 0 : index
    %0 = vector.load %arg1[%c0, %c0_0, %c0_1] : memref<2x16x32xf32, #tpu.memory_space<vmem>>, vector<2x16x32xf32>
    %1 = vector.shape_cast %0 : vector<2x16x32xf32> to vector<32x32xf32>
    %2 = arith.truncf %1 : vector<32x32xf32> to vector<32x32xbf16>
    %c0_2 = arith.constant 0 : index
    %c0_3 = arith.constant 0 : index
    %c0_4 = arith.constant 0 : index
    %3 = vector.load %arg2[%c0_2, %c0_3, %c0_4] : memref<2x16x32xf32, #tpu.memory_space<vmem>>, vector<2x16x32xf32>
    %4 = arith.truncf %3 : vector<2x16x32xf32> to vector<2x16x32xbf16>
    %5 = vector.shape_cast %4 : vector<2x16x32xbf16> to vector<32x32xbf16>
    %c0_5 = arith.constant 0 : index
    %c0_6 = arith.constant 0 : index
    %6 = vector.load %arg3[%c0_5, %c0_6] : memref<32x32xbf16, #tpu.memory_space<vmem>>, vector<32x32xbf16>
    %cst = arith.constant dense<0.000000e+00> : vector<32x32xf32>
    %7 = tpu.matmul %2, %6, %cst {dimension_numbers = #tpu.dot_dimension_numbers<[1], [0], [0], [1], [0, 0, 1, 1], [], []>} : vector<32x32xbf16>, vector<32x32xbf16>, vector<32x32xf32> -> vector<32x32xf32>
    %c0_7 = arith.constant 0 : index
    %c0_8 = arith.constant 0 : index
    %8 = vector.load %arg4[%c0_7, %c0_8] : memref<1x32xf32, #tpu.memory_space<vmem>>, vector<1x32xf32>
    %9 = vector.broadcast %8 : vector<1x32xf32> to vector<32x32xf32>
    %10 = arith.addf %7, %9 : vector<32x32xf32>
    %c0_9 = arith.constant 0 : index
    %c0_10 = arith.constant 0 : index
    %11 = vector.load %arg5[%c0_9, %c0_10] : memref<32x64xbf16, #tpu.memory_space<vmem>>, vector<32x64xbf16>
    %cst_11 = arith.constant dense<0.000000e+00> : vector<32x64xf32>
    %12 = tpu.matmul %5, %11, %cst_11 {dimension_numbers = #tpu.dot_dimension_numbers<[1], [0], [0], [1], [0, 0, 1, 1], [], []>} : vector<32x32xbf16>, vector<32x64xbf16>, vector<32x64xf32> -> vector<32x64xf32>
    %c0_12 = arith.constant 0 : index
    %c0_13 = arith.constant 0 : index
    %13 = vector.load %arg6[%c0_12, %c0_13] : memref<1x64xf32, #tpu.memory_space<vmem>>, vector<1x64xf32>
    %14 = vector.broadcast %13 : vector<1x64xf32> to vector<32x64xf32>
    %15 = arith.addf %12, %14 : vector<32x64xf32>
    %16 = arith.truncf %10 : vector<32x32xf32> to vector<32x32xbf16>
    %17 = vector.shape_cast %16 : vector<32x32xbf16> to vector<2x16x32xbf16>
    %18 = vector.extract_strided_slice %15 {offsets = [0, 0], sizes = [32, 32], strides = [1, 1]} : vector<32x64xf32> to vector<32x32xf32>
    %19 = arith.truncf %18 : vector<32x32xf32> to vector<32x32xbf16>
    %20 = vector.shape_cast %19 : vector<32x32xbf16> to vector<2x16x32xbf16>
    %21 = vector.extract_strided_slice %15 {offsets = [0, 32], sizes = [32, 32], strides = [1, 1]} : vector<32x64xf32> to vector<32x32xf32>
    %22 = arith.truncf %21 : vector<32x32xf32> to vector<32x32xbf16>
    %23 = vector.shape_cast %22 : vector<32x32xbf16> to vector<2x16x32xbf16>
    %24 = vector.extract_strided_slice %17 {offsets = [0, 0, 0], sizes = [2, 16, 8], strides = [1, 1, 1]} : vector<2x16x32xbf16> to vector<2x16x8xbf16>
    %25 = vector.extract_strided_slice %20 {offsets = [0, 0, 0], sizes = [2, 16, 8], strides = [1, 1, 1]} : vector<2x16x32xbf16> to vector<2x16x8xbf16>
    %26 = vector.extract_strided_slice %23 {offsets = [0, 0, 0], sizes = [2, 16, 8], strides = [1, 1, 1]} : vector<2x16x32xbf16> to vector<2x16x8xbf16>
    "tpu.trace_start"() <{level = 10 : i32, message = "bnd,bmd->bnm"}> : () -> ()
    %cst_14 = arith.constant dense<0.000000e+00> : vector<2x16x16xf32>
    %27 = tpu.matmul %24, %25, %cst_14 {dimension_numbers = #tpu.dot_dimension_numbers<[2], [2], [1], [1], [0, 0, 0, 1, 1, 1], [0], [0]>} : vector<2x16x8xbf16>, vector<2x16x8xbf16>, vector<2x16x16xf32> -> vector<2x16x16xf32>
    "tpu.trace_stop"() : () -> ()
    %cst_15 = arith.constant 0.353553385 : f32
    %28 = vector.broadcast %cst_15 : f32 to vector<2x16x16xf32>
    %29 = arith.mulf %27, %28 : vector<2x16x16xf32>
    %cst_16 = arith.constant dense<0xFF800000> : vector<2x16xf32>
    %30 = vector.multi_reduction <maximumf>, %29, %cst_16 [2] : vector<2x16x16xf32> to vector<2x16xf32>
    %31 = vector.shape_cast %30 : vector<2x16xf32> to vector<2x16x1xf32>
    %32 = vector.broadcast %31 : vector<2x16x1xf32> to vector<2x16x16xf32>
    %33 = arith.subf %29, %32 : vector<2x16x16xf32>
    %34 = math.exp %33 : vector<2x16x16xf32>
    %cst_17 = arith.constant dense<0.000000e+00> : vector<2x16xf32>
    %35 = vector.multi_reduction <add>, %34, %cst_17 [2] : vector<2x16x16xf32> to vector<2x16xf32>
    %36 = vector.shape_cast %35 : vector<2x16xf32> to vector<2x16x1xf32>
    %37 = arith.truncf %34 : vector<2x16x16xf32> to vector<2x16x16xbf16>
    "tpu.trace_start"() <{level = 10 : i32, message = "bnm,bmd->bnd"}> : () -> ()
    %cst_18 = arith.constant dense<0.000000e+00> : vector<2x16x8xf32>
    %38 = tpu.matmul %37, %26, %cst_18 {dimension_numbers = #tpu.dot_dimension_numbers<[2], [1], [1], [2], [0, 0, 0, 1, 1, 2], [0], [0]>} : vector<2x16x16xbf16>, vector<2x16x8xbf16>, vector<2x16x8xf32> -> vector<2x16x8xf32>
    "tpu.trace_stop"() : () -> ()
    %39 = tpu.reciprocal %36 {approx = true} : vector<2x16x1xf32> -> vector<2x16x1xf32>
    %40 = vector.broadcast %39 : vector<2x16x1xf32> to vector<2x16x8xf32>
    %41 = arith.mulf %38, %40 : vector<2x16x8xf32>
    %42 = arith.truncf %41 : vector<2x16x8xf32> to vector<2x16x8xbf16>
    %43 = vector.shape_cast %42 : vector<2x16x8xbf16> to vector<32x8xbf16>
    %c0_19 = arith.constant 0 : index
    %c0_20 = arith.constant 0 : index
    %44 = vector.load %arg7[%c0_19, %c0_20] : memref<32x32xbf16, #tpu.memory_space<vmem>>, vector<8x32xbf16>
    %cst_21 = arith.constant dense<0.000000e+00> : vector<32x32xf32>
    %45 = tpu.matmul %43, %44, %cst_21 {dimension_numbers = #tpu.dot_dimension_numbers<[1], [0], [0], [1], [0, 0, 1, 1], [], []>} : vector<32x8xbf16>, vector<8x32xbf16>, vector<32x32xf32> -> vector<32x32xf32>
    %46 = vector.extract_strided_slice %17 {offsets = [0, 0, 8], sizes = [2, 16, 8], strides = [1, 1, 1]} : vector<2x16x32xbf16> to vector<2x16x8xbf16>
    %47 = vector.extract_strided_slice %20 {offsets = [0, 0, 8], sizes = [2, 16, 8], strides = [1, 1, 1]} : vector<2x16x32xbf16> to vector<2x16x8xbf16>
    %48 = vector.extract_strided_slice %23 {offsets = [0, 0, 8], sizes = [2, 16, 8], strides = [1, 1, 1]} : vector<2x16x32xbf16> to vector<2x16x8xbf16>
    "tpu.trace_start"() <{level = 10 : i32, message = "bnd,bmd->bnm"}> : () -> ()
    %cst_22 = arith.constant dense<0.000000e+00> : vector<2x16x16xf32>
    %49 = tpu.matmul %46, %47, %cst_22 {dimension_numbers = #tpu.dot_dimension_numbers<[2], [2], [1], [1], [0, 0, 0, 1, 1, 1], [0], [0]>} : vector<2x16x8xbf16>, vector<2x16x8xbf16>, vector<2x16x16xf32> -> vector<2x16x16xf32>
    "tpu.trace_stop"() : () -> ()
    %cst_23 = arith.constant 0.353553385 : f32
    %50 = vector.broadcast %cst_23 : f32 to vector<2x16x16xf32>
    %51 = arith.mulf %49, %50 : vector<2x16x16xf32>
    %cst_24 = arith.constant dense<0xFF800000> : vector<2x16xf32>
    %52 = vector.multi_reduction <maximumf>, %51, %cst_24 [2] : vector<2x16x16xf32> to vector<2x16xf32>
    %53 = vector.shape_cast %52 : vector<2x16xf32> to vector<2x16x1xf32>
    %54 = vector.broadcast %53 : vector<2x16x1xf32> to vector<2x16x16xf32>
    %55 = arith.subf %51, %54 : vector<2x16x16xf32>
    %56 = math.exp %55 : vector<2x16x16xf32>
    %cst_25 = arith.constant dense<0.000000e+00> : vector<2x16xf32>
    %57 = vector.multi_reduction <add>, %56, %cst_25 [2] : vector<2x16x16xf32> to vector<2x16xf32>
    %58 = vector.shape_cast %57 : vector<2x16xf32> to vector<2x16x1xf32>
    %59 = arith.truncf %56 : vector<2x16x16xf32> to vector<2x16x16xbf16>
    "tpu.trace_start"() <{level = 10 : i32, message = "bnm,bmd->bnd"}> : () -> ()
    %cst_26 = arith.constant dense<0.000000e+00> : vector<2x16x8xf32>
    %60 = tpu.matmul %59, %48, %cst_26 {dimension_numbers = #tpu.dot_dimension_numbers<[2], [1], [1], [2], [0, 0, 0, 1, 1, 2], [0], [0]>} : vector<2x16x16xbf16>, vector<2x16x8xbf16>, vector<2x16x8xf32> -> vector<2x16x8xf32>
    "tpu.trace_stop"() : () -> ()
    %61 = tpu.reciprocal %58 {approx = true} : vector<2x16x1xf32> -> vector<2x16x1xf32>
    %62 = vector.broadcast %61 : vector<2x16x1xf32> to vector<2x16x8xf32>
    %63 = arith.mulf %60, %62 : vector<2x16x8xf32>
    %64 = arith.truncf %63 : vector<2x16x8xf32> to vector<2x16x8xbf16>
    %65 = vector.shape_cast %64 : vector<2x16x8xbf16> to vector<32x8xbf16>
    %c8 = arith.constant 8 : index
    %c0_27 = arith.constant 0 : index
    %66 = vector.load %arg7[%c8, %c0_27] : memref<32x32xbf16, #tpu.memory_space<vmem>>, vector<8x32xbf16>
    %cst_28 = arith.constant dense<0.000000e+00> : vector<32x32xf32>
    %67 = tpu.matmul %65, %66, %cst_28 {dimension_numbers = #tpu.dot_dimension_numbers<[1], [0], [0], [1], [0, 0, 1, 1], [], []>} : vector<32x8xbf16>, vector<8x32xbf16>, vector<32x32xf32> -> vector<32x32xf32>
    %68 = arith.addf %45, %67 : vector<32x32xf32>
    %69 = vector.extract_strided_slice %17 {offsets = [0, 0, 16], sizes = [2, 16, 8], strides = [1, 1, 1]} : vector<2x16x32xbf16> to vector<2x16x8xbf16>
    %70 = vector.extract_strided_slice %20 {offsets = [0, 0, 16], sizes = [2, 16, 8], strides = [1, 1, 1]} : vector<2x16x32xbf16> to vector<2x16x8xbf16>
    %71 = vector.extract_strided_slice %23 {offsets = [0, 0, 16], sizes = [2, 16, 8], strides = [1, 1, 1]} : vector<2x16x32xbf16> to vector<2x16x8xbf16>
    "tpu.trace_start"() <{level = 10 : i32, message = "bnd,bmd->bnm"}> : () -> ()
    %cst_29 = arith.constant dense<0.000000e+00> : vector<2x16x16xf32>
    %72 = tpu.matmul %69, %70, %cst_29 {dimension_numbers = #tpu.dot_dimension_numbers<[2], [2], [1], [1], [0, 0, 0, 1, 1, 1], [0], [0]>} : vector<2x16x8xbf16>, vector<2x16x8xbf16>, vector<2x16x16xf32> -> vector<2x16x16xf32>
    "tpu.trace_stop"() : () -> ()
    %cst_30 = arith.constant 0.353553385 : f32
    %73 = vector.broadcast %cst_30 : f32 to vector<2x16x16xf32>
    %74 = arith.mulf %72, %73 : vector<2x16x16xf32>
    %cst_31 = arith.constant dense<0xFF800000> : vector<2x16xf32>
    %75 = vector.multi_reduction <maximumf>, %74, %cst_31 [2] : vector<2x16x16xf32> to vector<2x16xf32>
    %76 = vector.shape_cast %75 : vector<2x16xf32> to vector<2x16x1xf32>
    %77 = vector.broadcast %76 : vector<2x16x1xf32> to vector<2x16x16xf32>
    %78 = arith.subf %74, %77 : vector<2x16x16xf32>
    %79 = math.exp %78 : vector<2x16x16xf32>
    %cst_32 = arith.constant dense<0.000000e+00> : vector<2x16xf32>
    %80 = vector.multi_reduction <add>, %79, %cst_32 [2] : vector<2x16x16xf32> to vector<2x16xf32>
    %81 = vector.shape_cast %80 : vector<2x16xf32> to vector<2x16x1xf32>
    %82 = arith.truncf %79 : vector<2x16x16xf32> to vector<2x16x16xbf16>
    "tpu.trace_start"() <{level = 10 : i32, message = "bnm,bmd->bnd"}> : () -> ()
    %cst_33 = arith.constant dense<0.000000e+00> : vector<2x16x8xf32>
    %83 = tpu.matmul %82, %71, %cst_33 {dimension_numbers = #tpu.dot_dimension_numbers<[2], [1], [1], [2], [0, 0, 0, 1, 1, 2], [0], [0]>} : vector<2x16x16xbf16>, vector<2x16x8xbf16>, vector<2x16x8xf32> -> vector<2x16x8xf32>
    "tpu.trace_stop"() : () -> ()
    %84 = tpu.reciprocal %81 {approx = true} : vector<2x16x1xf32> -> vector<2x16x1xf32>
    %85 = vector.broadcast %84 : vector<2x16x1xf32> to vector<2x16x8xf32>
    %86 = arith.mulf %83, %85 : vector<2x16x8xf32>
    %87 = arith.truncf %86 : vector<2x16x8xf32> to vector<2x16x8xbf16>
    %88 = vector.shape_cast %87 : vector<2x16x8xbf16> to vector<32x8xbf16>
    %c16 = arith.constant 16 : index
    %c0_34 = arith.constant 0 : index
    %89 = vector.load %arg7[%c16, %c0_34] : memref<32x32xbf16, #tpu.memory_space<vmem>>, vector<8x32xbf16>
    %cst_35 = arith.constant dense<0.000000e+00> : vector<32x32xf32>
    %90 = tpu.matmul %88, %89, %cst_35 {dimension_numbers = #tpu.dot_dimension_numbers<[1], [0], [0], [1], [0, 0, 1, 1], [], []>} : vector<32x8xbf16>, vector<8x32xbf16>, vector<32x32xf32> -> vector<32x32xf32>
    %91 = arith.addf %68, %90 : vector<32x32xf32>
    %92 = vector.extract_strided_slice %17 {offsets = [0, 0, 24], sizes = [2, 16, 8], strides = [1, 1, 1]} : vector<2x16x32xbf16> to vector<2x16x8xbf16>
    %93 = vector.extract_strided_slice %20 {offsets = [0, 0, 24], sizes = [2, 16, 8], strides = [1, 1, 1]} : vector<2x16x32xbf16> to vector<2x16x8xbf16>
    %94 = vector.extract_strided_slice %23 {offsets = [0, 0, 24], sizes = [2, 16, 8], strides = [1, 1, 1]} : vector<2x16x32xbf16> to vector<2x16x8xbf16>
    "tpu.trace_start"() <{level = 10 : i32, message = "bnd,bmd->bnm"}> : () -> ()
    %cst_36 = arith.constant dense<0.000000e+00> : vector<2x16x16xf32>
    %95 = tpu.matmul %92, %93, %cst_36 {dimension_numbers = #tpu.dot_dimension_numbers<[2], [2], [1], [1], [0, 0, 0, 1, 1, 1], [0], [0]>} : vector<2x16x8xbf16>, vector<2x16x8xbf16>, vector<2x16x16xf32> -> vector<2x16x16xf32>
    "tpu.trace_stop"() : () -> ()
    %cst_37 = arith.constant 0.353553385 : f32
    %96 = vector.broadcast %cst_37 : f32 to vector<2x16x16xf32>
    %97 = arith.mulf %95, %96 : vector<2x16x16xf32>
    %cst_38 = arith.constant dense<0xFF800000> : vector<2x16xf32>
    %98 = vector.multi_reduction <maximumf>, %97, %cst_38 [2] : vector<2x16x16xf32> to vector<2x16xf32>
    %99 = vector.shape_cast %98 : vector<2x16xf32> to vector<2x16x1xf32>
    %100 = vector.broadcast %99 : vector<2x16x1xf32> to vector<2x16x16xf32>
    %101 = arith.subf %97, %100 : vector<2x16x16xf32>
    %102 = math.exp %101 : vector<2x16x16xf32>
    %cst_39 = arith.constant dense<0.000000e+00> : vector<2x16xf32>
    %103 = vector.multi_reduction <add>, %102, %cst_39 [2] : vector<2x16x16xf32> to vector<2x16xf32>
    %104 = vector.shape_cast %103 : vector<2x16xf32> to vector<2x16x1xf32>
    %105 = arith.truncf %102 : vector<2x16x16xf32> to vector<2x16x16xbf16>
    "tpu.trace_start"() <{level = 10 : i32, message = "bnm,bmd->bnd"}> : () -> ()
    %cst_40 = arith.constant dense<0.000000e+00> : vector<2x16x8xf32>
    %106 = tpu.matmul %105, %94, %cst_40 {dimension_numbers = #tpu.dot_dimension_numbers<[2], [1], [1], [2], [0, 0, 0, 1, 1, 2], [0], [0]>} : vector<2x16x16xbf16>, vector<2x16x8xbf16>, vector<2x16x8xf32> -> vector<2x16x8xf32>
    "tpu.trace_stop"() : () -> ()
    %107 = tpu.reciprocal %104 {approx = true} : vector<2x16x1xf32> -> vector<2x16x1xf32>
    %108 = vector.broadcast %107 : vector<2x16x1xf32> to vector<2x16x8xf32>
    %109 = arith.mulf %106, %108 : vector<2x16x8xf32>
    %110 = arith.truncf %109 : vector<2x16x8xf32> to vector<2x16x8xbf16>
    %111 = vector.shape_cast %110 : vector<2x16x8xbf16> to vector<32x8xbf16>
    %c24 = arith.constant 24 : index
    %c0_41 = arith.constant 0 : index
    %112 = vector.load %arg7[%c24, %c0_41] : memref<32x32xbf16, #tpu.memory_space<vmem>>, vector<8x32xbf16>
    %cst_42 = arith.constant dense<0.000000e+00> : vector<32x32xf32>
    %113 = tpu.matmul %111, %112, %cst_42 {dimension_numbers = #tpu.dot_dimension_numbers<[1], [0], [0], [1], [0, 0, 1, 1], [], []>} : vector<32x8xbf16>, vector<8x32xbf16>, vector<32x32xf32> -> vector<32x32xf32>
    %114 = arith.addf %91, %113 : vector<32x32xf32>
    %c0_43 = arith.constant 0 : index
    %c0_44 = arith.constant 0 : index
    %115 = vector.load %arg8[%c0_43, %c0_44] : memref<1x32xf32, #tpu.memory_space<vmem>>, vector<1x32xf32>
    %116 = vector.broadcast %115 : vector<1x32xf32> to vector<32x32xf32>
    %117 = arith.addf %114, %116 : vector<32x32xf32>
    %c0_45 = arith.constant 0 : index
    %c0_46 = arith.constant 0 : index
    %118 = vector.load %arg9[%c0_45, %c0_46] : memref<32x64xbf16, #tpu.memory_space<vmem>>, vector<32x64xbf16>
    %cst_47 = arith.constant dense<0.000000e+00> : vector<32x64xf32>
    %119 = tpu.matmul %2, %118, %cst_47 {dimension_numbers = #tpu.dot_dimension_numbers<[1], [0], [0], [1], [0, 0, 1, 1], [], []>} : vector<32x32xbf16>, vector<32x64xbf16>, vector<32x64xf32> -> vector<32x64xf32>
    %120 = arith.truncf %117 : vector<32x32xf32> to vector<32x32xbf16>
    %c0_48 = arith.constant 0 : index
    %c0_49 = arith.constant 0 : index
    %121 = vector.load %arg10[%c0_48, %c0_49] : memref<32x64xbf16, #tpu.memory_space<vmem>>, vector<32x64xbf16>
    %cst_50 = arith.constant dense<0.000000e+00> : vector<32x64xf32>
    %122 = tpu.matmul %120, %121, %cst_50 {dimension_numbers = #tpu.dot_dimension_numbers<[1], [0], [0], [1], [0, 0, 1, 1], [], []>} : vector<32x32xbf16>, vector<32x64xbf16>, vector<32x64xf32> -> vector<32x64xf32>
    %123 = arith.addf %119, %122 : vector<32x64xf32>
    %c0_51 = arith.constant 0 : index
    %c0_52 = arith.constant 0 : index
    %124 = vector.load %arg11[%c0_51, %c0_52] : memref<1x64xf32, #tpu.memory_space<vmem>>, vector<1x64xf32>
    %125 = vector.broadcast %124 : vector<1x64xf32> to vector<32x64xf32>
    %126 = arith.mulf %123, %125 : vector<32x64xf32>
    %c0_53 = arith.constant 0 : index
    %c0_54 = arith.constant 0 : index
    %127 = vector.load %arg12[%c0_53, %c0_54] : memref<1x64xf32, #tpu.memory_space<vmem>>, vector<1x64xf32>
    %128 = vector.broadcast %127 : vector<1x64xf32> to vector<32x64xf32>
    %129 = arith.addf %126, %128 : vector<32x64xf32>
    %cst_55 = arith.constant 0.000000e+00 : f32
    %130 = vector.broadcast %cst_55 : f32 to vector<32x64xf32>
    %131 = arith.cmpf ogt, %129, %130 : vector<32x64xf32>
    %cst_56 = arith.constant 2.000000e-01 : f32
    %132 = vector.broadcast %cst_56 : f32 to vector<32x64xf32>
    %133 = arith.mulf %132, %129 : vector<32x64xf32>
    %134 = arith.select %131, %129, %133 : vector<32x64xi1>, vector<32x64xf32>
    %135 = arith.truncf %134 : vector<32x64xf32> to vector<32x64xbf16>
    %c0_57 = arith.constant 0 : index
    %c0_58 = arith.constant 0 : index
    %136 = vector.load %arg13[%c0_57, %c0_58] : memref<64x32xbf16, #tpu.memory_space<vmem>>, vector<64x32xbf16>
    %cst_59 = arith.constant dense<0.000000e+00> : vector<32x32xf32>
    %137 = tpu.matmul %135, %136, %cst_59 {dimension_numbers = #tpu.dot_dimension_numbers<[1], [0], [0], [1], [0, 0, 1, 1], [], []>} : vector<32x64xbf16>, vector<64x32xbf16>, vector<32x32xf32> -> vector<32x32xf32>
    %c0_60 = arith.constant 0 : index
    %c0_61 = arith.constant 0 : index
    %138 = vector.load %arg14[%c0_60, %c0_61] : memref<1x32xf32, #tpu.memory_space<vmem>>, vector<1x32xf32>
    %139 = vector.broadcast %138 : vector<1x32xf32> to vector<32x32xf32>
    %140 = arith.addf %137, %139 : vector<32x32xf32>
    %141 = arith.addf %1, %140 : vector<32x32xf32>
    %142 = vector.shape_cast %141 : vector<32x32xf32> to vector<2x16x32xf32>
    %c0_62 = arith.constant 0 : index
    %c0_63 = arith.constant 0 : index
    %c0_64 = arith.constant 0 : index
    %143 = vector.load %arg15[%c0_62, %c0_63, %c0_64] : memref<2x16x32xf32, #tpu.memory_space<vmem>>, vector<2x16x32xf32>
    tpu.vector_store %arg15[%c0_62, %c0_63, %c0_64], %142 {strides = array<i32>} : memref<2x16x32xf32, #tpu.memory_space<vmem>>, vector<2x16x32xf32>,
    return
  }
  func.func @transform_0(%arg0: i32) -> (i32, i32, i32) {
    %c0_i32 = arith.constant 0 : i32
    %c0_i32_0 = arith.constant 0 : i32
    %c0_i32_1 = arith.constant 0 : i32
    return %arg0, %c0_i32, %c0_i32_0 : i32, i32, i32
  }
  func.func @transform_1(%arg0: i32) -> (i32, i32, i32) {
    %c0_i32 = arith.constant 0 : i32
    %c0_i32_0 = arith.constant 0 : i32
    %c0_i32_1 = arith.constant 0 : i32
    return %arg0, %c0_i32, %c0_i32_0 : i32, i32, i32
  }
  func.func @transform_2(%arg0: i32) -> (i32, i32) {
    %c0_i32 = arith.constant 0 : i32
    %c0_i32_0 = arith.constant 0 : i32
    %c0_i32_1 = arith.constant 0 : i32
    return %c0_i32, %c0_i32_0 : i32, i32
  }
  func.func @transform_3(%arg0: i32) -> (i32, i32) {
    %c0_i32 = arith.constant 0 : i32
    %c0_i32_0 = arith.constant 0 : i32
    %c0_i32_1 = arith.constant 0 : i32
    return %c0_i32, %c0_i32_0 : i32, i32
  }
  func.func @transform_4(%arg0: i32) -> (i32, i32) {
    %c0_i32 = arith.constant 0 : i32
    %c0_i32_0 = arith.constant 0 : i32
    %c0_i32_1 = arith.constant 0 : i32
    return %c0_i32, %c0_i32_0 : i32, i32
  }
  func.func @transform_5(%arg0: i32) -> (i32, i32) {
    %c0_i32 = arith.constant 0 : i32
    %c0_i32_0 = arith.constant 0 : i32
    %c0_i32_1 = arith.constant 0 : i32
    return %c0_i32, %c0_i32_0 : i32, i32
  }
  func.func @transform_6(%arg0: i32) -> (i32, i32) {
    %c0_i32 = arith.constant 0 : i32
    %c0_i32_0 = arith.constant 0 : i32
    %c0_i32_1 = arith.constant 0 : i32
    return %c0_i32, %c0_i32_0 : i32, i32
  }
  func.func @transform_7(%arg0: i32) -> (i32, i32) {
    %c0_i32 = arith.constant 0 : i32
    %c0_i32_0 = arith.constant 0 : i32
    %c0_i32_1 = arith.constant 0 : i32
    return %c0_i32, %c0_i32_0 : i32, i32
  }
  func.func @transform_8(%arg0: i32) -> (i32, i32) {
    %c0_i32 = arith.constant 0 : i32
    %c0_i32_0 = arith.constant 0 : i32
    %c0_i32_1 = arith.constant 0 : i32
    return %c0_i32, %c0_i32_0 : i32, i32
  }
  func.func @transform_9(%arg0: i32) -> (i32, i32) {
    %c0_i32 = arith.constant 0 : i32
    %c0_i32_0 = arith.constant 0 : i32
    %c0_i32_1 = arith.constant 0 : i32
    return %c0_i32, %c0_i32_0 : i32, i32
  }
  func.func @transform_10(%arg0: i32) -> (i32, i32) {
    %c0_i32 = arith.constant 0 : i32
    %c0_i32_0 = arith.constant 0 : i32
    %c0_i32_1 = arith.constant 0 : i32
    return %c0_i32, %c0_i32_0 : i32, i32
  }
  func.func @transform_11(%arg0: i32) -> (i32, i32) {
    %c0_i32 = arith.constant 0 : i32
    %c0_i32_0 = arith.constant 0 : i32
    %c0_i32_1 = arith.constant 0 : i32
    return %c0_i32, %c0_i32_0 : i32, i32
  }
  func.func @transform_12(%arg0: i32) -> (i32, i32) {
    %c0_i32 = arith.constant 0 : i32
    %c0_i32_0 = arith.constant 0 : i32
    %c0_i32_1 = arith.constant 0 : i32
    return %c0_i32, %c0_i32_0 : i32, i32
  }
  func.func @transform_13(%arg0: i32) -> (i32, i32) {
    %c0_i32 = arith.constant 0 : i32
    %c0_i32_0 = arith.constant 0 : i32
    %c0_i32_1 = arith.constant 0 : i32
    return %c0_i32, %c0_i32_0 : i32, i32
  }
  func.func @transform_14(%arg0: i32) -> (i32, i32, i32) {
    %c0_i32 = arith.constant 0 : i32
    %c0_i32_0 = arith.constant 0 : i32
    %c0_i32_1 = arith.constant 0 : i32
    return %arg0, %c0_i32, %c0_i32_0 : i32, i32, i32
  }
}

module attributes {stable_mosaic.version = 11 : i64} {
  func.func @_attn_prop_kernel(%arg0: i32, %arg1: memref<2x16x32xf32, #tpu.memory_space<vmem>>, %arg2: memref<2x16x32xf32, #tpu.memory_space<vmem>>, %arg3: memref<32x32xbf16, #tpu.memory_space<vmem>>, %arg4: memref<1x32xf32, #tpu.memory_space<vmem>>, %arg5: memref<32x64xbf16, #tpu.memory_space<vmem>>, %arg6: memref<1x64xf32, #tpu.memory_space<vmem>>, %arg7: memref<32x32xbf16, #tpu.memory_space<vmem>>, %arg8: memref<1x32xf32, #tpu.memory_space<vmem>>, %arg9: memref<32x64xbf16, #tpu.memory_space<vmem>>, %arg10: memref<32x64xbf16, #tpu.memory_space<vmem>>, %arg11: memref<1x64xf32, #tpu.memory_space<vmem>>, %arg12: memref<1x64xf32, #tpu.memory_space<vmem>>, %arg13: memref<64x32xbf16, #tpu.memory_space<vmem>>, %arg14: memref<1x32xf32, #tpu.memory_space<vmem>>, %arg15: memref<2x16x32xf32, #tpu.memory_space<vmem>>) attributes {dimension_semantics = [#tpu.dimension_semantics<parallel>], iteration_bounds = array<i64: 2>, scalar_prefetch = 0 : i64, scratch_operands = 0 : i64, tpu.core_type = #tpu.core_type<tc>, window_params = [{transform_indices = @transform_0, window_bounds = array<i64: 2, 16, 32>}, {transform_indices = @transform_1, window_bounds = array<i64: 2, 16, 32>}, {pipeline_mode = #tpu.pipeline_mode<synchronous>, transform_indices = @transform_2, window_bounds = array<i64: 32, 32>}, {pipeline_mode = #tpu.pipeline_mode<synchronous>, transform_indices = @transform_3, window_bounds = array<i64: 1, 32>}, {pipeline_mode = #tpu.pipeline_mode<synchronous>, transform_indices = @transform_4, window_bounds = array<i64: 32, 64>}, {pipeline_mode = #tpu.pipeline_mode<synchronous>, transform_indices = @transform_5, window_bounds = array<i64: 1, 64>}, {pipeline_mode = #tpu.pipeline_mode<synchronous>, transform_indices = @transform_6, window_bounds = array<i64: 32, 32>}, {pipeline_mode = #tpu.pipeline_mode<synchronous>, transform_indices = @transform_7, window_bounds = array<i64: 1, 32>}, {pipeline_mode = #tpu.pipeline_mode<synchronous>, transform_indices = @transform_8, window_bounds = array<i64: 32, 64>}, {pipeline_mode = #tpu.pipeline_mode<synchronous>, transform_indices = @transform_9, window_bounds = array<i64: 32, 64>}, {pipeline_mode = #tpu.pipeline_mode<synchronous>, transform_indices = @transform_10, window_bounds = array<i64: 1, 64>}, {pipeline_mode = #tpu.pipeline_mode<synchronous>, transform_indices = @transform_11, window_bounds = array<i64: 1, 64>}, {pipeline_mode = #tpu.pipeline_mode<synchronous>, transform_indices = @transform_12, window_bounds = array<i64: 64, 32>}, {pipeline_mode = #tpu.pipeline_mode<synchronous>, transform_indices = @transform_13, window_bounds = array<i64: 1, 32>}, {transform_indices = @transform_14, window_bounds = array<i64: 2, 16, 32>}]} {
    %c0 = arith.constant 0 : index
    %c0_0 = arith.constant 0 : index
    %c0_1 = arith.constant 0 : index
    %0 = vector.load %arg1[%c0, %c0_0, %c0_1] : memref<2x16x32xf32, #tpu.memory_space<vmem>>, vector<2x16x32xf32>
    %1 = vector.shape_cast %0 : vector<2x16x32xf32> to vector<32x32xf32>
    %2 = arith.truncf %1 : vector<32x32xf32> to vector<32x32xbf16>
    %c0_2 = arith.constant 0 : index
    %c0_3 = arith.constant 0 : index
    %c0_4 = arith.constant 0 : index
    %3 = vector.load %arg2[%c0_2, %c0_3, %c0_4] : memref<2x16x32xf32, #tpu.memory_space<vmem>>, vector<2x16x32xf32>
    %4 = arith.truncf %3 : vector<2x16x32xf32> to vector<2x16x32xbf16>
    %5 = vector.shape_cast %4 : vector<2x16x32xbf16> to vector<32x32xbf16>
    %c0_5 = arith.constant 0 : index
    %c0_6 = arith.constant 0 : index
    %6 = vector.load %arg3[%c0_5, %c0_6] : memref<32x32xbf16, #tpu.memory_space<vmem>>, vector<32x32xbf16>
    %cst = arith.constant dense<0.000000e+00> : vector<32x32xf32>
    %7 = tpu.matmul %2, %6, %cst {dimension_numbers = #tpu.dot_dimension_numbers<[1], [0], [0], [1], [0, 0, 1, 1], [], []>} : vector<32x32xbf16>, vector<32x32xbf16>, vector<32x32xf32> -> vector<32x32xf32>
    %c0_7 = arith.constant 0 : index
    %c0_8 = arith.constant 0 : index
    %8 = vector.load %arg4[%c0_7, %c0_8] : memref<1x32xf32, #tpu.memory_space<vmem>>, vector<1x32xf32>
    %9 = vector.broadcast %8 : vector<1x32xf32> to vector<32x32xf32>
    %10 = arith.addf %7, %9 : vector<32x32xf32>
    %c0_9 = arith.constant 0 : index
    %c0_10 = arith.constant 0 : index
    %11 = vector.load %arg5[%c0_9, %c0_10] : memref<32x64xbf16, #tpu.memory_space<vmem>>, vector<32x64xbf16>
    %cst_11 = arith.constant dense<0.000000e+00> : vector<32x64xf32>
    %12 = tpu.matmul %5, %11, %cst_11 {dimension_numbers = #tpu.dot_dimension_numbers<[1], [0], [0], [1], [0, 0, 1, 1], [], []>} : vector<32x32xbf16>, vector<32x64xbf16>, vector<32x64xf32> -> vector<32x64xf32>
    %c0_12 = arith.constant 0 : index
    %c0_13 = arith.constant 0 : index
    %13 = vector.load %arg6[%c0_12, %c0_13] : memref<1x64xf32, #tpu.memory_space<vmem>>, vector<1x64xf32>
    %14 = vector.broadcast %13 : vector<1x64xf32> to vector<32x64xf32>
    %15 = arith.addf %12, %14 : vector<32x64xf32>
    %16 = arith.truncf %10 : vector<32x32xf32> to vector<32x32xbf16>
    %17 = vector.shape_cast %16 : vector<32x32xbf16> to vector<2x16x32xbf16>
    %18 = vector.extract_strided_slice %15 {offsets = [0, 0], sizes = [32, 32], strides = [1, 1]} : vector<32x64xf32> to vector<32x32xf32>
    %19 = arith.truncf %18 : vector<32x32xf32> to vector<32x32xbf16>
    %20 = vector.shape_cast %19 : vector<32x32xbf16> to vector<2x16x32xbf16>
    %21 = vector.extract_strided_slice %15 {offsets = [0, 32], sizes = [32, 32], strides = [1, 1]} : vector<32x64xf32> to vector<32x32xf32>
    %22 = arith.truncf %21 : vector<32x32xf32> to vector<32x32xbf16>
    %23 = vector.shape_cast %22 : vector<32x32xbf16> to vector<2x16x32xbf16>
    %24 = vector.extract_strided_slice %17 {offsets = [0, 0, 0], sizes = [2, 16, 8], strides = [1, 1, 1]} : vector<2x16x32xbf16> to vector<2x16x8xbf16>
    %25 = vector.extract_strided_slice %20 {offsets = [0, 0, 0], sizes = [2, 16, 8], strides = [1, 1, 1]} : vector<2x16x32xbf16> to vector<2x16x8xbf16>
    %26 = vector.extract_strided_slice %23 {offsets = [0, 0, 0], sizes = [2, 16, 8], strides = [1, 1, 1]} : vector<2x16x32xbf16> to vector<2x16x8xbf16>
    "tpu.trace_start"() <{level = 10 : i32, message = "bnd,bmd->bnm"}> : () -> ()
    %cst_14 = arith.constant dense<0.000000e+00> : vector<2x16x16xf32>
    %27 = tpu.matmul %24, %25, %cst_14 {dimension_numbers = #tpu.dot_dimension_numbers<[2], [2], [1], [1], [0, 0, 0, 1, 1, 1], [0], [0]>} : vector<2x16x8xbf16>, vector<2x16x8xbf16>, vector<2x16x16xf32> -> vector<2x16x16xf32>
    "tpu.trace_stop"() : () -> ()
    %cst_15 = arith.constant 0.353553385 : f32
    %28 = vector.broadcast %cst_15 : f32 to vector<2x16x16xf32>
    %29 = arith.mulf %27, %28 : vector<2x16x16xf32>
    %cst_16 = arith.constant dense<0xFF800000> : vector<2x16xf32>
    %30 = vector.multi_reduction <maximumf>, %29, %cst_16 [2] : vector<2x16x16xf32> to vector<2x16xf32>
    %31 = vector.shape_cast %30 : vector<2x16xf32> to vector<2x16x1xf32>
    %32 = vector.broadcast %31 : vector<2x16x1xf32> to vector<2x16x16xf32>
    %33 = arith.subf %29, %32 : vector<2x16x16xf32>
    %34 = math.exp %33 : vector<2x16x16xf32>
    %cst_17 = arith.constant dense<0.000000e+00> : vector<2x16xf32>
    %35 = vector.multi_reduction <add>, %34, %cst_17 [2] : vector<2x16x16xf32> to vector<2x16xf32>
    %36 = vector.shape_cast %35 : vector<2x16xf32> to vector<2x16x1xf32>
    %37 = arith.truncf %34 : vector<2x16x16xf32> to vector<2x16x16xbf16>
    "tpu.trace_start"() <{level = 10 : i32, message = "bnm,bmd->bnd"}> : () -> ()
    %cst_18 = arith.constant dense<0.000000e+00> : vector<2x16x8xf32>
    %38 = tpu.matmul %37, %26, %cst_18 {dimension_numbers = #tpu.dot_dimension_numbers<[2], [1], [1], [2], [0, 0, 0, 1, 1, 2], [0], [0]>} : vector<2x16x16xbf16>, vector<2x16x8xbf16>, vector<2x16x8xf32> -> vector<2x16x8xf32>
    "tpu.trace_stop"() : () -> ()
    %39 = tpu.reciprocal %36 {approx = true} : vector<2x16x1xf32> -> vector<2x16x1xf32>
    %40 = vector.broadcast %39 : vector<2x16x1xf32> to vector<2x16x8xf32>
    %41 = arith.mulf %38, %40 : vector<2x16x8xf32>
    %42 = arith.truncf %41 : vector<2x16x8xf32> to vector<2x16x8xbf16>
    %43 = vector.shape_cast %42 : vector<2x16x8xbf16> to vector<32x8xbf16>
    %c0_19 = arith.constant 0 : index
    %c0_20 = arith.constant 0 : index
    %44 = vector.load %arg7[%c0_19, %c0_20] : memref<32x32xbf16, #tpu.memory_space<vmem>>, vector<8x32xbf16>
    %cst_21 = arith.constant dense<0.000000e+00> : vector<32x32xf32>
    %45 = tpu.matmul %43, %44, %cst_21 {dimension_numbers = #tpu.dot_dimension_numbers<[1], [0], [0], [1], [0, 0, 1, 1], [], []>} : vector<32x8xbf16>, vector<8x32xbf16>, vector<32x32xf32> -> vector<32x32xf32>
    %46 = vector.extract_strided_slice %17 {offsets = [0, 0, 8], sizes = [2, 16, 8], strides = [1, 1, 1]} : vector<2x16x32xbf16> to vector<2x16x8xbf16>
    %47 = vector.extract_strided_slice %20 {offsets = [0, 0, 8], sizes = [2, 16, 8], strides = [1, 1, 1]} : vector<2x16x32xbf16> to vector<2x16x8xbf16>
    %48 = vector.extract_strided_slice %23 {offsets = [0, 0, 8], sizes = [2, 16, 8], strides = [1, 1, 1]} : vector<2x16x32xbf16> to vector<2x16x8xbf16>
    "tpu.trace_start"() <{level = 10 : i32, message = "bnd,bmd->bnm"}> : () -> ()
    %cst_22 = arith.constant dense<0.000000e+00> : vector<2x16x16xf32>
    %49 = tpu.matmul %46, %47, %cst_22 {dimension_numbers = #tpu.dot_dimension_numbers<[2], [2], [1], [1], [0, 0, 0, 1, 1, 1], [0], [0]>} : vector<2x16x8xbf16>, vector<2x16x8xbf16>, vector<2x16x16xf32> -> vector<2x16x16xf32>
    "tpu.trace_stop"() : () -> ()
    %cst_23 = arith.constant 0.353553385 : f32
    %50 = vector.broadcast %cst_23 : f32 to vector<2x16x16xf32>
    %51 = arith.mulf %49, %50 : vector<2x16x16xf32>
    %cst_24 = arith.constant dense<0xFF800000> : vector<2x16xf32>
    %52 = vector.multi_reduction <maximumf>, %51, %cst_24 [2] : vector<2x16x16xf32> to vector<2x16xf32>
    %53 = vector.shape_cast %52 : vector<2x16xf32> to vector<2x16x1xf32>
    %54 = vector.broadcast %53 : vector<2x16x1xf32> to vector<2x16x16xf32>
    %55 = arith.subf %51, %54 : vector<2x16x16xf32>
    %56 = math.exp %55 : vector<2x16x16xf32>
    %cst_25 = arith.constant dense<0.000000e+00> : vector<2x16xf32>
    %57 = vector.multi_reduction <add>, %56, %cst_25 [2] : vector<2x16x16xf32> to vector<2x16xf32>
    %58 = vector.shape_cast %57 : vector<2x16xf32> to vector<2x16x1xf32>
    %59 = arith.truncf %56 : vector<2x16x16xf32> to vector<2x16x16xbf16>
    "tpu.trace_start"() <{level = 10 : i32, message = "bnm,bmd->bnd"}> : () -> ()
    %cst_26 = arith.constant dense<0.000000e+00> : vector<2x16x8xf32>
    %60 = tpu.matmul %59, %48, %cst_26 {dimension_numbers = #tpu.dot_dimension_numbers<[2], [1], [1], [2], [0, 0, 0, 1, 1, 2], [0], [0]>} : vector<2x16x16xbf16>, vector<2x16x8xbf16>, vector<2x16x8xf32> -> vector<2x16x8xf32>
    "tpu.trace_stop"() : () -> ()
    %61 = tpu.reciprocal %58 {approx = true} : vector<2x16x1xf32> -> vector<2x16x1xf32>
    %62 = vector.broadcast %61 : vector<2x16x1xf32> to vector<2x16x8xf32>
    %63 = arith.mulf %60, %62 : vector<2x16x8xf32>
    %64 = arith.truncf %63 : vector<2x16x8xf32> to vector<2x16x8xbf16>
    %65 = vector.shape_cast %64 : vector<2x16x8xbf16> to vector<32x8xbf16>
    %c8 = arith.constant 8 : index
    %c0_27 = arith.constant 0 : index
    %66 = vector.load %arg7[%c8, %c0_27] : memref<32x32xbf16, #tpu.memory_space<vmem>>, vector<8x32xbf16>
    %cst_28 = arith.constant dense<0.000000e+00> : vector<32x32xf32>
    %67 = tpu.matmul %65, %66, %cst_28 {dimension_numbers = #tpu.dot_dimension_numbers<[1], [0], [0], [1], [0, 0, 1, 1], [], []>} : vector<32x8xbf16>, vector<8x32xbf16>, vector<32x32xf32> -> vector<32x32xf32>
    %68 = arith.addf %45, %67 : vector<32x32xf32>
    %69 = vector.extract_strided_slice %17 {offsets = [0, 0, 16], sizes = [2, 16, 8], strides = [1, 1, 1]} : vector<2x16x32xbf16> to vector<2x16x8xbf16>
    %70 = vector.extract_strided_slice %20 {offsets = [0, 0, 16], sizes = [2, 16, 8], strides = [1, 1, 1]} : vector<2x16x32xbf16> to vector<2x16x8xbf16>
    %71 = vector.extract_strided_slice %23 {offsets = [0, 0, 16], sizes = [2, 16, 8], strides = [1, 1, 1]} : vector<2x16x32xbf16> to vector<2x16x8xbf16>
    "tpu.trace_start"() <{level = 10 : i32, message = "bnd,bmd->bnm"}> : () -> ()
    %cst_29 = arith.constant dense<0.000000e+00> : vector<2x16x16xf32>
    %72 = tpu.matmul %69, %70, %cst_29 {dimension_numbers = #tpu.dot_dimension_numbers<[2], [2], [1], [1], [0, 0, 0, 1, 1, 1], [0], [0]>} : vector<2x16x8xbf16>, vector<2x16x8xbf16>, vector<2x16x16xf32> -> vector<2x16x16xf32>
    "tpu.trace_stop"() : () -> ()
    %cst_30 = arith.constant 0.353553385 : f32
    %73 = vector.broadcast %cst_30 : f32 to vector<2x16x16xf32>
    %74 = arith.mulf %72, %73 : vector<2x16x16xf32>
    %cst_31 = arith.constant dense<0xFF800000> : vector<2x16xf32>
    %75 = vector.multi_reduction <maximumf>, %74, %cst_31 [2] : vector<2x16x16xf32> to vector<2x16xf32>
    %76 = vector.shape_cast %75 : vector<2x16xf32> to vector<2x16x1xf32>
    %77 = vector.broadcast %76 : vector<2x16x1xf32> to vector<2x16x16xf32>
    %78 = arith.subf %74, %77 : vector<2x16x16xf32>
    %79 = math.exp %78 : vector<2x16x16xf32>
    %cst_32 = arith.constant dense<0.000000e+00> : vector<2x16xf32>
    %80 = vector.multi_reduction <add>, %79, %cst_32 [2] : vector<2x16x16xf32> to vector<2x16xf32>
    %81 = vector.shape_cast %80 : vector<2x16xf32> to vector<2x16x1xf32>
    %82 = arith.truncf %79 : vector<2x16x16xf32> to vector<2x16x16xbf16>
    "tpu.trace_start"() <{level = 10 : i32, message = "bnm,bmd->bnd"}> : () -> ()
    %cst_33 = arith.constant dense<0.000000e+00> : vector<2x16x8xf32>
    %83 = tpu.matmul %82, %71, %cst_33 {dimension_numbers = #tpu.dot_dimension_numbers<[2], [1], [1], [2], [0, 0, 0, 1, 1, 2], [0], [0]>} : vector<2x16x16xbf16>, vector<2x16x8xbf16>, vector<2x16x8xf32> -> vector<2x16x8xf32>
    "tpu.trace_stop"() : () -> ()
    %84 = tpu.reciprocal %81 {approx = true} : vector<2x16x1xf32> -> vector<2x16x1xf32>
    %85 = vector.broadcast %84 : vector<2x16x1xf32> to vector<2x16x8xf32>
    %86 = arith.mulf %83, %85 : vector<2x16x8xf32>
    %87 = arith.truncf %86 : vector<2x16x8xf32> to vector<2x16x8xbf16>
    %88 = vector.shape_cast %87 : vector<2x16x8xbf16> to vector<32x8xbf16>
    %c16 = arith.constant 16 : index
    %c0_34 = arith.constant 0 : index
    %89 = vector.load %arg7[%c16, %c0_34] : memref<32x32xbf16, #tpu.memory_space<vmem>>, vector<8x32xbf16>
    %cst_35 = arith.constant dense<0.000000e+00> : vector<32x32xf32>
    %90 = tpu.matmul %88, %89, %cst_35 {dimension_numbers = #tpu.dot_dimension_numbers<[1], [0], [0], [1], [0, 0, 1, 1], [], []>} : vector<32x8xbf16>, vector<8x32xbf16>, vector<32x32xf32> -> vector<32x32xf32>
    %91 = arith.addf %68, %90 : vector<32x32xf32>
    %92 = vector.extract_strided_slice %17 {offsets = [0, 0, 24], sizes = [2, 16, 8], strides = [1, 1, 1]} : vector<2x16x32xbf16> to vector<2x16x8xbf16>
    %93 = vector.extract_strided_slice %20 {offsets = [0, 0, 24], sizes = [2, 16, 8], strides = [1, 1, 1]} : vector<2x16x32xbf16> to vector<2x16x8xbf16>
    %94 = vector.extract_strided_slice %23 {offsets = [0, 0, 24], sizes = [2, 16, 8], strides = [1, 1, 1]} : vector<2x16x32xbf16> to vector<2x16x8xbf16>
    "tpu.trace_start"() <{level = 10 : i32, message = "bnd,bmd->bnm"}> : () -> ()
    %cst_36 = arith.constant dense<0.000000e+00> : vector<2x16x16xf32>
    %95 = tpu.matmul %92, %93, %cst_36 {dimension_numbers = #tpu.dot_dimension_numbers<[2], [2], [1], [1], [0, 0, 0, 1, 1, 1], [0], [0]>} : vector<2x16x8xbf16>, vector<2x16x8xbf16>, vector<2x16x16xf32> -> vector<2x16x16xf32>
    "tpu.trace_stop"() : () -> ()
    %cst_37 = arith.constant 0.353553385 : f32
    %96 = vector.broadcast %cst_37 : f32 to vector<2x16x16xf32>
    %97 = arith.mulf %95, %96 : vector<2x16x16xf32>
    %cst_38 = arith.constant dense<0xFF800000> : vector<2x16xf32>
    %98 = vector.multi_reduction <maximumf>, %97, %cst_38 [2] : vector<2x16x16xf32> to vector<2x16xf32>
    %99 = vector.shape_cast %98 : vector<2x16xf32> to vector<2x16x1xf32>
    %100 = vector.broadcast %99 : vector<2x16x1xf32> to vector<2x16x16xf32>
    %101 = arith.subf %97, %100 : vector<2x16x16xf32>
    %102 = math.exp %101 : vector<2x16x16xf32>
    %cst_39 = arith.constant dense<0.000000e+00> : vector<2x16xf32>
    %103 = vector.multi_reduction <add>, %102, %cst_39 [2] : vector<2x16x16xf32> to vector<2x16xf32>
    %104 = vector.shape_cast %103 : vector<2x16xf32> to vector<2x16x1xf32>
    %105 = arith.truncf %102 : vector<2x16x16xf32> to vector<2x16x16xbf16>
    "tpu.trace_start"() <{level = 10 : i32, message = "bnm,bmd->bnd"}> : () -> ()
    %cst_40 = arith.constant dense<0.000000e+00> : vector<2x16x8xf32>
    %106 = tpu.matmul %105, %94, %cst_40 {dimension_numbers = #tpu.dot_dimension_numbers<[2], [1], [1], [2], [0, 0, 0, 1, 1, 2], [0], [0]>} : vector<2x16x16xbf16>, vector<2x16x8xbf16>, vector<2x16x8xf32> -> vector<2x16x8xf32>
    "tpu.trace_stop"() : () -> ()
    %107 = tpu.reciprocal %104 {approx = true} : vector<2x16x1xf32> -> vector<2x16x1xf32>
    %108 = vector.broadcast %107 : vector<2x16x1xf32> to vector<2x16x8xf32>
    %109 = arith.mulf %106, %108 : vector<2x16x8xf32>
    %110 = arith.truncf %109 : vector<2x16x8xf32> to vector<2x16x8xbf16>
    %111 = vector.shape_cast %110 : vector<2x16x8xbf16> to vector<32x8xbf16>
    %c24 = arith.constant 24 : index
    %c0_41 = arith.constant 0 : index
    %112 = vector.load %arg7[%c24, %c0_41] : memref<32x32xbf16, #tpu.memory_space<vmem>>, vector<8x32xbf16>
    %cst_42 = arith.constant dense<0.000000e+00> : vector<32x32xf32>
    %113 = tpu.matmul %111, %112, %cst_42 {dimension_numbers = #tpu.dot_dimension_numbers<[1], [0], [0], [1], [0, 0, 1, 1], [], []>} : vector<32x8xbf16>, vector<8x32xbf16>, vector<32x32xf32> -> vector<32x32xf32>
    %114 = arith.addf %91, %113 : vector<32x32xf32>
    %c0_43 = arith.constant 0 : index
    %c0_44 = arith.constant 0 : index
    %115 = vector.load %arg8[%c0_43, %c0_44] : memref<1x32xf32, #tpu.memory_space<vmem>>, vector<1x32xf32>
    %116 = vector.broadcast %115 : vector<1x32xf32> to vector<32x32xf32>
    %117 = arith.addf %114, %116 : vector<32x32xf32>
    %c0_45 = arith.constant 0 : index
    %c0_46 = arith.constant 0 : index
    %118 = vector.load %arg9[%c0_45, %c0_46] : memref<32x64xbf16, #tpu.memory_space<vmem>>, vector<32x64xbf16>
    %cst_47 = arith.constant dense<0.000000e+00> : vector<32x64xf32>
    %119 = tpu.matmul %2, %118, %cst_47 {dimension_numbers = #tpu.dot_dimension_numbers<[1], [0], [0], [1], [0, 0, 1, 1], [], []>} : vector<32x32xbf16>, vector<32x64xbf16>, vector<32x64xf32> -> vector<32x64xf32>
    %120 = arith.truncf %117 : vector<32x32xf32> to vector<32x32xbf16>
    %c0_48 = arith.constant 0 : index
    %c0_49 = arith.constant 0 : index
    %121 = vector.load %arg10[%c0_48, %c0_49] : memref<32x64xbf16, #tpu.memory_space<vmem>>, vector<32x64xbf16>
    %cst_50 = arith.constant dense<0.000000e+00> : vector<32x64xf32>
    %122 = tpu.matmul %120, %121, %cst_50 {dimension_numbers = #tpu.dot_dimension_numbers<[1], [0], [0], [1], [0, 0, 1, 1], [], []>} : vector<32x32xbf16>, vector<32x64xbf16>, vector<32x64xf32> -> vector<32x64xf32>
    %123 = arith.addf %119, %122 : vector<32x64xf32>
    %c0_51 = arith.constant 0 : index
    %c0_52 = arith.constant 0 : index
    %124 = vector.load %arg11[%c0_51, %c0_52] : memref<1x64xf32, #tpu.memory_space<vmem>>, vector<1x64xf32>
    %125 = vector.broadcast %124 : vector<1x64xf32> to vector<32x64xf32>
    %126 = arith.mulf %123, %125 : vector<32x64xf32>
    %c0_53 = arith.constant 0 : index
    %c0_54 = arith.constant 0 : index
    %127 = vector.load %arg12[%c0_53, %c0_54] : memref<1x64xf32, #tpu.memory_space<vmem>>, vector<1x64xf32>
    %128 = vector.broadcast %127 : vector<1x64xf32> to vector<32x64xf32>
    %129 = arith.addf %126, %128 : vector<32x64xf32>
    %cst_55 = arith.constant 0.000000e+00 : f32
    %130 = vector.broadcast %cst_55 : f32 to vector<32x64xf32>
    %131 = arith.cmpf ogt, %129, %130 : vector<32x64xf32>
    %cst_56 = arith.constant 2.000000e-01 : f32
    %132 = vector.broadcast %cst_56 : f32 to vector<32x64xf32>
    %133 = arith.mulf %132, %129 : vector<32x64xf32>
    %134 = arith.select %131, %129, %133 : vector<32x64xi1>, vector<32x64xf32>
    %135 = arith.truncf %134 : vector<32x64xf32> to vector<32x64xbf16>
    %c0_57 = arith.constant 0 : index
    %c0_58 = arith.constant 0 : index
    %136 = vector.load %arg13[%c0_57, %c0_58] : memref<64x32xbf16, #tpu.memory_space<vmem>>, vector<64x32xbf16>
    %cst_59 = arith.constant dense<0.000000e+00> : vector<32x32xf32>
    %137 = tpu.matmul %135, %136, %cst_59 {dimension_numbers = #tpu.dot_dimension_numbers<[1], [0], [0], [1], [0, 0, 1, 1], [], []>} : vector<32x64xbf16>, vector<64x32xbf16>, vector<32x32xf32> -> vector<32x32xf32>
    %c0_60 = arith.constant 0 : index
    %c0_61 = arith.constant 0 : index
    %138 = vector.load %arg14[%c0_60, %c0_61] : memref<1x32xf32, #tpu.memory_space<vmem>>, vector<1x32xf32>
    %139 = vector.broadcast %138 : vector<1x32xf32> to vector<32x32xf32>
    %140 = arith.addf %137, %139 : vector<32x32xf32>
    %141 = arith.addf %1, %140 : vector<32x32xf32>
    %142 = vector.shape_cast %141 : vector<32x32xf32> to vector<2x16x32xf32>
    %c0_62 = arith.constant 0 : index
    %c0_63 = arith.constant 0 : index
    %c0_64 = arith.constant 0 : index
    %143 = vector.load %arg15[%c0_62, %c0_63, %c0_64] : memref<2x16x32xf32, #tpu.memory_space<vmem>>, vector<2x16x32xf32>
    tpu.vector_store %arg15[%c0_62, %c0_63, %c0_64], %142 {strides = array<i32>} : memref<2x16x32xf32, #tpu.memory_space<vmem>>, vector<2x16x32xf32>,
    return
  }
  func.func @transform_0(%arg0: i32) -> (i32, i32, i32) {
    %c0_i32 = arith.constant 0 : i32
    %c0_i32_0 = arith.constant 0 : i32
    %c0_i32_1 = arith.constant 0 : i32
    return %arg0, %c0_i32, %c0_i32_0 : i32, i32, i32
  }
  func.func @transform_1(%arg0: i32) -> (i32, i32, i32) {
    %c0_i32 = arith.constant 0 : i32
    %c0_i32_0 = arith.constant 0 : i32
    %c0_i32_1 = arith.constant 0 : i32
    return %arg0, %c0_i32, %c0_i32_0 : i32, i32, i32
  }
  func.func @transform_2(%arg0: i32) -> (i32, i32) {
    %c0_i32 = arith.constant 0 : i32
    %c0_i32_0 = arith.constant 0 : i32
    %c0_i32_1 = arith.constant 0 : i32
    return %c0_i32, %c0_i32_0 : i32, i32
  }
  func.func @transform_3(%arg0: i32) -> (i32, i32) {
    %c0_i32 = arith.constant 0 : i32
    %c0_i32_0 = arith.constant 0 : i32
    %c0_i32_1 = arith.constant 0 : i32
    return %c0_i32, %c0_i32_0 : i32, i32
  }
  func.func @transform_4(%arg0: i32) -> (i32, i32) {
    %c0_i32 = arith.constant 0 : i32
    %c0_i32_0 = arith.constant 0 : i32
    %c0_i32_1 = arith.constant 0 : i32
    return %c0_i32, %c0_i32_0 : i32, i32
  }
  func.func @transform_5(%arg0: i32) -> (i32, i32) {
    %c0_i32 = arith.constant 0 : i32
    %c0_i32_0 = arith.constant 0 : i32
    %c0_i32_1 = arith.constant 0 : i32
    return %c0_i32, %c0_i32_0 : i32, i32
  }
  func.func @transform_6(%arg0: i32) -> (i32, i32) {
    %c0_i32 = arith.constant 0 : i32
    %c0_i32_0 = arith.constant 0 : i32
    %c0_i32_1 = arith.constant 0 : i32
    return %c0_i32, %c0_i32_0 : i32, i32
  }
  func.func @transform_7(%arg0: i32) -> (i32, i32) {
    %c0_i32 = arith.constant 0 : i32
    %c0_i32_0 = arith.constant 0 : i32
    %c0_i32_1 = arith.constant 0 : i32
    return %c0_i32, %c0_i32_0 : i32, i32
  }
  func.func @transform_8(%arg0: i32) -> (i32, i32) {
    %c0_i32 = arith.constant 0 : i32
    %c0_i32_0 = arith.constant 0 : i32
    %c0_i32_1 = arith.constant 0 : i32
    return %c0_i32, %c0_i32_0 : i32, i32
  }
  func.func @transform_9(%arg0: i32) -> (i32, i32) {
    %c0_i32 = arith.constant 0 : i32
    %c0_i32_0 = arith.constant 0 : i32
    %c0_i32_1 = arith.constant 0 : i32
    return %c0_i32, %c0_i32_0 : i32, i32
  }
  func.func @transform_10(%arg0: i32) -> (i32, i32) {
    %c0_i32 = arith.constant 0 : i32
    %c0_i32_0 = arith.constant 0 : i32
    %c0_i32_1 = arith.constant 0 : i32
    return %c0_i32, %c0_i32_0 : i32, i32
  }
  func.func @transform_11(%arg0: i32) -> (i32, i32) {
    %c0_i32 = arith.constant 0 : i32
    %c0_i32_0 = arith.constant 0 : i32
    %c0_i32_1 = arith.constant 0 : i32
    return %c0_i32, %c0_i32_0 : i32, i32
  }
  func.func @transform_12(%arg0: i32) -> (i32, i32) {
    %c0_i32 = arith.constant 0 : i32
    %c0_i32_0 = arith.constant 0 : i32
    %c0_i32_1 = arith.constant 0 : i32
    return %c0_i32, %c0_i32_0 : i32, i32
  }
  func.func @transform_13(%arg0: i32) -> (i32, i32) {
    %c0_i32 = arith.constant 0 : i32
    %c0_i32_0 = arith.constant 0 : i32
    %c0_i32_1 = arith.constant 0 : i32
    return %c0_i32, %c0_i32_0 : i32, i32
  }
  func.func @transform_14(%arg0: i32) -> (i32, i32, i32) {
    %c0_i32 = arith.constant 0 : i32
    %c0_i32_0 = arith.constant 0 : i32
    %c0_i32_1 = arith.constant 0 : i32
    return %arg0, %c0_i32, %c0_i32_0 : i32, i32, i32
  }
}

</mosaic_0001>

<bundles_post_ra>
// kernel: tpu_custom_call.1
= control target key start
LH: loop header
LB: loop body
LE: loop exit
PB: predicated region body
PF: predicated region fallthrough
CT: control target
= control target key end

     0   :  { %s3747_s0 = inlined_call_operand.hbm [shape: f32[4,16,32], index: 0, kind: input, shape index: {}]   ;;  %s3748_s1 = inlined_call_operand.hbm [shape: f32[4,16,32], index: 1, kind: input, shape index: {}]   ;;  %s3749_s2 = inlined_call_operand.vmem [shape: bf16[32,32], index: 2, kind: input, shape index: {}]   ;;  %s3750_s3 = inlined_call_operand.vmem [shape: f32[1,32], index: 3, kind: input, shape index: {}]   ;;  %s3751_s4 = inlined_call_operand.vmem [shape: bf16[32,64], index: 4, kind: input, shape index: {}]   ;;  %s3752_s5 = inlined_call_operand.vmem [shape: f32[1,64], index: 5, kind: input, shape index: {}]   ;;  %s3753_s6 = inlined_call_operand.vmem [shape: bf16[32,32], index: 6, kind: input, shape index: {}]   ;;  %s3754_s7 = inlined_call_operand.hbm [shape: f32[1,32], index: 7, kind: input, shape index: {}]   ;;  %s3755_s8 = inlined_call_operand.hbm [shape: bf16[32,64], index: 8, kind: input, shape index: {}]   ;;  %s3756_s9 = inlined_call_operand.vmem [shape: bf16[32,64], index: 9, kind: input, shape index: {}]   ;;  %s3757_s10 = inlined_call_operand.vmem [shape: f32[1,64], index: 10, kind: input, shape index: {}]   ;;  %s3758_s11 = inlined_call_operand.vmem [shape: f32[1,64], index: 11, kind: input, shape index: {}]   ;;  %s3759_s12 = inlined_call_operand.vmem [shape: bf16[64,32], index: 12, kind: input, shape index: {}]   ;;  %s3760_s13 = inlined_call_operand.vmem [shape: f32[1,32], index: 13, kind: input, shape index: {}]   ;;  %s3761_s14 = inlined_call_operand.hbm [shape: f32[4,16,32], index: 14, kind: output, shape index: {}]  }
   0x1   :  { %3774 = sst [smem:[#allocation21_spill]] %s3747_s0 }
   0x2   :  { %3775 = sst [smem:[#allocation22_spill]] %s3754_s7 }
   0x3   :  { %3776 = sst [smem:[#allocation23_spill]] %s3757_s10 }
   0x4   :  { %3777 = sst [smem:[#allocation24_spill]] %s3758_s11 }
   0x5   :  { %3778 = sst [smem:[#allocation25_spill]] %s3760_s13 }
   0x6   :  { %3779 = sst [smem:[#allocation26_spill]] %s3761_s14 }
   0x7   :  { %19 = vsyncpa [#allocation3], 0 }
   0x8   :  { %21 = vsyncpa [#allocation3 + $0x1], 0 }
   0x9   :  { %22 = vsyncpa [#allocation6], 0 }
   0xa   :  { %24 = vsyncpa [#allocation6 + $0x1], 0 }
   0xb   :  { %25 = vsyncpa [#allocation9], 0 }
   0xc   :  { %26 = vsyncpa [#allocation4], 0 }
   0xd   :  { %28 = vsyncpa [#allocation4 + $0x1], 0  ;;  %s3176_s29 = smov 0   ;;  %s3178_s30 = smov 0  }
   0xe   :  { %s3180_s15 = smov 0   ;;  %s3182_s16 = smov 0  }
   0xf LB: > { %3780 = sst [smem:[#allocation16_spill]] %s3067_s29  ;;  %s3197_s17 = sadd.s32 4294967295, %s3079_s16   ;;  %s3079_s16 = sphi %s3182_s16, %s3812_s16   ;;  %s3075_s15 = sphi %s3180_s15, %s3816_s15   ;;  %s3071_s30 = sphi %s3178_s30, %s3815_s30   ;;  %s3067_s29 = sphi %s3176_s29, %s3814_s29  }
  0x10   : > { %s2385_s18 = sadd.s32 4294967294, %s3079_s16   ;;  %s3201_s19 = sadd.s32 1, %s3079_s16  }
  0x11   : > { %3781 = sst [smem:[#allocation17_spill]] %s3201_s19  ;;  %s41_s20 = sadd.s32 1, %s3075_s15 }
  0x12   : > { %s38_s21 = ssub.s32 %s3079_s16, %s3201_s19  ;;  %p48_p0 = scmp.ne.s32.totalorder %s3075_s15, %s3071_s30 }
  0x13   : > { %p39_p1 = scmp.eq.s32.totalorder %s38_s21, 0  ;;  %p49_p2 = scmp.eq.s32.totalorder %s3079_s16, 0 }
  0x14   : > { %p54_p3 = scmp.ne.s32.totalorder %s3071_s30, %s3067_s29  ;;  %p3762_p4 = scmp.eq.s32.totalorder %s3197_s17, 0 }
  0x15   : > { %s3213_s22 = scalar_select %p39_p1, %s3075_s15, %s41_s20  }
  0x16   : > { %p3215_p5 = por %p49_p2, %p48_p0  ;;  %p3221_p6 = por %p3762_p4, %p54_p3 }
  0x17   : > { %3782 = sst [smem:[#allocation18_spill]] %s3213_s22  ;;  %p356_p7 = scmp.eq.s32.totalorder %s3197_s17, 1 }
  0x18   : > { %s3784_s24 = scalar_select %p3221_p6, 1, 0 }
  0x19   : > { %p362_p8 = scmp.eq.s32.totalorder %s2385_s18, 1  ;;  %p2386_p9 = scmp.ge.s32.totalorder %s3079_s16, 1 }
  0x1a   : > { %p369_p10 = scmp.lt.s32.totalorder %s3079_s16, 3  ;;  %p3228_p11 = por %p356_p7, %p48_p0 }
  0x1b   : > { %p3232_p12 = por %p362_p8, %p54_p3  ;;  %s3081_s28 = smov [#allocation7]  }
  0x1c   : > { %s3785_s25 = scalar_select %p3228_p11, 1, 0 }
  0x1d   : > { %s3787_s26 = scalar_select %p3232_p12, 1, 0 }
  0x1e   : > { %3786 = sst [smem:[#allocation19_spill]] %s3785_s25  ;;  %p3236_p13 = pnand %p2386_p9, %p369_p10 }
  0x1f   : > { %3788 = sst [smem:[#allocation20_spill]] %s3787_s26  ;;  %s397_s18 = sshll.u32 %s3081_s28, 4  ;;  %s398_s18 = int_to_ptr.vmem [resolvable:$true] %s397_s18 }
  0x20   : > { %s3789_s27 = scalar_select %p3236_p13, 1, 0 }
  0x21   : > { %p2732_p2 = pneg %p3236_p13  ;;  %p2752_p4 = scmp.lt.s32.totalorder %s3079_s16, 2 }
  0x22   : > { %p3790_p0 = scmp.eq.s32.totalorder %s3197_s17, 0  ;;  %s3082_s22 = smov [#allocation8]  }
  0x23   : > { %p3252_p3 = pnand %p2752_p4, %p3215_p5  ;;  %s407_s19 = sshll.u32 %s3082_s22, 4  ;;  %s3256_s19 = int_to_ptr.vmem [resolvable:$true] %s407_s19 }
  0x24   : > { %p3246_p7 = pnand %p2732_p2, %p3790_p0  ;;  %s3793_s7 = sld [smem:[#allocation22_spill]] }
  0x25   : > { %s3792_s21 = scalar_select %p3252_p3, 1, 0 }
  0x26   : > { %p2887_p9 = pneg %p3246_p7 }
  0x2a   : > { %s2885_s29 = scalar_lea.hbm %s3793_s7, 16 }
  0x2b   : > { %p2886_p8 = scmp.ne.s32.totalorder %s3793_s7, %s2885_s29  ;;  %p2892_p10 = scmp.lt.u32.totalorder %s2885_s29, %s3793_s7 }
  0x2d   : > { %p2888_p4 = pnand %p2887_p9, %p2886_p8 }
  0x2f   : > { %p2889_p5 = pneg %p2888_p4 }
  0x31   : > { %p2894_p2 = pnand %p2892_p10, %p2889_p5 }
  0x33   : > { %2897 = shalt.err (!%p2894_p2)
}
  0x34   : > { %s2898_s22 = scalar_lea.vmem %s398_s18, 16  ;;  %s2905_s14 = scalar_lea.vmem %s398_s18, 32 }
  0x35   : > { %p2899_p0 = scmp.ne.s32.totalorder %s398_s18, %s2898_s22  ;;  %p2906_p11 = scmp.lt.s32.totalorder %s398_s18, %s398_s18 }
  0x36   : > { %p2907_p6 = scmp.lt.s32.totalorder %s2905_s14, %s2898_s22 }
  0x37   : > { %p2901_p1 = pnand %p2899_p0, %p2887_p9 }
  0x38   : > { %p2908_p13 = por %p2907_p6, %p2906_p11 }
  0x39   : > { %p2902_p12 = pneg %p2901_p1 }
  0x3b   : > { %p2909_p3 = pnand %p2908_p13, %p2902_p12 }
  0x3d   : > { %2912 = shalt.err (!%p2909_p3)
}
  0x3e   : > { %2735 = dma.hbm_to_vmem [thread:$0]  (!%p3246_p7), %s3793_s7, 16, %s398_s18, [#allocation6]  }
  0x3f   : > { %s436_s29 = sand.u32 1, %s3075_s15   ;;  %s2913_s23 = scalar_lea.hbm %s3755_s8, 256 }
  0x40   : > { %p2914_p1 = scmp.ne.s32.totalorder %s3755_s8, %s2913_s23  ;;  %p2920_p12 = scmp.lt.u32.totalorder %s2913_s23, %s3755_s8 }
  0x42   : > { %p2916_p6 = pnand %p2914_p1, %p2887_p9 }
  0x44   : > { %p2917_p11 = pneg %p2916_p6 }
  0x46   : > { %p2922_p13 = pnand %p2920_p12, %p2917_p11 }
  0x48   : > { %2925 = shalt.err (!%p2922_p13)
}
  0x49   : > { %s2926_s18 = scalar_lea.vmem %s3256_s19, 256  ;;  %p2934_p5 = scmp.lt.s32.totalorder %s3256_s19, %s3256_s19 }
  0x4a   : > { %p2927_p3 = scmp.ne.s32.totalorder %s3256_s19, %s2926_s18  ;;  %p2935_p10 = scmp.lt.s32.totalorder %s2926_s18, %s2926_s18 }
  0x4c   : > { %p2929_p8 = pnand %p2927_p3, %p2887_p9  ;;  %p2936_p2 = por %p2935_p10, %p2934_p5 }
  0x4e   : > { %p2930_p4 = pneg %p2929_p8 }
  0x50   : > { %p2937_p0 = pnand %p2936_p2, %p2930_p4 }
  0x52   : > { %2940 = shalt.err (!%p2937_p0)
}
  0x53   : > { %s3083_s10 = smov 64   ;;  %s3084_s11 = smov 4  }
  0x54   : > { %2738 = dma.hbm_to_vmem [thread:$0]  (!%p3246_p7), %s3755_s8, 256, %s3256_s19, [#allocation9], %s3083_s10, %s3083_s10, %s3084_s11  }
  0x55   : > { %s3306_s26 = sshll.u32 %s436_s29, 5  ;;  %s2463_s28 = sshll.u32 %s3079_s16, 9 }
  0x56   : > { %s3794_s0 = sld [smem:[#allocation21_spill]]  ;;  %s440_s18 = scalar_lea.vmem [#allocation2], %s3306_s26 }
  0x57   : > { %s448_s20 = sshll.u32 %s440_s18, 4  ;;  %s3319_s25 = scalar_lea.sflag [#allocation3], %s436_s29  ;;  %s3317_s20 = int_to_ptr.vmem [resolvable:$true] %s448_s20 }
  0x58   : > { %p3795_p9 = scmp.ne.s32.totalorder %s3792_s21, 0 }
  0x5a   : > { %p2943_p1 = pneg %p3795_p9 }
  0x5c   : > { %s3314_s14 = scalar_lea.hbm %s3794_s0, %s2463_s28  ;;  %s2946_s13 = scalar_lea.hbm %s3794_s0, 1024 }
  0x5d   : > { %s2941_s19 = scalar_lea.hbm %s3314_s14, 512  ;;  %p2947_p12 = scmp.lt.u32.totalorder %s3314_s14, %s3794_s0 }
  0x5e   : > { %p2942_p7 = scmp.ne.s32.totalorder %s3314_s14, %s2941_s19  ;;  %p2948_p13 = scmp.lt.u32.totalorder %s2946_s13, %s2941_s19 }
  0x5f   : > { %p2950_p8 = scmp.lt.u32.totalorder %s2941_s19, %s3314_s14 }
  0x60   : > { %p2944_p6 = pnand %p2943_p1, %p2942_p7  ;;  %p2949_p3 = por %p2948_p13, %p2947_p12 }
  0x62   : > { %p2945_p11 = pneg %p2944_p6  ;;  %p2951_p4 = por %p2950_p8, %p2949_p3 }
  0x64   : > { %p2952_p5 = pnand %p2951_p4, %p2945_p11 }
  0x66   : > { %2955 = shalt.err (!%p2952_p5)
}
  0x67   : > { %s2956_s29 = scalar_lea.vmem %s3317_s20, 512  ;;  %s3085_s18 = smov [#allocation2]  }
  0x68   : > { %p2957_p10 = scmp.ne.s32.totalorder %s3317_s20, %s2956_s29  ;;  %s2961_s10 = sshll.u32 %s3085_s18, 4  ;;  %s2962_s10 = int_to_ptr.vmem [resolvable:$false] %s2961_s10 }
  0x69   : > { %s2963_s11 = scalar_lea.vmem %s2962_s10, 1024  ;;  %p2964_p7 = scmp.lt.s32.totalorder %s3317_s20, %s2962_s10 }
  0x6a   : > { %p2959_p2 = pnand %p2957_p10, %p2943_p1  ;;  %p2965_p6 = scmp.lt.s32.totalorder %s2963_s11, %s2956_s29 }
  0x6c   : > { %p2960_p0 = pneg %p2959_p2  ;;  %p2966_p12 = por %p2965_p6, %p2964_p7 }
  0x6e   : > { %p2967_p13 = pnand %p2966_p12, %p2960_p0 }
  0x70   : > { %2970 = shalt.err (!%p2967_p13)
}
  0x71   : > { %s3086_s19 = smov 128   ;;  %s3087_s13 = smov 8  }
  0x72   : > { %2742 = dma.hbm_to_vmem [thread:$0]  (!%p3795_p9), %s3314_s14, 512, %s3317_s20, %s3319_s25, %s3086_s19, %s3086_s19, %s3087_s13  }
  0x73   : > { %s3355_s29 = scalar_lea.hbm %s3748_s1, %s2463_s28  ;;  %s462_s18 = scalar_lea.vmem [#allocation5], %s3306_s26 }
  0x74   : > { %s470_s10 = sshll.u32 %s462_s18, 4  ;;  %s458_s11 = sand.u32 1, %s3079_s16   ;;  %s3358_s10 = int_to_ptr.vmem [resolvable:$true] %s470_s10 }
  0x75   : > { %s3361_s0 = scalar_lea.sflag [#allocation6], %s458_s11  ;;  %s2971_s7 = scalar_lea.hbm %s3355_s29, 512 }
  0x76   : > { %p2972_p11 = scmp.ne.s32.totalorder %s3355_s29, %s2971_s7  ;;  %s2976_s20 = scalar_lea.hbm %s3748_s1, 1024 }
  0x77   : > { %p2977_p4 = scmp.lt.u32.totalorder %s3355_s29, %s3748_s1  ;;  %p2978_p5 = scmp.lt.u32.totalorder %s2976_s20, %s2971_s7 }
  0x78   : > { %p2974_p3 = pnand %p2972_p11, %p2943_p1  ;;  %p2980_p2 = scmp.lt.u32.totalorder %s2971_s7, %s3355_s29 }
  0x79   : > { %p2979_p10 = por %p2978_p5, %p2977_p4 }
  0x7a   : > { %p2975_p8 = pneg %p2974_p3 }
  0x7b   : > { %p2981_p0 = por %p2980_p2, %p2979_p10 }
  0x7d   : > { %p2982_p7 = pnand %p2981_p0, %p2975_p8 }
  0x7f   : > { %2985 = shalt.err (!%p2982_p7)
}
  0x80   : > { %s2986_s26 = scalar_lea.vmem %s3358_s10, 512  ;;  %s3088_s22 = smov [#allocation5]  }
  0x81   : > { %p2987_p6 = scmp.ne.s32.totalorder %s3358_s10, %s2986_s26  ;;  %s2991_s18 = sshll.u32 %s3088_s22, 4  ;;  %s2992_s18 = int_to_ptr.vmem [resolvable:$false] %s2991_s18 }
  0x82   : > { %s2993_s11 = scalar_lea.vmem %s2992_s18, 1024  ;;  %p2994_p11 = scmp.lt.s32.totalorder %s3358_s10, %s2992_s18 }
  0x83   : > { %p2989_p12 = pnand %p2987_p6, %p2943_p1  ;;  %p2995_p3 = scmp.lt.s32.totalorder %s2993_s11, %s2986_s26 }
  0x85   : > { %p2990_p13 = pneg %p2989_p12  ;;  %p2996_p4 = por %p2995_p3, %p2994_p11 }
  0x87   : > { %p2997_p5 = pnand %p2996_p4, %p2990_p13 }
  0x89   : > { %3000 = shalt.err (!%p2997_p5)
}
  0x8a   : > { %2745 = dma.hbm_to_vmem [thread:$0]  (!%p3795_p9), %s3355_s29, 512, %s3358_s10, %s3361_s0, %s3086_s19, %s3086_s19, %s3087_s13  }
  0x8b   : > { %p3796_p1 = scmp.ne.s32.totalorder %s3789_s27, 0 }
  0x8c   : > { %s3393_s7 = sand.u32 (!%p3796_p1), 1, %s3071_s30   ;;  %p3797_p8 = scmp.ne.s32.totalorder (!%p3796_p1), %s3784_s24, 0 }
  0x8d   : > { %482 = sbr.rel (%p3796_p1) target bundleno = 3070 (0xbfe), region = 76  ;;  %s3396_s14 = sshll.u32 (!%p3796_p1), %s3393_s7, 5 }
  0x8e   : > { %s485_s21 = scalar_lea.sflag (!%p3796_p1), [#allocation3], %s3393_s7  ;;  %s3400_s28 = scalar_lea.vmem (!%p3796_p1), [#allocation2], %s3396_s14 }
  0x94   : > { %3046 = dma.done.wait (%p3797_p8), %s485_s21, 512  }
  0x95   : > { %3048 = vsyncadd (%p3797_p8), %s485_s21, 4294966784  ;;  %s493_s0 = sand.u32 1, %s3197_s17   ;;  %s497_s19 = scalar_lea.vmem [#allocation5], %s3396_s14 }
  0x96   : > { %s494_s27 = scalar_lea.sflag [#allocation6], %s493_s0 }
  0x97   : > { %3050 = dma.done.wait (%p3797_p8), %s494_s27, 512  }
  0x98   : > { %3052 = vsyncadd (%p3797_p8), %s494_s27, 4294966784  ;;  %p3798_p9 = scmp.eq.s32.totalorder %s3197_s17, 0 }
  0x9a   : > { %3054 = dma.done.wait (%p3798_p9), [#allocation6], 16   ;;  %p3799_p10 = pmov %p3798_p9 }
  0x9b   : > { %p3800_p2 = pmov %p3798_p9 }
  0x9c   : > { %3056 = vsyncadd (%p3799_p10), [#allocation6], 4294967280 }
  0x9d   : > { %3058 = dma.done.wait (%p3800_p2), [#allocation9], 256   ;;  %p3801_p0 = pmov %p3800_p2 }
  0x9e   : > { %v2805_v0 = vld [vmem:[%s3749_s2] sm:$0xff]   ;;  %v2806_v1 = vld [vmem:[%s3749_s2 + $0x8] sm:$0xff]   ;;  %vm594_vm0 = vcmask 261120   ;;  %v561_v4 = vld [vmem:[%s3400_s28 + $0x10] sm:$0xff]  ;;  %v3089_v16 = vmov 0.0   ;;  %vm3090_vm1 = vmmov 0  }
  0x9f   : > { %3060 = vsyncadd (%p3801_p0), [#allocation9], 4294967040  ;;  %2534 = vmatprep.subr.bf16.mxu1 %v2805_v0  ;;  %v559_v2 = vld [vmem:[%s3400_s28] sm:$0xff]  ;;  %v560_v3 = vld [vmem:[%s3400_s28 + $0x8] sm:$0xff]  ;;  %2550 = vmatprep.subr.bf16.mxu0 %v3089_v16  ;;  %vm732_vm2 = vcmask 64512   ;;  %s3091_s0 = smov 96  }
  0xa0   : > { %2535 = vmatpush3.bf16.msra.mxu1 %v2805_v0  ;;  %v3429_v5 = vpack.c.bf16 %v560_v3, %v559_v2  ;;  %v562_v6 = vld [vmem:[%s3400_s28 + $0x18] sm:$0xff]  ;;  %v2807_v7 = vld [vmem:[%s3751_s4] sm:$0xff]   ;;  %v566_v9 = vld [vmem:[%s497_s19 + $0x8] sm:$0xff]  ;;  %2552 = vmatprep.mubr.msk.bf16.mxu0 %vm3090_vm1, %v3089_v16  ;;  %s3092_s27 = smov 120   ;;  %vm831_vm3 = vcmask 130048   ;;  %s3094_s13 = smov 112  }
  0xa1   : > { %2536 = vmatprep.subr.bf16.mxu1 %v2806_v1  ;;  %v565_v8 = vld [vmem:[%s497_s19] sm:$0xff]  ;;  %v3437_v10 = vpack.c.bf16 %v562_v6, %v561_v4  ;;  %v2808_v11 = vld [vmem:[%s3751_s4 + $0x8] sm:$0xff]   ;;  %v567_v13 = vld [vmem:[%s497_s19 + $0x10] sm:$0xff]  ;;  %s3095_s29 = smov 80   ;;  %vm1234_vm4 = vcmask 1043456   ;;  %s3096_s23 = smov 104  }
  0xa2   : > { %2538 = vmatprep.mubr.msk.bf16.mxu1 %vm594_vm0, %v3429_v5  ;;  %v569_v12 = vpack.c.bf16 %v566_v9, %v565_v8  ;;  %v568_v14 = vld [vmem:[%s497_s19 + $0x18] sm:$0xff]  ;;  %v2404_v18 = vld [vmem:[%s3750_s3] ss:$0 sm:$0xff]  ;;  %s3093_s19 = smov 88   ;;  %s3097_s18 = smov 72   ;;  %vm2191_vm9 = vcmask 523264  }
  0xa3   : > { %v570_v15 = vpack.c.bf16 %v568_v14, %v567_v13  ;;  %v2409_v29 = vld [vmem:[%s3752_s5] ss:$0 sm:$0xff]  ;;  %s3802_s21 = sld [smem:[#allocation23_spill]]  ;;  %s3804_s24 = sld [smem:[#allocation25_spill]] }
  0xa4   : > { %2537 = vmatpush3.bf16.msra.mxu1 %v2806_v1  ;;  %s554_s10 = scalar_lea.vmem [#allocation10], %s3396_s14  ;;  %s2467_s25 = sshll.u32 %s3197_s17, 9 }
  0xa5   : > { %2542 = vmatprep.subr.bf16.mxu1 %v2807_v7  ;;  %s2270_s20 = sshll.u32 %s554_s10, 4  ;;  %s3806_s17 = sld [smem:[#allocation26_spill]]  ;;  %s3691_s20 = int_to_ptr.vmem [resolvable:$true] %s2270_s20 }
  0xa6   : > { %s3001_s11 = scalar_lea.vmem %s3691_s20, 512 }
  0xa7   : > { %2539 = vmatmul.mubr.msk.bf16.vlgmr.msra.gmra.mrb[0].mxu1 %vm594_vm0, %v3437_v10  ;;  %p3002_p7 = scmp.ne.s32.totalorder %s3691_s20, %s3001_s11 }
  0xa8   : > { %2543 = vmatpush3.bf16.msra.mxu1 %v2807_v7  ;;  %2546 = vmatprep.mubr.msk.bf16.mxu1 %vm594_vm0, %v569_v12 }
  0xa9   : > { %2544 = vmatprep.subr.bf16.mxu1 %v2808_v11 }
  0xab   : > { %s3699_s22 = scalar_lea.hbm %s3806_s17, %s2467_s25 }
  0xac   : > { %2545 = vmatpush3.bf16.msra.mxu1 %v2808_v11 }
  0xad   : > { %2556 = vmatprep.subr.bf16.mxu1 %v3089_v16 }
  0xaf   : > { %2547 = vmatmul.mubr.msk.bf16.vlgmr.msra.gmra.mrb[4].mxu1 %vm594_vm0, %v570_v15 }
  0xb0   : > { %2558 = vmatprep.mubr.msk.bf16.mxu1 %vm3090_vm1, %v3089_v16 }
 0x17a   : > { %v2540_v17 = vpop.f32.mrb[0].mxu1 }
 0x17b   : > { %v635_v19 = vpop.f32.mrb[1].mxu1  ;;  %v644_v21 = vadd.f32 %v2540_v17, %v2404_v18 }
 0x17c   : > { %v2541_v20 = vpop.f32.mrb[2].mxu1  ;;  %v636_v24 = vadd.f32 %v2404_v18, %v635_v19 }
 0x17d   : > { %v647_v22 = vadd.f32 %v2541_v20, %v2404_v18  ;;  %v638_v23 = vpop.f32.mrb[3].mxu1 }
 0x17e   : > { %v639_v25 = vadd.f32 %v2404_v18, %v638_v23 }
 0x17f   : > { %v3455_v26 = vpack.c.bf16 %v647_v22, %v644_v21 }
 0x180   : > { %v3457_v27 = vpack.c.bf16 %v639_v25, %v636_v24 }
 0x182   : > { %v2548_v28 = vpop.f32.mrb[4].mxu1 }
 0x183   : > { %v713_v30 = vpop.f32.mrb[5].mxu1  ;;  %v722_v32 = vadd.f32 %v2548_v28, %v2409_v29 }
 0x184   : > { %v2549_v31 = vpop.f32.mrb[6].mxu1  ;;  %v714_v35 = vadd.f32 %v2409_v29, %v713_v30 }
 0x185   : > { %v725_v33 = vadd.f32 %v2549_v31, %v2409_v29  ;;  %v716_v34 = vpop.f32.mrb[7].mxu1 }
 0x186   : > { %v717_v36 = vadd.f32 %v2409_v29, %v716_v34 }
 0x187   : > { %v3462_v37 = vpack.c.bf16 %v725_v33, %v722_v32 }
 0x188   : > { %v3464_v38 = vpack.c.bf16 %v717_v36, %v714_v35 }
 0x189   : > { %919 = vrot.lane.b32.xlu1 %v3462_v37, %s3091_s0  ;;  %v784_v39 = vsel %vm732_vm2, %v3462_v37, 0 }
 0x18a   : > { %2557 = vmatpush3.bf16.xpose.msra.mxu1 %v784_v39  ;;  %v737_v40 = vsel %vm732_vm2, %v3464_v38, 0 }
 0x18b   : > { %2551 = vmatpush3.bf16.xpose.msra.mxu0 %v737_v40  ;;  %2568 = vmatprep.subr.bf16.mxu1 %v3089_v16 }
 0x18c   : > { %2562 = vmatprep.subr.bf16.mxu0 %v3089_v16 }
 0x18d   : > { %1032 = vrot.lane.b32.xlu1 %v3462_v37, %s3092_s27 }
 0x191   : > { %2559 = vmatmul.mubr.msk.bf16.vlgmr.msra.gmra.mrb[8].mxu1 %vm732_vm2, %v3455_v26 }
 0x192   : > { %2553 = vmatmul.mubr.msk.bf16.vlgmr.msra.gmra.mrb[0].mxu0 %vm732_vm2, %v3457_v27  ;;  %2570 = vmatprep.mubr.msk.bf16.mxu1 %vm3090_vm1, %v3089_v16 }
 0x193   : > { %2564 = vmatprep.mubr.msk.bf16.mxu0 %vm3090_vm1, %v3089_v16 }
 0x1fb   : > { %v920_v41 = vpop.permute.xlu1 %919 }
 0x1fc   : > { %2569 = vmatpush3.bf16.msra.mxu1 %v920_v41 }
 0x1fd   : > { %2580 = vmatprep.subr.bf16.mxu1 %v3089_v16 }
 0x1ff   : > { %v1033_v58 = vpop.permute.xlu1 %1032 }
 0x200   : > { %v1038_v7 = vsel %vm732_vm2, %v1033_v58, 0 }
 0x264   : > { %v820_v42 = vpop.f32.mrb[8].mxu1 }
 0x265   : > { %v829_v43 = vmul.f32 0.35355338, %v820_v42  ;;  %v773_v44 = vpop.f32.mrb[0].mxu0  ;;  %v2560_v45 = vpop.f32.mrb[9].mxu1 }
 0x266   : > { %v827_v46 = vmul.f32 0.35355338, %v773_v44  ;;  %v2554_v47 = vpop.f32.mrb[1].mxu0  ;;  %v823_v48 = vpop.f32.mrb[10].mxu1 }
 0x267   : > { %v830_v49 = vmul.f32 0.35355338, %v823_v48  ;;  %v776_v50 = vpop.f32.mrb[2].mxu0  ;;  %v2561_v51 = vpop.f32.mrb[11].mxu1  ;;  %v838_v52 = vsel %vm831_vm3, %v829_v43, -inf }
 0x268   : > { %839 = vmax.xlane.f32.xlu0 %v838_v52  ;;  %v2555_v53 = vpop.f32.mrb[3].mxu0  ;;  %v832_v54 = vsel %vm831_vm3, %v827_v46, -inf  ;;  %v828_v56 = vmul.f32 0.35355338, %v776_v50 }
 0x269   : > { %833 = vmax.xlane.f32.xlu1 %v832_v54  ;;  %v841_v55 = vsel %vm831_vm3, %v830_v49, -inf }
 0x26a   : > { %v835_v57 = vsel %vm831_vm3, %v828_v56, -inf }
 0x26c   : > { %842 = vmax.xlane.f32.xlu0 %v841_v55 }
 0x27a   : > { %871 = vrot.lane.b32.xlu1 %v3464_v38, %s3091_s0 }
 0x27e   : > { %978 = vrot.lane.b32.xlu1 %v3457_v27, %s3092_s27 }
 0x282   : > { %1030 = vrot.lane.b32.xlu0 %v3455_v26, %s3092_s27  ;;  %1170 = vrot.lane.b32.xlu1 %v3462_v37, %s3093_s19 }
 0x2a1   : > { %836 = vmax.xlane.f32.xlu0 %v835_v57 }
 0x2b7   : > { %980 = vrot.lane.b32.xlu0 %v3464_v38, %s3092_s27 }
 0x2f5   : > { %v840_v59 = vpop.xlane.xlu0 %839 }
 0x2f6   : > { %v846_v60 = vsub.f32 %v829_v43, %v840_v59  ;;  %v834_v61 = vpop.xlane.xlu1 %833 }
 0x2f7   : > { %v844_v12 = vsub.f32 %v827_v46, %v834_v61 }
 0x2f8   : > { %v852_v62 = vmul.f32 1.442695, %v846_v60 }
 0x2f9   : > { %v843_v63 = vpop.xlane.xlu0 %842  ;;  %v848_v13 = vmul.f32 1.442695, %v844_v12 }
 0x2fa   : > { %v847_v0 = vsub.f32 %v830_v49, %v843_v63  ;;  %v872_v1 = vpop.permute.xlu1 %871  ;;  %2817 = vpow2.f32 %v852_v62 }
 0x2fb   : > { %2563 = vmatpush3.bf16.msra.mxu0 %v872_v1 }
 0x2fc   : > { %v854_v2 = vmul.f32 1.442695, %v847_v0  ;;  %2574 = vmatprep.subr.bf16.mxu0 %v3089_v16 }
 0x2fd   : > { %v1031_v9 = vpop.permute.xlu0 %1030 }
 0x2fe   : > { %2819 = vpow2.f32 %v854_v2  ;;  %v979_v8 = vpop.permute.xlu1 %978 }
 0x2ff   : > { %2821 = vpow2.f32 %v848_v13 }
 0x302   : > { %v1171_v11 = vpop.permute.xlu1 %1170 }
 0x304   : > { %v3500_v3 = vpop.eup %2817 }
 0x305   : > { %v862_v52 = vsel %vm831_vm3, %v3500_v3, 0.0 }
 0x308   : > { %v3502_v4 = vpop.eup %2819 }
 0x309   : > { %v869_v6 = vpack.c.bf16 %v3502_v4, %v3500_v3  ;;  %v2822_v18 = vpop.eup %2821  ;;  %v865_v53 = vsel %vm831_vm3, %v3502_v4, 0.0 }
 0x30a   : > { %v856_v50 = vsel %vm831_vm3, %v2822_v18, 0.0 }
 0x30b   : > { %2571 = vmatmul.mubr.msk.bf16.vlgmr.msra.gmra.mrb[12].mxu1 %vm831_vm3, %v869_v6 }
 0x30c   : > { %2581 = vmatpush3.bf16.xpose.msra.mxu1 %v1038_v7  ;;  %2582 = vmatprep.mubr.msk.bf16.mxu1 %vm3090_vm1, %v3089_v16 }
 0x30d   : > { %2592 = vmatprep.subr.bf16.mxu1 %v3089_v16 }
 0x313   : > { %2583 = vmatmul.mubr.msk.bf16.vlgmr.msra.gmra.mrb[16].mxu1 %vm732_vm2, %v1031_v9 }
 0x314   : > { %2593 = vmatpush3.bf16.msra.mxu1 %v1171_v11  ;;  %2594 = vmatprep.mubr.msk.bf16.mxu1 %vm3090_vm1, %v3089_v16 }
 0x315   : > { %2610 = vmatprep.subr.bf16.mxu1 %v3089_v16 }
 0x32e   : > { %v837_v14 = vpop.xlane.xlu0 %836 }
 0x32f   : > { %v845_v15 = vsub.f32 %v828_v56, %v837_v14 }
 0x331   : > { %v850_v17 = vmul.f32 1.442695, %v845_v15 }
 0x332   : > { %v981_v20 = vpop.permute.xlu0 %980 }
 0x333   : > { %2823 = vpow2.f32 %v850_v17  ;;  %v986_v22 = vsel %vm732_vm2, %v981_v20, 0 }
 0x33d   : > { %v2824_v19 = vpop.eup %2823 }
 0x33e   : > { %v868_v21 = vpack.c.bf16 %v2824_v19, %v2822_v18  ;;  %v859_v54 = vsel %vm831_vm3, %v2824_v19, 0.0 }
 0x340   : > { %2565 = vmatmul.mubr.msk.bf16.vlgmr.msra.gmra.mrb[4].mxu0 %vm831_vm3, %v868_v21 }
 0x341   : > { %2575 = vmatpush3.bf16.xpose.msra.mxu0 %v986_v22  ;;  %2576 = vmatprep.mubr.msk.bf16.mxu0 %vm3090_vm1, %v3089_v16 }
 0x342   : > { %2586 = vmatprep.subr.bf16.mxu0 %v3089_v16 }
 0x348   : > { %2577 = vmatmul.mubr.msk.bf16.vlgmr.msra.gmra.mrb[8].mxu0 %vm732_vm2, %v979_v8 }
 0x349   : > { %2588 = vmatprep.mubr.msk.bf16.mxu0 %vm3090_vm1, %v3089_v16 }
 0x3de   : > { %v3523_v23 = vpop.f32.mrb[12].mxu1 }
 0x3df   : > { %v2572_v24 = vpop.f32.mrb[13].mxu1 }
 0x3e0   : > { %v3525_v25 = vpop.f32.mrb[14].mxu1 }
 0x3e1   : > { %v2573_v28 = vpop.f32.mrb[15].mxu1 }
 0x3e6   : > { %v1074_v29 = vpop.f32.mrb[16].mxu1 }
 0x3e7   : > { %v1083_v30 = vmul.f32 0.35355338, %v1074_v29  ;;  %v2584_v31 = vpop.f32.mrb[17].mxu1 }
 0x3e8   : > { %v1077_v32 = vpop.f32.mrb[18].mxu1 }
 0x3e9   : > { %v1084_v33 = vmul.f32 0.35355338, %v1077_v32  ;;  %v2585_v34 = vpop.f32.mrb[19].mxu1  ;;  %v1091_v35 = vsel %vm831_vm3, %v1083_v30, -inf }
 0x3ea   : > { %1092 = vmax.xlane.f32.xlu1 %v1091_v35 }
 0x3eb   : > { %v1094_v36 = vsel %vm831_vm3, %v1084_v33, -inf }
 0x3ec   : > { %1095 = vmax.xlane.f32.xlu0 %v1094_v36 }
 0x3fb   : > { %1345 = vrot.lane.b32.xlu1 %v3457_v27, %s3094_s13 }
 0x3ff   : > { %1398 = vrot.lane.b32.xlu1 %v3462_v37, %s3094_s13 }
 0x402   : > { %1347 = vrot.lane.b32.xlu0 %v3464_v38, %s3094_s13 }
 0x403   : > { %1396 = vrot.lane.b32.xlu1 %v3455_v26, %s3094_s13 }
 0x413   : > { %v3533_v39 = vpop.f32.mrb[4].mxu0 }
 0x414   : > { %v2566_v40 = vpop.f32.mrb[5].mxu0 }
 0x415   : > { %v3535_v41 = vpop.f32.mrb[6].mxu0 }
 0x416   : > { %v2567_v42 = vpop.f32.mrb[7].mxu0 }
 0x41b   : > { %v1022_v43 = vpop.f32.mrb[8].mxu0 }
 0x41c   : > { %v2578_v44 = vpop.f32.mrb[9].mxu0  ;;  %v1081_v49 = vmul.f32 0.35355338, %v1022_v43 }
 0x41d   : > { %v1025_v45 = vpop.f32.mrb[10].mxu0  ;;  %v1227_v44 = vld [vmem:[%s3753_s6 + $0x4] sm:$0xf] }
 0x41e   : > { %v1082_v46 = vmul.f32 0.35355338, %v1025_v45  ;;  %v2579_v47 = vpop.f32.mrb[11].mxu0  ;;  %v1085_v51 = vsel %vm831_vm3, %v1081_v49, -inf  ;;  %v1236_v45 = vsel %vm1234_vm4, %v1227_v44, 0 }
 0x420   : > { %v1088_v48 = vsel %vm831_vm3, %v1082_v46, -inf }
 0x421   : > { %1089 = vmax.xlane.f32.xlu0 %v1088_v48 }
 0x425   : > { %857 = vadd.xlane.f32.xlu0 %v856_v50 }
 0x427   : > { %1086 = vmax.xlane.f32.xlu1 %v1085_v51 }
 0x429   : > { %863 = vadd.xlane.f32.xlu0 %v862_v52 }
 0x42d   : > { %866 = vadd.xlane.f32.xlu0 %v865_v53 }
 0x438   : > { %1123 = vrot.lane.b32.xlu1 %v3464_v38, %s3093_s19  ;;  %s3803_s19 = sld [smem:[#allocation24_spill]] }
 0x45c   : > { %860 = vadd.xlane.f32.xlu1 %v859_v54 }
 0x46d   : > { %1536 = vrot.lane.b32.xlu1 %v3462_v37, %s3095_s29 }
 0x477   : > { %v1093_v55 = vpop.xlane.xlu1 %1092 }
 0x478   : > { %v1099_v56 = vsub.f32 %v1083_v30, %v1093_v55 }
 0x479   : > { %v1096_v57 = vpop.xlane.xlu0 %1095 }
 0x47a   : > { %v1105_v58 = vmul.f32 1.442695, %v1099_v56  ;;  %v1100_v59 = vsub.f32 %v1084_v33, %v1096_v57 }
 0x47b   : > { %v1346_v2 = vpop.permute.xlu1 %1345 }
 0x47c   : > { %2825 = vpow2.f32 %v1105_v58  ;;  %v1107_v60 = vmul.f32 1.442695, %v1100_v59 }
 0x47d   : > { %v1348_v0 = vpop.permute.xlu0 %1347 }
 0x47e   : > { %2827 = vpow2.f32 %v1107_v60  ;;  %v1353_v3 = vsel %vm732_vm2, %v1348_v0, 0 }
 0x47f   : > { %v1399_v4 = vpop.permute.xlu1 %1398 }
 0x480   : > { %v1404_v6 = vsel %vm732_vm2, %v1399_v4, 0 }
 0x483   : > { %v1397_v7 = vpop.permute.xlu1 %1396 }
 0x486   : > { %v2826_v61 = vpop.eup %2825 }
 0x487   : > { %v1115_v62 = vsel %vm831_vm3, %v2826_v61, 0.0 }
 0x488   : > { %v2828_v63 = vpop.eup %2827  ;;  %1116 = vadd.xlane.f32.xlu0 %v1115_v62 }
 0x489   : > { %v1122_v1 = vpack.c.bf16 %v2828_v63, %v2826_v61  ;;  %v1118_v32 = vsel %vm831_vm3, %v2828_v63, 0.0 }
 0x48b   : > { %2595 = vmatmul.mubr.msk.bf16.vlgmr.msra.gmra.mrb[20].mxu1 %vm831_vm3, %v1122_v1 }
 0x48c   : > { %2611 = vmatpush3.bf16.xpose.msra.mxu1 %v1353_v3  ;;  %2612 = vmatprep.mubr.msk.bf16.mxu1 %vm3090_vm1, %v3089_v16 }
 0x48d   : > { %2616 = vmatprep.subr.bf16.mxu1 %v3089_v16 }
 0x493   : > { %2613 = vmatmul.mubr.msk.bf16.vlgmr.msra.gmra.mrb[24].mxu1 %vm732_vm2, %v1346_v2 }
 0x494   : > { %2617 = vmatpush3.bf16.xpose.msra.mxu1 %v1404_v6  ;;  %2618 = vmatprep.mubr.msk.bf16.mxu1 %vm3090_vm1, %v3089_v16 }
 0x495   : > { %2628 = vmatprep.subr.bf16.mxu1 %v3089_v16 }
 0x49b   : > { %2619 = vmatmul.mubr.msk.bf16.vlgmr.msra.gmra.mrb[28].mxu1 %vm732_vm2, %v1397_v7 }
 0x49c   : > { %2630 = vmatprep.mubr.msk.bf16.mxu1 %vm3090_vm1, %v3089_v16 }
 0x4ae   : > { %v1090_v8 = vpop.xlane.xlu0 %1089 }
 0x4af   : > { %v1098_v9 = vsub.f32 %v1082_v46, %v1090_v8  ;;  %v976_v46 = vld [vmem:[%s3753_s6] sm:$0xf] }
 0x4b1   : > { %v1103_v12 = vmul.f32 1.442695, %v1098_v9 }
 0x4b2   : > { %v858_v11 = vpop.xlane.xlu0 %857 }
 0x4b3   : > { %2829 = vpow2.f32 %v1103_v12 }
 0x4b4   : > { %v1087_v13 = vpop.xlane.xlu1 %1086 }
 0x4b5   : > { %v1097_v14 = vsub.f32 %v1081_v49, %v1087_v13 }
 0x4b6   : > { %v864_v15 = vpop.xlane.xlu0 %863 }
 0x4b7   : > { %v1101_v17 = vmul.f32 1.442695, %v1097_v14  ;;  %2831 = vrcp.f32 %v864_v15 }
 0x4b8   : > { %v1124_v18 = vpop.permute.xlu1 %1123 }
 0x4b9   : > { %2833 = vpow2.f32 %v1101_v17  ;;  %2587 = vmatpush3.bf16.msra.mxu0 %v1124_v18 }
 0x4ba   : > { %v867_v19 = vpop.xlane.xlu0 %866  ;;  %2714 = vmatprep.subr.msk.bf16.mxu0 %vm1234_vm4, %v1227_v44 }
 0x4bb   : > { %2835 = vrcp.f32 %v867_v19 }
 0x4bc   : > { %2837 = vrcp.f32 %v858_v11 }
 0x4bd   : > { %v2830_v20 = vpop.eup %2829 }
 0x4be   : > { %v1112_v34 = vsel %vm831_vm3, %v2830_v20, 0.0 }
 0x4c1   : > { %v2832_v21 = vpop.eup %2831 }
 0x4c2   : > { %v3565_v30 = vmul.f32 %v2832_v21, %v3523_v23 }
 0x4c3   : > { %v2834_v22 = vpop.eup %2833 }
 0x4c4   : > { %v1109_v24 = vsel %vm831_vm3, %v2834_v22, 0.0  ;;  %v1121_v28 = vpack.c.bf16 %v2830_v20, %v2834_v22  ;;  %v1294_v22 = vsel %vm1234_vm4, %v976_v46, 0 }
 0x4c5   : > { %v2836_v29 = vpop.eup %2835  ;;  %1110 = vadd.xlane.f32.xlu0 %v1109_v24 }
 0x4c6   : > { %v3568_v31 = vmul.f32 %v2836_v29, %v3525_v25  ;;  %2589 = vmatmul.mubr.msk.bf16.vlgmr.msra.gmra.mrb[12].mxu0 %vm831_vm3, %v1121_v28  ;;  %v2838_v23 = vpop.eup %2837 }
 0x4c7   : > { %v970_v40 = vmul.f32 %v2838_v23, %v3533_v39  ;;  %2599 = vmatpush3.bf16.msra.mxu0 %v1236_v45 }
 0x4c8   : > { %v975_v33 = vpack.c.bf16 %v3568_v31, %v3565_v30  ;;  %2715 = vmatprep.subr.msk.bf16.mxu0 %vm1234_vm4, %v976_v46 }
 0x4c9   : > { %1119 = vadd.xlane.f32.xlu0 %v1118_v32 }
 0x4cd   : > { %1113 = vadd.xlane.f32.xlu0 %v1112_v34 }
 0x4e9   : > { %v861_v35 = vpop.xlane.xlu1 %860 }
 0x4ea   : > { %2839 = vrcp.f32 %v861_v35 }
 0x4ed   : > { %v1537_v36 = vpop.permute.xlu1 %1536 }
 0x4ee   : > { %2629 = vmatpush3.bf16.msra.mxu1 %v1537_v36 }
 0x4ef   : > { %2640 = vmatprep.subr.bf16.mxu1 %v3089_v16 }
 0x4f4   : > { %v2840_v25 = vpop.eup %2839 }
 0x4f5   : > { %v971_v42 = vmul.f32 %v2840_v25, %v3535_v41 }
 0x4f7   : > { %v974_v43 = vpack.c.bf16 %v971_v42, %v970_v40 }
 0x515   : > { %v1117_v39 = vpop.xlane.xlu0 %1116 }
 0x516   : > { %2841 = vrcp.f32 %v1117_v39 }
 0x520   : > { %v2842_v50 = vpop.eup %2841 }
 0x552   : > { %v1111_v47 = vpop.xlane.xlu0 %1110 }
 0x556   : > { %v1120_v41 = vpop.xlane.xlu0 %1119 }
 0x557   : > { %2843 = vrcp.f32 %v1120_v41 }
 0x558   : > { %2845 = vrcp.f32 %v1111_v47 }
 0x55a   : > { %v1114_v11 = vpop.xlane.xlu0 %1113 }
 0x55b   : > { %2847 = vrcp.f32 %v1114_v11 }
 0x55e   : > { %v1210_v48 = vpop.f32.mrb[20].mxu1 }
 0x55f   : > { %v2596_v49 = vpop.f32.mrb[21].mxu1  ;;  %v1223_v54 = vmul.f32 %v2842_v50, %v1210_v48  ;;  %v1593_v50 = vld [vmem:[%s3753_s6 + $0x8] sm:$0xf] }
 0x560   : > { %v1213_v51 = vpop.f32.mrb[22].mxu1 }
 0x561   : > { %v2844_v52 = vpop.eup %2843  ;;  %v2597_v53 = vpop.f32.mrb[23].mxu1 }
 0x562   : > { %v1224_v55 = vmul.f32 %v2844_v52, %v1213_v51  ;;  %v2846_v13 = vpop.eup %2845  ;;  %v1601_v51 = vsel %vm1234_vm4, %v1593_v50, 0 }
 0x564   : > { %v1226_v56 = vpack.c.bf16 %v1224_v55, %v1223_v54 }
 0x565   : > { %v2848_v15 = vpop.eup %2847 }
 0x566   : > { %v1389_v57 = vpop.f32.mrb[24].mxu1 }
 0x567   : > { %v1447_v58 = vmul.f32 0.35355338, %v1389_v57  ;;  %v2614_v59 = vpop.f32.mrb[25].mxu1 }
 0x568   : > { %v1392_v60 = vpop.f32.mrb[26].mxu1 }
 0x569   : > { %v1448_v61 = vmul.f32 0.35355338, %v1392_v60  ;;  %v2615_v62 = vpop.f32.mrb[27].mxu1  ;;  %v1451_v63 = vsel %vm831_vm3, %v1447_v58, -inf }
 0x56a   : > { %1452 = vmax.xlane.f32.xlu0 %v1451_v63 }
 0x56b   : > { %v1454_v0 = vsel %vm831_vm3, %v1448_v61, -inf }
 0x56e   : > { %v1440_v1 = vpop.f32.mrb[28].mxu1  ;;  %1455 = vmax.xlane.f32.xlu0 %v1454_v0 }
 0x56f   : > { %v1449_v2 = vmul.f32 0.35355338, %v1440_v1  ;;  %v2620_v3 = vpop.f32.mrb[29].mxu1 }
 0x570   : > { %v1443_v4 = vpop.f32.mrb[30].mxu1 }
 0x571   : > { %v1450_v6 = vmul.f32 0.35355338, %v1443_v4  ;;  %v2621_v7 = vpop.f32.mrb[31].mxu1  ;;  %v1457_v8 = vsel %vm831_vm3, %v1449_v2, -inf }
 0x572   : > { %1458 = vmax.xlane.f32.xlu0 %v1457_v8 }
 0x573   : > { %v1460_v9 = vsel %vm831_vm3, %v1450_v6, -inf }
 0x576   : > { %1461 = vmax.xlane.f32.xlu0 %v1460_v9 }
 0x58c   : > { %1489 = vrot.lane.b32.xlu0 %v3464_v38, %s3095_s29 }
 0x599   : > { %v1163_v12 = vpop.f32.mrb[12].mxu0 }
 0x59a   : > { %v2590_v14 = vpop.f32.mrb[13].mxu0  ;;  %v1221_v18 = vmul.f32 %v2846_v13, %v1163_v12 }
 0x59b   : > { %v1166_v17 = vpop.f32.mrb[14].mxu0 }
 0x59c   : > { %v1222_v19 = vmul.f32 %v2848_v15, %v1166_v17  ;;  %v2591_v20 = vpop.f32.mrb[15].mxu0 }
 0x59e   : > { %v1225_v21 = vpack.c.bf16 %v1222_v19, %v1221_v18 }
 0x5a0   : > { %2600 = vmatprep.mubr.msk.bf16.mxu0 %vm732_vm2, %v1225_v21 }
 0x5a1   : > { %2601 = vmatmul.mubr.msk.bf16.vlgmr.msra.gmra.mrb[16].mxu0 %vm732_vm2, %v1226_v56 }
 0x5a2   : > { %2606 = vmatprep.mubr.msk.bf16.mxu0 %vm732_vm2, %v974_v43  ;;  %2605 = vmatpush3.bf16.msra.mxu0 %v1294_v22 }
 0x5a3   : > { %2622 = vmatprep.subr.bf16.mxu0 %v3089_v16 }
 0x5ad   : > { %2607 = vmatmul.mubr.msk.bf16.vlgmr.msra.gmra.mrb[16].mxu0 %vm732_vm2, %v975_v33 }
 0x5ae   : > { %2624 = vmatprep.mubr.msk.bf16.mxu0 %vm3090_vm1, %v3089_v16 }
 0x5f7   : > { %v1453_v24 = vpop.xlane.xlu0 %1452 }
 0x5f8   : > { %v1463_v28 = vsub.f32 %v1447_v58, %v1453_v24 }
 0x5fa   : > { %v1467_v29 = vmul.f32 1.442695, %v1463_v28 }
 0x5fb   : > { %v1456_v32 = vpop.xlane.xlu0 %1455 }
 0x5fc   : > { %2849 = vpow2.f32 %v1467_v29  ;;  %v1464_v34 = vsub.f32 %v1448_v61, %v1456_v32 }
 0x5fe   : > { %v1469_v35 = vmul.f32 1.442695, %v1464_v34 }
 0x5ff   : > { %v1459_v36 = vpop.xlane.xlu0 %1458 }
 0x600   : > { %2851 = vpow2.f32 %v1469_v35  ;;  %v1465_v23 = vsub.f32 %v1449_v2, %v1459_v36 }
 0x602   : > { %v1471_v25 = vmul.f32 1.442695, %v1465_v23 }
 0x603   : > { %v1462_v40 = vpop.xlane.xlu0 %1461 }
 0x604   : > { %2853 = vpow2.f32 %v1471_v25  ;;  %v1466_v42 = vsub.f32 %v1450_v6, %v1462_v40 }
 0x606   : > { %v2850_v30 = vpop.eup %2849  ;;  %v1473_v31 = vmul.f32 1.442695, %v1466_v42 }
 0x607   : > { %v1490_v33 = vpop.permute.xlu0 %1489  ;;  %v1475_v43 = vsel %vm831_vm3, %v2850_v30, 0.0 }
 0x608   : > { %2855 = vpow2.f32 %v1473_v31  ;;  %1476 = vadd.xlane.f32.xlu0 %v1475_v43  ;;  %2623 = vmatpush3.bf16.msra.mxu0 %v1490_v33 }
 0x609   : > { %2716 = vmatprep.subr.msk.bf16.mxu0 %vm1234_vm4, %v1593_v50 }
 0x60a   : > { %v2852_v44 = vpop.eup %2851 }
 0x60b   : > { %v1478_v45 = vsel %vm831_vm3, %v2852_v44, 0.0  ;;  %v1487_v46 = vpack.c.bf16 %v2852_v44, %v2850_v30 }
 0x60c   : > { %1479 = vadd.xlane.f32.xlu1 %v1478_v45 }
 0x60d   : > { %2625 = vmatmul.mubr.msk.bf16.vlgmr.msra.gmra.mrb[20].mxu0 %vm831_vm3, %v1487_v46 }
 0x60e   : > { %v2854_v39 = vpop.eup %2853  ;;  %2635 = vmatpush3.bf16.msra.mxu0 %v1601_v51 }
 0x60f   : > { %v1481_v47 = vsel %vm831_vm3, %v2854_v39, 0.0  ;;  %2646 = vmatprep.subr.bf16.mxu0 %v3089_v16 }
 0x610   : > { %1482 = vadd.xlane.f32.xlu0 %v1481_v47 }
 0x612   : > { %v2856_v41 = vpop.eup %2855 }
 0x613   : > { %v1484_v48 = vsel %vm831_vm3, %v2856_v41, 0.0  ;;  %v1488_v49 = vpack.c.bf16 %v2856_v41, %v2854_v39 }
 0x614   : > { %1485 = vadd.xlane.f32.xlu0 %v1484_v48 }
 0x615   : > { %2631 = vmatmul.mubr.msk.bf16.vlgmr.msra.gmra.mrb[32].mxu1 %vm831_vm3, %v1488_v49 }
 0x616   : > { %2642 = vmatprep.mubr.msk.bf16.mxu1 %vm3090_vm1, %v3089_v16 }
 0x61d   : > { %1709 = vrot.lane.b32.xlu1 %v3462_v37, %s3096_s23 }
 0x621   : > { %1656 = vrot.lane.b32.xlu1 %v3457_v27, %s3096_s23 }
 0x625   : > { %1707 = vrot.lane.b32.xlu1 %v3455_v26, %s3096_s23 }
 0x62a   : > { %1658 = vrot.lane.b32.xlu0 %v3464_v38, %s3096_s23  ;;  %s3805_s23 = sld [smem:[#allocation19_spill]] }
 0x630   : > { %p3807_p6 = scmp.ne.s32.totalorder %s3805_s23, 0 }
 0x632   : > { %p3003_p12 = pnand %p3002_p7, %p3807_p6 }
 0x634   : > { %p3004_p13 = pneg %p3003_p12 }
 0x695   : > { %v1477_v52 = vpop.xlane.xlu0 %1476 }
 0x696   : > { %2857 = vrcp.f32 %v1477_v52 }
 0x699   : > { %v1480_v54 = vpop.xlane.xlu1 %1479 }
 0x69a   : > { %2859 = vrcp.f32 %v1480_v54 }
 0x69d   : > { %v1483_v53 = vpop.xlane.xlu0 %1482  ;;  %v1710_v56 = vpop.permute.xlu1 %1709 }
 0x69e   : > { %2861 = vrcp.f32 %v1483_v53  ;;  %v1715_v14 = vsel %vm732_vm2, %v1710_v56, 0  ;;  %v1904_v56 = vld [vmem:[%s3753_s6 + $0xc] sm:$0xf] }
 0x6a0   : > { %v2858_v59 = vpop.eup %2857 }
 0x6a1   : > { %v1486_v55 = vpop.xlane.xlu0 %1485  ;;  %v1657_v57 = vpop.permute.xlu1 %1656 }
 0x6a2   : > { %2863 = vrcp.f32 %v1486_v55 }
 0x6a4   : > { %v2860_v61 = vpop.eup %2859 }
 0x6a5   : > { %v1659_v27 = vpop.permute.xlu0 %1658  ;;  %v1708_v15 = vpop.permute.xlu1 %1707 }
 0x6a6   : > { %v1664_v26 = vsel %vm732_vm2, %v1659_v27, 0 }
 0x6a7   : > { %2641 = vmatpush3.bf16.xpose.msra.mxu1 %v1664_v26 }
 0x6a8   : > { %2652 = vmatprep.subr.bf16.mxu1 %v3089_v16  ;;  %v2862_v3 = vpop.eup %2861 }
 0x6ac   : > { %v2864_v8 = vpop.eup %2863 }
 0x6ae   : > { %2643 = vmatmul.mubr.msk.bf16.vlgmr.msra.gmra.mrb[36].mxu1 %vm732_vm2, %v1657_v57  ;;  %v1912_v57 = vsel %vm1234_vm4, %v1904_v56, 0 }
 0x6af   : > { %2654 = vmatprep.mubr.msk.bf16.mxu1 %vm3090_vm1, %v3089_v16 }
 0x6e0   : > { %v1529_v58 = vpop.f32.mrb[20].mxu0 }
 0x6e1   : > { %v2626_v60 = vpop.f32.mrb[21].mxu0  ;;  %v1587_v63 = vmul.f32 %v2858_v59, %v1529_v58 }
 0x6e2   : > { %v1532_v62 = vpop.f32.mrb[22].mxu0 }
 0x6e3   : > { %v1588_v0 = vmul.f32 %v2860_v61, %v1532_v62  ;;  %v2627_v1 = vpop.f32.mrb[23].mxu0 }
 0x6e5   : > { %v1591_v2 = vpack.c.bf16 %v1588_v0, %v1587_v63 }
 0x6e7   : > { %2636 = vmatprep.mubr.msk.bf16.mxu0 %vm732_vm2, %v1591_v2 }
 0x6e8   : > { %v1576_v4 = vpop.f32.mrb[32].mxu1 }
 0x6e9   : > { %v1589_v6 = vmul.f32 %v2862_v3, %v1576_v4  ;;  %v2632_v7 = vpop.f32.mrb[33].mxu1 }
 0x6ea   : > { %v1579_v9 = vpop.f32.mrb[34].mxu1 }
 0x6eb   : > { %v1590_v11 = vmul.f32 %v2864_v8, %v1579_v9  ;;  %v2633_v12 = vpop.f32.mrb[35].mxu1 }
 0x6ed   : > { %v1592_v13 = vpack.c.bf16 %v1590_v11, %v1589_v6 }
 0x6ef   : > { %2637 = vmatmul.mubr.msk.bf16.vlgmr.msra.gmra.mrb[16].mxu0 %vm732_vm2, %v1592_v13 }
 0x6f0   : > { %2647 = vmatpush3.bf16.xpose.msra.mxu0 %v1715_v14  ;;  %2648 = vmatprep.mubr.msk.bf16.mxu0 %vm3090_vm1, %v3089_v16 }
 0x6f1   : > { %2658 = vmatprep.subr.bf16.mxu0 %v3089_v16 }
 0x6f7   : > { %2649 = vmatmul.mubr.msk.bf16.vlgmr.msra.gmra.mrb[24].mxu0 %vm732_vm2, %v1708_v15 }
 0x6f8   : > { %2660 = vmatprep.mubr.msk.bf16.mxu0 %vm3090_vm1, %v3089_v16 }
 0x781   : > { %v1700_v17 = vpop.f32.mrb[36].mxu1 }
 0x782   : > { %v1758_v18 = vmul.f32 0.35355338, %v1700_v17  ;;  %v2644_v19 = vpop.f32.mrb[37].mxu1 }
 0x783   : > { %v1703_v20 = vpop.f32.mrb[38].mxu1  ;;  %v2809_v19 = vld [vmem:[%s3756_s9] sm:$0xff]  }
 0x784   : > { %v1759_v21 = vmul.f32 0.35355338, %v1703_v20  ;;  %v2645_v22 = vpop.f32.mrb[39].mxu1  ;;  %v1762_v24 = vsel %vm831_vm3, %v1758_v18, -inf  ;;  %v2810_v20 = vld [vmem:[%s3756_s9 + $0x8] sm:$0xff]  }
 0x785   : > { %1763 = vmax.xlane.f32.xlu0 %v1762_v24  ;;  %v2813_v22 = vld [vmem:[%s3759_s12] sm:$0xff]  }
 0x786   : > { %v1765_v28 = vsel %vm831_vm3, %v1759_v21, -inf }
 0x787   : > { %1766 = vmax.xlane.f32.xlu1 %v1765_v28  ;;  %v2438_v28 = vld [vmem:[#allocation7] ss:$0 sm:$0xff] }
 0x798   : > { %1847 = vrot.lane.b32.xlu1 %v3462_v37, %s3097_s18 }
 0x7ca   : > { %v1751_v29 = vpop.f32.mrb[24].mxu0 }
 0x7cb   : > { %v1760_v32 = vmul.f32 0.35355338, %v1751_v29  ;;  %v2650_v34 = vpop.f32.mrb[25].mxu0 }
 0x7cc   : > { %v1754_v35 = vpop.f32.mrb[26].mxu0 }
 0x7cd   : > { %v1761_v16 = vmul.f32 0.35355338, %v1754_v35  ;;  %v2651_v36 = vpop.f32.mrb[27].mxu0  ;;  %v1768_v23 = vsel %vm831_vm3, %v1760_v32, -inf }
 0x7ce   : > { %1769 = vmax.xlane.f32.xlu0 %v1768_v23 }
 0x7cf   : > { %v1771_v25 = vsel %vm831_vm3, %v1761_v16, -inf }
 0x7d2   : > { %1772 = vmax.xlane.f32.xlu0 %v1771_v25 }
 0x7e8   : > { %1800 = vrot.lane.b32.xlu0 %v3464_v38, %s3097_s18  ;;  %s2256_s18 = scalar_lea.sflag [#allocation4], %s3393_s7 }
 0x812   : > { %v1764_v40 = vpop.xlane.xlu0 %1763 }
 0x813   : > { %v1774_v42 = vsub.f32 %v1758_v18, %v1764_v40 }
 0x814   : > { %v1767_v30 = vpop.xlane.xlu1 %1766 }
 0x815   : > { %v1778_v31 = vmul.f32 1.442695, %v1774_v42  ;;  %v1775_v33 = vsub.f32 %v1759_v21, %v1767_v30  ;;  %v2811_v21 = vld [vmem:[#allocation8] sm:$0xff]   ;;  %v2812_v42 = vld [vmem:[#allocation8 + $0x8] sm:$0xff]  }
 0x816   : > { %v2814_v30 = vld [vmem:[%s3759_s12 + $0x8] sm:$0xff]  }
 0x817   : > { %2865 = vpow2.f32 %v1778_v31  ;;  %v1780_v37 = vmul.f32 1.442695, %v1775_v33  ;;  %v2815_v31 = vld [vmem:[%s3759_s12 + $0x10] sm:$0xff]  }
 0x818   : > { %v1848_v43 = vpop.permute.xlu1 %1847 }
 0x819   : > { %2867 = vpow2.f32 %v1780_v37  ;;  %2659 = vmatpush3.bf16.msra.mxu0 %v1848_v43  ;;  %v2448_v37 = vld [vmem:[%s3803_s19] ss:$0 sm:$0xff] }
 0x81a   : > { %2717 = vmatprep.subr.msk.bf16.mxu0 %vm1234_vm4, %v1904_v56 }
 0x821   : > { %v2866_v44 = vpop.eup %2865 }
 0x822   : > { %v1786_v45 = vsel %vm831_vm3, %v2866_v44, 0.0 }
 0x823   : > { %v2868_v46 = vpop.eup %2867  ;;  %1787 = vadd.xlane.f32.xlu1 %v1786_v45 }
 0x824   : > { %v1789_v39 = vsel %vm831_vm3, %v2868_v46, 0.0  ;;  %v1798_v47 = vpack.c.bf16 %v2868_v46, %v2866_v44 }
 0x825   : > { %1790 = vadd.xlane.f32.xlu0 %v1789_v39 }
 0x85b   : > { %v1770_v38 = vpop.xlane.xlu0 %1769 }
 0x85c   : > { %v1776_v41 = vsub.f32 %v1760_v32, %v1770_v38 }
 0x85e   : > { %v1782_v48 = vmul.f32 1.442695, %v1776_v41 }
 0x85f   : > { %v1773_v49 = vpop.xlane.xlu0 %1772 }
 0x860   : > { %2869 = vpow2.f32 %v1782_v48  ;;  %v1777_v50 = vsub.f32 %v1761_v16, %v1773_v49 }
 0x862   : > { %v1784_v51 = vmul.f32 1.442695, %v1777_v50 }
 0x863   : > { %v1801_v52 = vpop.permute.xlu0 %1800 }
 0x864   : > { %2871 = vpow2.f32 %v1784_v51  ;;  %2653 = vmatpush3.bf16.msra.mxu1 %v1801_v52 }
 0x865   : > { %2670 = vmatprep.subr.bf16.mxu1 %v2809_v19 }
 0x867   : > { %2655 = vmatmul.mubr.msk.bf16.vlgmr.msra.gmra.mrb[40].mxu1 %vm831_vm3, %v1798_v47 }
 0x868   : > { %2671 = vmatpush3.bf16.msra.mxu1 %v2809_v19 }
 0x869   : > { %2672 = vmatprep.subr.bf16.mxu1 %v2810_v20 }
 0x86a   : > { %v2870_v53 = vpop.eup %2869 }
 0x86b   : > { %v1792_v54 = vsel %vm831_vm3, %v2870_v53, 0.0 }
 0x86c   : > { %1793 = vadd.xlane.f32.xlu0 %v1792_v54  ;;  %2673 = vmatpush3.bf16.msra.mxu1 %v2810_v20 }
 0x86d   : > { %2678 = vmatprep.subr.bf16.mxu1 %v2811_v21 }
 0x86e   : > { %v2872_v55 = vpop.eup %2871 }
 0x86f   : > { %v1795_v27 = vsel %vm831_vm3, %v2872_v55, 0.0  ;;  %v1799_v26 = vpack.c.bf16 %v2872_v55, %v2870_v53 }
 0x870   : > { %1796 = vadd.xlane.f32.xlu1 %v1795_v27 }
 0x871   : > { %2661 = vmatmul.mubr.msk.bf16.vlgmr.msra.gmra.mrb[28].mxu0 %vm831_vm3, %v1799_v26 }
 0x872   : > { %2665 = vmatpush3.bf16.msra.mxu0 %v1912_v57 }
 0x873   : > { %2686 = vmatprep.subr.bf16.mxu0 %v2813_v22 }
 0x8b0   : > { %v1788_v58 = vpop.xlane.xlu1 %1787 }
 0x8b1   : > { %2873 = vrcp.f32 %v1788_v58 }
 0x8b2   : > { %v1791_v59 = vpop.xlane.xlu0 %1790 }
 0x8b3   : > { %2875 = vrcp.f32 %v1791_v59  ;;  %v2449_v59 = vld [vmem:[%s3804_s24] ss:$0 sm:$0xff] }
 0x8bb   : > { %v2874_v63 = vpop.eup %2873 }
 0x8bd   : > { %v2876_v1 = vpop.eup %2875 }
 0x8f9   : > { %v1794_v60 = vpop.xlane.xlu0 %1793 }
 0x8fa   : > { %2877 = vrcp.f32 %v1794_v60 }
 0x8fd   : > { %v1797_v61 = vpop.xlane.xlu1 %1796 }
 0x8fe   : > { %2879 = vrcp.f32 %v1797_v61 }
 0x904   : > { %v2878_v9 = vpop.eup %2877 }
 0x908   : > { %v2880_v12 = vpop.eup %2879 }
 0x93a   : > { %v1840_v62 = vpop.f32.mrb[40].mxu1 }
 0x93b   : > { %v2656_v0 = vpop.f32.mrb[41].mxu1  ;;  %v1898_v3 = vmul.f32 %v2874_v63, %v1840_v62 }
 0x93c   : > { %v1843_v2 = vpop.f32.mrb[42].mxu1 }
 0x93d   : > { %v1899_v4 = vmul.f32 %v2876_v1, %v1843_v2  ;;  %v2657_v6 = vpop.f32.mrb[43].mxu1  ;;  %v2881_v1 = vld [vmem:[%s3400_s28 + $0x10] sm:$0xff] }
 0x93e   : > { %v2882_v6 = vld [vmem:[%s3400_s28] sm:$0xff] }
 0x93f   : > { %v1902_v7 = vpack.c.bf16 %v1899_v4, %v1898_v3 }
 0x941   : > { %2666 = vmatprep.mubr.msk.bf16.mxu0 %vm732_vm2, %v1902_v7 }
 0x944   : > { %v1887_v8 = vpop.f32.mrb[28].mxu0 }
 0x945   : > { %v2662_v11 = vpop.f32.mrb[29].mxu0  ;;  %v1900_v14 = vmul.f32 %v2878_v9, %v1887_v8  ;;  %v2883_v9 = vld [vmem:[%s3400_s28 + $0x18] sm:$0xff] }
 0x946   : > { %v1890_v13 = vpop.f32.mrb[30].mxu0 }
 0x947   : > { %v1901_v15 = vmul.f32 %v2880_v12, %v1890_v13  ;;  %v2663_v17 = vpop.f32.mrb[31].mxu0  ;;  %v2884_v12 = vld [vmem:[%s3400_s28 + $0x8] sm:$0xff] }
 0x949   : > { %v1903_v18 = vpack.c.bf16 %v1901_v15, %v1900_v14 }
 0x94b   : > { %2667 = vmatmul.mubr.msk.bf16.vlgmr.msra.gmra.mrb[16].mxu0 %vm732_vm2, %v1903_v18 }
 0x94c   : > { %2687 = vmatpush3.bf16.msra.mxu0 %v2813_v22 }
 0x94d   : > { %2688 = vmatprep.subr.bf16.mxu0 %v2814_v30 }
 0x950   : > { %2689 = vmatpush3.bf16.msra.mxu0 %v2814_v30 }
 0x951   : > { %2690 = vmatprep.subr.bf16.mxu0 %v2815_v31 }
 0x954   : > { %2691 = vmatpush3.bf16.msra.mxu0 %v2815_v31 }
 0xa1e   : > { %v2668_v24 = vpop.f32.mrb[16].mxu0 }
 0xa1f   : > { %v1948_v29 = vpop.f32.mrb[17].mxu0  ;;  %v1976_v34 = vadd.f32 %v2668_v24, %v2438_v28 }
 0xa20   : > { %v2669_v32 = vpop.f32.mrb[18].mxu0  ;;  %v1974_v36 = vadd.f32 %v2438_v28, %v1948_v29 }
 0xa21   : > { %v1977_v35 = vadd.f32 %v2669_v32, %v2438_v28  ;;  %v1951_v16 = vpop.f32.mrb[19].mxu0 }
 0xa22   : > { %v1975_v23 = vadd.f32 %v2438_v28, %v1951_v16 }
 0xa23   : > { %v1983_v25 = vpack.c.bf16 %v1977_v35, %v1976_v34 }
 0xa24   : > { %v1982_v40 = vpack.c.bf16 %v1975_v23, %v1974_v36 }
 0xa26   : > { %2674 = vmatprep.mubr.msk.bf16.mxu1 %vm594_vm0, %v1982_v40 }
 0xa27   : > { %2675 = vmatmul.mubr.msk.bf16.vlgmr.msra.gmra.mrb[44].mxu1 %vm594_vm0, %v1983_v25 }
 0xa28   : > { %2679 = vmatpush3.bf16.msra.mxu1 %v2811_v21  ;;  %2682 = vmatprep.mubr.msk.bf16.mxu1 %vm594_vm0, %v3429_v5  ;;  %v2816_v5 = vld [vmem:[%s3759_s12 + $0x18] sm:$0xff]  }
 0xa29   : > { %2680 = vmatprep.subr.bf16.mxu1 %v2812_v42  ;;  %2692 = vmatprep.subr.bf16.mxu0 %v2816_v5 }
 0xa2a   : > { %2693 = vmatpush3.bf16.msra.mxu0 %v2816_v5 }
 0xa2c   : > { %2681 = vmatpush3.bf16.msra.mxu1 %v2812_v42 }
 0xa33   : > { %2683 = vmatmul.mubr.msk.bf16.vlgmr.msra.gmra.mrb[44].mxu1 %vm594_vm0, %v3437_v10  ;;  %v2447_v10 = vld [vmem:[%s3802_s21] ss:$0 sm:$0xff]  ;;  %s3098_s21 = smov [#allocation10]  }
 0xa34   : > { %s3005_s0 = sshll.u32 %s3098_s21, 4  ;;  %s3006_s0 = int_to_ptr.vmem [resolvable:$false] %s3005_s0 }
 0xa35   : > { %s3007_s27 = scalar_lea.vmem %s3006_s0, 1024  ;;  %p3008_p11 = scmp.lt.s32.totalorder %s3691_s20, %s3006_s0 }
 0xa36   : > { %p3009_p3 = scmp.lt.s32.totalorder %s3007_s27, %s3001_s11 }
 0xa38   : > { %p3010_p4 = por %p3009_p3, %p3008_p11 }
 0xa3a   : > { %p3011_p5 = pnand %p3010_p4, %p3004_p13 }
 0xb06   : > { %v2684_v33 = vpop.f32.mrb[44].mxu1 }
 0xb07   : > { %v2125_v43 = vmul.f32 %v2684_v33, %v2447_v10  ;;  %v2101_v44 = vpop.f32.mrb[45].mxu1 }
 0xb08   : > { %v2123_v45 = vmul.f32 %v2447_v10, %v2101_v44  ;;  %v2685_v46 = vpop.f32.mrb[46].mxu1 }
 0xb09   : > { %v2136_v39 = vadd.f32 %v2448_v37, %v2125_v43  ;;  %v2126_v47 = vmul.f32 %v2685_v46, %v2447_v10  ;;  %v2104_v38 = vpop.f32.mrb[47].mxu1 }
 0xb0a   : > { %v2134_v41 = vadd.f32 %v2448_v37, %v2123_v45  ;;  %v2124_v48 = vmul.f32 %v2447_v10, %v2104_v38 }
 0xb0b   : > { %v2144_v49 = vmul.f32 0.2, %v2136_v39  ;;  %v2137_v50 = vadd.f32 %v2448_v37, %v2126_v47  ;;  %vm2140_vm5 = vcmp.gt.f32.partialorder %v2136_v39, 0.0 }
 0xb0c   : > { %v2142_v51 = vmul.f32 0.2, %v2134_v41  ;;  %v2135_v52 = vadd.f32 %v2448_v37, %v2124_v48  ;;  %vm2138_vm6 = vcmp.gt.f32.partialorder %v2134_v41, 0.0 }
 0xb0d   : > { %vm2141_vm7 = vcmp.gt.f32.partialorder %v2137_v50, 0.0  ;;  %v2145_v53 = vmul.f32 0.2, %v2137_v50  ;;  %v2148_v55 = vsel %vm2140_vm5, %v2136_v39, %v2144_v49 }
 0xb0e   : > { %vm2139_vm8 = vcmp.gt.f32.partialorder %v2135_v52, 0.0  ;;  %v2143_v54 = vmul.f32 0.2, %v2135_v52  ;;  %v2146_v26 = vsel %vm2138_vm6, %v2134_v41, %v2142_v51 }
 0xb0f   : > { %v2149_v27 = vsel %vm2141_vm7, %v2137_v50, %v2145_v53 }
 0xb10   : > { %v2151_v56 = vpack.c.bf16 %v2149_v27, %v2148_v55  ;;  %v2147_v57 = vsel %vm2139_vm8, %v2135_v52, %v2143_v54 }
 0xb11   : > { %v2150_v58 = vpack.c.bf16 %v2147_v57, %v2146_v26 }
 0xb13   : > { %2694 = vmatprep.mubr.msk.bf16.mxu0 %vm2191_vm9, %v2150_v58 }
 0xb14   : > { %2695 = vmatmul.mubr.msk.bf16.vlgmr.msra.gmra.mrb[32].mxu0 %vm2191_vm9, %v2151_v56 }
 0xbe7   : > { %v2696_v60 = vpop.f32.mrb[32].mxu0 }
 0xbe8   : > { %v2241_v61 = vadd.f32 %v2696_v60, %v2449_v59  ;;  %v2232_v62 = vpop.f32.mrb[33].mxu0 }
 0xbe9   : > { %v2233_v63 = vadd.f32 %v2449_v59, %v2232_v62  ;;  %v2697_v0 = vpop.f32.mrb[34].mxu0 }
 0xbea   : > { %v2249_v2 = vadd.f32 %v2881_v1, %v2241_v61  ;;  %v2244_v3 = vadd.f32 %v2697_v0, %v2449_v59  ;;  %v2235_v4 = vpop.f32.mrb[35].mxu0 }
 0xbeb   : > { %v2247_v7 = vadd.f32 %v2882_v6, %v2233_v63  ;;  %v2236_v8 = vadd.f32 %v2449_v59, %v2235_v4 }
 0xbec   : > { %2253 = vst.msk [vmem:[%s554_s10 + $0x10] sm:$0xff] %vm594_vm0, %v2249_v2  ;;  %v2250_v11 = vadd.f32 %v2883_v9, %v2244_v3 }
 0xbed   : > { %2251 = vst.msk [vmem:[%s554_s10] sm:$0xff] %vm594_vm0, %v2247_v7  ;;  %v2248_v13 = vadd.f32 %v2884_v12, %v2236_v8 }
 0xbee   : > { %2254 = vst.msk [vmem:[%s554_s10 + $0x18] sm:$0xff] %vm594_vm0, %v2250_v11 }
 0xbef   : > { %2252 = vst.msk [vmem:[%s554_s10 + $0x8] sm:$0xff] %vm594_vm0, %v2248_v13 }
 0xbf0   : > { %3014 = shalt.err (!%p3011_p5)
}
 0xbf1   : > { %s3015_s28 = scalar_lea.hbm %s3699_s22, 512  ;;  %s3019_s29 = scalar_lea.hbm %s3806_s17, 1024 }
 0xbf2   : > { %p3016_p1 = scmp.ne.s32.totalorder %s3699_s22, %s3015_s28  ;;  %p3020_p10 = scmp.lt.u32.totalorder %s3699_s22, %s3806_s17 }
 0xbf3   : > { %p3021_p2 = scmp.lt.u32.totalorder %s3019_s29, %s3015_s28  ;;  %p3023_p7 = scmp.lt.u32.totalorder %s3015_s28, %s3699_s22 }
 0xbf4   : > { %p3017_p8 = pnand %p3016_p1, %p3807_p6 }
 0xbf5   : > { %p3022_p0 = por %p3021_p2, %p3020_p10 }
 0xbf6   : > { %p3018_p9 = pneg %p3017_p8 }
 0xbf7   : > { %p3024_p12 = por %p3023_p7, %p3022_p0 }
 0xbf9   : > { %p3025_p13 = pnand %p3024_p12, %p3018_p9 }
 0xbfb   : > { %3028 = shalt.err (!%p3025_p13)
}
 0xbfc   : > { %s3099_s25 = smov 128   ;;  %s3100_s14 = smov 8  }
 0xbfd   : > { %2730 = dma.vmem_to_hbm [thread:$0]  (%p3807_p6), %s3691_s20, 512, %s3699_s22, %s2256_s18, %s3099_s25, %s3099_s25, %s3100_s14  }
 0xbfe PF: > { %s3808_s26 = sld [smem:[#allocation16_spill]]  ;;  %s3809_s11 = sld [smem:[#allocation20_spill]] }
 0xbff   : > { %p3811_p3 = scmp.ge.s32.totalorder %s3079_s16, 2 }
 0xc04   : > { %s2285_s21 = sand.u32 1, %s3808_s26   ;;  %p3810_p11 = scmp.ne.s32.totalorder %s3809_s11, 0 }
 0xc05   : > { %s2286_s0 = scalar_lea.sflag [#allocation4], %s2285_s21 }
 0xc06   : > { %p2747_p4 = pnand %p3811_p3, %p3810_p11 }
 0xc08   : > { %3062 = dma.done.wait (!%p2747_p4), %s2286_s0, 512  }
 0xc09   : > { %3064 = vsyncadd (!%p2747_p4), %s2286_s0, 4294966784  ;;  %s3812_s16 = sld [smem:[#allocation17_spill]]  ;;  %s3813_s27 = sld [smem:[#allocation18_spill]] }
 0xc0a   : > { %s3814_s29 = smov %s3071_s30  ;;  %s3815_s30 = smov %s3075_s15 }
 0xc0f   : > { %p31_p5 = scmp.ge.s32.totalorder %s3812_s16, 4   ;;  %s3816_s15 = smov %s3813_s27 }
 0xc11   :  { %33 = sbr.rel (!%p31_p5) target bundleno = 15 (0xf), region = 142 }
 0xc18   :  { %2291 = vsyncpa [#allocation3], 1 }
 0xc19   :  { %2293 = vsyncpa [#allocation3 + $0x1], 1 }
 0xc1a   :  { %2294 = vsyncpa [#allocation6], 1 }
 0xc1b   :  { %2296 = vsyncpa [#allocation6 + $0x1], 1 }
 0xc1c   :  { %2297 = vsyncpa [#allocation9], 1 }
 0xc1d   :  { %2298 = vsyncpa [#allocation4], 1 }
 0xc1e   :  { %2300 = vsyncpa [#allocation4 + $0x1], 1 }

// kernel: tpu_custom_call.1
= control target key start
LH: loop header
LB: loop body
LE: loop exit
PB: predicated region body
PF: predicated region fallthrough
CT: control target
= control target key end

     0   :  { %s3747_s0 = inlined_call_operand.hbm [shape: f32[4,16,32], index: 0, kind: input, shape index: {}]   ;;  %s3748_s1 = inlined_call_operand.hbm [shape: f32[4,16,32], index: 1, kind: input, shape index: {}]   ;;  %s3749_s2 = inlined_call_operand.vmem [shape: bf16[32,32], index: 2, kind: input, shape index: {}]   ;;  %s3750_s3 = inlined_call_operand.vmem [shape: f32[1,32], index: 3, kind: input, shape index: {}]   ;;  %s3751_s4 = inlined_call_operand.vmem [shape: bf16[32,64], index: 4, kind: input, shape index: {}]   ;;  %s3752_s5 = inlined_call_operand.vmem [shape: f32[1,64], index: 5, kind: input, shape index: {}]   ;;  %s3753_s6 = inlined_call_operand.vmem [shape: bf16[32,32], index: 6, kind: input, shape index: {}]   ;;  %s3754_s7 = inlined_call_operand.hbm [shape: f32[1,32], index: 7, kind: input, shape index: {}]   ;;  %s3755_s8 = inlined_call_operand.hbm [shape: bf16[32,64], index: 8, kind: input, shape index: {}]   ;;  %s3756_s9 = inlined_call_operand.vmem [shape: bf16[32,64], index: 9, kind: input, shape index: {}]   ;;  %s3757_s10 = inlined_call_operand.vmem [shape: f32[1,64], index: 10, kind: input, shape index: {}]   ;;  %s3758_s11 = inlined_call_operand.vmem [shape: f32[1,64], index: 11, kind: input, shape index: {}]   ;;  %s3759_s12 = inlined_call_operand.vmem [shape: bf16[64,32], index: 12, kind: input, shape index: {}]   ;;  %s3760_s13 = inlined_call_operand.vmem [shape: f32[1,32], index: 13, kind: input, shape index: {}]   ;;  %s3761_s14 = inlined_call_operand.hbm [shape: f32[4,16,32], index: 14, kind: output, shape index: {}]  }
   0x1   :  { %3774 = sst [smem:[#allocation21_spill]] %s3747_s0 }
   0x2   :  { %3775 = sst [smem:[#allocation22_spill]] %s3754_s7 }
   0x3   :  { %3776 = sst [smem:[#allocation23_spill]] %s3757_s10 }
   0x4   :  { %3777 = sst [smem:[#allocation24_spill]] %s3758_s11 }
   0x5   :  { %3778 = sst [smem:[#allocation25_spill]] %s3760_s13 }
   0x6   :  { %3779 = sst [smem:[#allocation26_spill]] %s3761_s14 }
   0x7   :  { %19 = vsyncpa [#allocation3], 0 }
   0x8   :  { %21 = vsyncpa [#allocation3 + $0x1], 0 }
   0x9   :  { %22 = vsyncpa [#allocation6], 0 }
   0xa   :  { %24 = vsyncpa [#allocation6 + $0x1], 0 }
   0xb   :  { %25 = vsyncpa [#allocation9], 0 }
   0xc   :  { %26 = vsyncpa [#allocation4], 0 }
   0xd   :  { %28 = vsyncpa [#allocation4 + $0x1], 0  ;;  %s3176_s29 = smov 0   ;;  %s3178_s30 = smov 0  }
   0xe   :  { %s3180_s15 = smov 0   ;;  %s3182_s16 = smov 0  }
   0xf LB: > { %3780 = sst [smem:[#allocation16_spill]] %s3067_s29  ;;  %s3197_s17 = sadd.s32 4294967295, %s3079_s16   ;;  %s3079_s16 = sphi %s3182_s16, %s3812_s16   ;;  %s3075_s15 = sphi %s3180_s15, %s3816_s15   ;;  %s3071_s30 = sphi %s3178_s30, %s3815_s30   ;;  %s3067_s29 = sphi %s3176_s29, %s3814_s29  }
  0x10   : > { %s2385_s18 = sadd.s32 4294967294, %s3079_s16   ;;  %s3201_s19 = sadd.s32 1, %s3079_s16  }
  0x11   : > { %3781 = sst [smem:[#allocation17_spill]] %s3201_s19  ;;  %s41_s20 = sadd.s32 1, %s3075_s15 }
  0x12   : > { %s38_s21 = ssub.s32 %s3079_s16, %s3201_s19  ;;  %p48_p0 = scmp.ne.s32.totalorder %s3075_s15, %s3071_s30 }
  0x13   : > { %p39_p1 = scmp.eq.s32.totalorder %s38_s21, 0  ;;  %p49_p2 = scmp.eq.s32.totalorder %s3079_s16, 0 }
  0x14   : > { %p54_p3 = scmp.ne.s32.totalorder %s3071_s30, %s3067_s29  ;;  %p3762_p4 = scmp.eq.s32.totalorder %s3197_s17, 0 }
  0x15   : > { %s3213_s22 = scalar_select %p39_p1, %s3075_s15, %s41_s20  }
  0x16   : > { %p3215_p5 = por %p49_p2, %p48_p0  ;;  %p3221_p6 = por %p3762_p4, %p54_p3 }
  0x17   : > { %3782 = sst [smem:[#allocation18_spill]] %s3213_s22  ;;  %p356_p7 = scmp.eq.s32.totalorder %s3197_s17, 1 }
  0x18   : > { %s3784_s24 = scalar_select %p3221_p6, 1, 0 }
  0x19   : > { %p362_p8 = scmp.eq.s32.totalorder %s2385_s18, 1  ;;  %p2386_p9 = scmp.ge.s32.totalorder %s3079_s16, 1 }
  0x1a   : > { %p369_p10 = scmp.lt.s32.totalorder %s3079_s16, 3  ;;  %p3228_p11 = por %p356_p7, %p48_p0 }
  0x1b   : > { %p3232_p12 = por %p362_p8, %p54_p3  ;;  %s3081_s28 = smov [#allocation7]  }
  0x1c   : > { %s3785_s25 = scalar_select %p3228_p11, 1, 0 }
  0x1d   : > { %s3787_s26 = scalar_select %p3232_p12, 1, 0 }
  0x1e   : > { %3786 = sst [smem:[#allocation19_spill]] %s3785_s25  ;;  %p3236_p13 = pnand %p2386_p9, %p369_p10 }
  0x1f   : > { %3788 = sst [smem:[#allocation20_spill]] %s3787_s26  ;;  %s397_s18 = sshll.u32 %s3081_s28, 4  ;;  %s398_s18 = int_to_ptr.vmem [resolvable:$true] %s397_s18 }
  0x20   : > { %s3789_s27 = scalar_select %p3236_p13, 1, 0 }
  0x21   : > { %p2732_p2 = pneg %p3236_p13  ;;  %p2752_p4 = scmp.lt.s32.totalorder %s3079_s16, 2 }
  0x22   : > { %p3790_p0 = scmp.eq.s32.totalorder %s3197_s17, 0  ;;  %s3082_s22 = smov [#allocation8]  }
  0x23   : > { %p3252_p3 = pnand %p2752_p4, %p3215_p5  ;;  %s407_s19 = sshll.u32 %s3082_s22, 4  ;;  %s3256_s19 = int_to_ptr.vmem [resolvable:$true] %s407_s19 }
  0x24   : > { %p3246_p7 = pnand %p2732_p2, %p3790_p0  ;;  %s3793_s7 = sld [smem:[#allocation22_spill]] }
  0x25   : > { %s3792_s21 = scalar_select %p3252_p3, 1, 0 }
  0x26   : > { %p2887_p9 = pneg %p3246_p7 }
  0x2a   : > { %s2885_s29 = scalar_lea.hbm %s3793_s7, 16 }
  0x2b   : > { %p2886_p8 = scmp.ne.s32.totalorder %s3793_s7, %s2885_s29  ;;  %p2892_p10 = scmp.lt.u32.totalorder %s2885_s29, %s3793_s7 }
  0x2d   : > { %p2888_p4 = pnand %p2887_p9, %p2886_p8 }
  0x2f   : > { %p2889_p5 = pneg %p2888_p4 }
  0x31   : > { %p2894_p2 = pnand %p2892_p10, %p2889_p5 }
  0x33   : > { %2897 = shalt.err (!%p2894_p2)
}
  0x34   : > { %s2898_s22 = scalar_lea.vmem %s398_s18, 16  ;;  %s2905_s14 = scalar_lea.vmem %s398_s18, 32 }
  0x35   : > { %p2899_p0 = scmp.ne.s32.totalorder %s398_s18, %s2898_s22  ;;  %p2906_p11 = scmp.lt.s32.totalorder %s398_s18, %s398_s18 }
  0x36   : > { %p2907_p6 = scmp.lt.s32.totalorder %s2905_s14, %s2898_s22 }
  0x37   : > { %p2901_p1 = pnand %p2899_p0, %p2887_p9 }
  0x38   : > { %p2908_p13 = por %p2907_p6, %p2906_p11 }
  0x39   : > { %p2902_p12 = pneg %p2901_p1 }
  0x3b   : > { %p2909_p3 = pnand %p2908_p13, %p2902_p12 }
  0x3d   : > { %2912 = shalt.err (!%p2909_p3)
}
  0x3e   : > { %2735 = dma.hbm_to_vmem [thread:$0]  (!%p3246_p7), %s3793_s7, 16, %s398_s18, [#allocation6]  }
  0x3f   : > { %s436_s29 = sand.u32 1, %s3075_s15   ;;  %s2913_s23 = scalar_lea.hbm %s3755_s8, 256 }
  0x40   : > { %p2914_p1 = scmp.ne.s32.totalorder %s3755_s8, %s2913_s23  ;;  %p2920_p12 = scmp.lt.u32.totalorder %s2913_s23, %s3755_s8 }
  0x42   : > { %p2916_p6 = pnand %p2914_p1, %p2887_p9 }
  0x44   : > { %p2917_p11 = pneg %p2916_p6 }
  0x46   : > { %p2922_p13 = pnand %p2920_p12, %p2917_p11 }
  0x48   : > { %2925 = shalt.err (!%p2922_p13)
}
  0x49   : > { %s2926_s18 = scalar_lea.vmem %s3256_s19, 256  ;;  %p2934_p5 = scmp.lt.s32.totalorder %s3256_s19, %s3256_s19 }
  0x4a   : > { %p2927_p3 = scmp.ne.s32.totalorder %s3256_s19, %s2926_s18  ;;  %p2935_p10 = scmp.lt.s32.totalorder %s2926_s18, %s2926_s18 }
  0x4c   : > { %p2929_p8 = pnand %p2927_p3, %p2887_p9  ;;  %p2936_p2 = por %p2935_p10, %p2934_p5 }
  0x4e   : > { %p2930_p4 = pneg %p2929_p8 }
  0x50   : > { %p2937_p0 = pnand %p2936_p2, %p2930_p4 }
  0x52   : > { %2940 = shalt.err (!%p2937_p0)
}
  0x53   : > { %s3083_s10 = smov 64   ;;  %s3084_s11 = smov 4  }
  0x54   : > { %2738 = dma.hbm_to_vmem [thread:$0]  (!%p3246_p7), %s3755_s8, 256, %s3256_s19, [#allocation9], %s3083_s10, %s3083_s10, %s3084_s11  }
  0x55   : > { %s3306_s26 = sshll.u32 %s436_s29, 5  ;;  %s2463_s28 = sshll.u32 %s3079_s16, 9 }
  0x56   : > { %s3794_s0 = sld [smem:[#allocation21_spill]]  ;;  %s440_s18 = scalar_lea.vmem [#allocation2], %s3306_s26 }
  0x57   : > { %s448_s20 = sshll.u32 %s440_s18, 4  ;;  %s3319_s25 = scalar_lea.sflag [#allocation3], %s436_s29  ;;  %s3317_s20 = int_to_ptr.vmem [resolvable:$true] %s448_s20 }
  0x58   : > { %p3795_p9 = scmp.ne.s32.totalorder %s3792_s21, 0 }
  0x5a   : > { %p2943_p1 = pneg %p3795_p9 }
  0x5c   : > { %s3314_s14 = scalar_lea.hbm %s3794_s0, %s2463_s28  ;;  %s2946_s13 = scalar_lea.hbm %s3794_s0, 1024 }
  0x5d   : > { %s2941_s19 = scalar_lea.hbm %s3314_s14, 512  ;;  %p2947_p12 = scmp.lt.u32.totalorder %s3314_s14, %s3794_s0 }
  0x5e   : > { %p2942_p7 = scmp.ne.s32.totalorder %s3314_s14, %s2941_s19  ;;  %p2948_p13 = scmp.lt.u32.totalorder %s2946_s13, %s2941_s19 }
  0x5f   : > { %p2950_p8 = scmp.lt.u32.totalorder %s2941_s19, %s3314_s14 }
  0x60   : > { %p2944_p6 = pnand %p2943_p1, %p2942_p7  ;;  %p2949_p3 = por %p2948_p13, %p2947_p12 }
  0x62   : > { %p2945_p11 = pneg %p2944_p6  ;;  %p2951_p4 = por %p2950_p8, %p2949_p3 }
  0x64   : > { %p2952_p5 = pnand %p2951_p4, %p2945_p11 }
  0x66   : > { %2955 = shalt.err (!%p2952_p5)
}
  0x67   : > { %s2956_s29 = scalar_lea.vmem %s3317_s20, 512  ;;  %s3085_s18 = smov [#allocation2]  }
  0x68   : > { %p2957_p10 = scmp.ne.s32.totalorder %s3317_s20, %s2956_s29  ;;  %s2961_s10 = sshll.u32 %s3085_s18, 4  ;;  %s2962_s10 = int_to_ptr.vmem [resolvable:$false] %s2961_s10 }
  0x69   : > { %s2963_s11 = scalar_lea.vmem %s2962_s10, 1024  ;;  %p2964_p7 = scmp.lt.s32.totalorder %s3317_s20, %s2962_s10 }
  0x6a   : > { %p2959_p2 = pnand %p2957_p10, %p2943_p1  ;;  %p2965_p6 = scmp.lt.s32.totalorder %s2963_s11, %s2956_s29 }
  0x6c   : > { %p2960_p0 = pneg %p2959_p2  ;;  %p2966_p12 = por %p2965_p6, %p2964_p7 }
  0x6e   : > { %p2967_p13 = pnand %p2966_p12, %p2960_p0 }
  0x70   : > { %2970 = shalt.err (!%p2967_p13)
}
  0x71   : > { %s3086_s19 = smov 128   ;;  %s3087_s13 = smov 8  }
  0x72   : > { %2742 = dma.hbm_to_vmem [thread:$0]  (!%p3795_p9), %s3314_s14, 512, %s3317_s20, %s3319_s25, %s3086_s19, %s3086_s19, %s3087_s13  }
  0x73   : > { %s3355_s29 = scalar_lea.hbm %s3748_s1, %s2463_s28  ;;  %s462_s18 = scalar_lea.vmem [#allocation5], %s3306_s26 }
  0x74   : > { %s470_s10 = sshll.u32 %s462_s18, 4  ;;  %s458_s11 = sand.u32 1, %s3079_s16   ;;  %s3358_s10 = int_to_ptr.vmem [resolvable:$true] %s470_s10 }
  0x75   : > { %s3361_s0 = scalar_lea.sflag [#allocation6], %s458_s11  ;;  %s2971_s7 = scalar_lea.hbm %s3355_s29, 512 }
  0x76   : > { %p2972_p11 = scmp.ne.s32.totalorder %s3355_s29, %s2971_s7  ;;  %s2976_s20 = scalar_lea.hbm %s3748_s1, 1024 }
  0x77   : > { %p2977_p4 = scmp.lt.u32.totalorder %s3355_s29, %s3748_s1  ;;  %p2978_p5 = scmp.lt.u32.totalorder %s2976_s20, %s2971_s7 }
  0x78   : > { %p2974_p3 = pnand %p2972_p11, %p2943_p1  ;;  %p2980_p2 = scmp.lt.u32.totalorder %s2971_s7, %s3355_s29 }
  0x79   : > { %p2979_p10 = por %p2978_p5, %p2977_p4 }
  0x7a   : > { %p2975_p8 = pneg %p2974_p3 }
  0x7b   : > { %p2981_p0 = por %p2980_p2, %p2979_p10 }
  0x7d   : > { %p2982_p7 = pnand %p2981_p0, %p2975_p8 }
  0x7f   : > { %2985 = shalt.err (!%p2982_p7)
}
  0x80   : > { %s2986_s26 = scalar_lea.vmem %s3358_s10, 512  ;;  %s3088_s22 = smov [#allocation5]  }
  0x81   : > { %p2987_p6 = scmp.ne.s32.totalorder %s3358_s10, %s2986_s26  ;;  %s2991_s18 = sshll.u32 %s3088_s22, 4  ;;  %s2992_s18 = int_to_ptr.vmem [resolvable:$false] %s2991_s18 }
  0x82   : > { %s2993_s11 = scalar_lea.vmem %s2992_s18, 1024  ;;  %p2994_p11 = scmp.lt.s32.totalorder %s3358_s10, %s2992_s18 }
  0x83   : > { %p2989_p12 = pnand %p2987_p6, %p2943_p1  ;;  %p2995_p3 = scmp.lt.s32.totalorder %s2993_s11, %s2986_s26 }
  0x85   : > { %p2990_p13 = pneg %p2989_p12  ;;  %p2996_p4 = por %p2995_p3, %p2994_p11 }
  0x87   : > { %p2997_p5 = pnand %p2996_p4, %p2990_p13 }
  0x89   : > { %3000 = shalt.err (!%p2997_p5)
}
  0x8a   : > { %2745 = dma.hbm_to_vmem [thread:$0]  (!%p3795_p9), %s3355_s29, 512, %s3358_s10, %s3361_s0, %s3086_s19, %s3086_s19, %s3087_s13  }
  0x8b   : > { %p3796_p1 = scmp.ne.s32.totalorder %s3789_s27, 0 }
  0x8c   : > { %s3393_s7 = sand.u32 (!%p3796_p1), 1, %s3071_s30   ;;  %p3797_p8 = scmp.ne.s32.totalorder (!%p3796_p1), %s3784_s24, 0 }
  0x8d   : > { %482 = sbr.rel (%p3796_p1) target bundleno = 3070 (0xbfe), region = 76  ;;  %s3396_s14 = sshll.u32 (!%p3796_p1), %s3393_s7, 5 }
  0x8e   : > { %s485_s21 = scalar_lea.sflag (!%p3796_p1), [#allocation3], %s3393_s7  ;;  %s3400_s28 = scalar_lea.vmem (!%p3796_p1), [#allocation2], %s3396_s14 }
  0x94   : > { %3046 = dma.done.wait (%p3797_p8), %s485_s21, 512  }
  0x95   : > { %3048 = vsyncadd (%p3797_p8), %s485_s21, 4294966784  ;;  %s493_s0 = sand.u32 1, %s3197_s17   ;;  %s497_s19 = scalar_lea.vmem [#allocation5], %s3396_s14 }
  0x96   : > { %s494_s27 = scalar_lea.sflag [#allocation6], %s493_s0 }
  0x97   : > { %3050 = dma.done.wait (%p3797_p8), %s494_s27, 512  }
  0x98   : > { %3052 = vsyncadd (%p3797_p8), %s494_s27, 4294966784  ;;  %p3798_p9 = scmp.eq.s32.totalorder %s3197_s17, 0 }
  0x9a   : > { %3054 = dma.done.wait (%p3798_p9), [#allocation6], 16   ;;  %p3799_p10 = pmov %p3798_p9 }
  0x9b   : > { %p3800_p2 = pmov %p3798_p9 }
  0x9c   : > { %3056 = vsyncadd (%p3799_p10), [#allocation6], 4294967280 }
  0x9d   : > { %3058 = dma.done.wait (%p3800_p2), [#allocation9], 256   ;;  %p3801_p0 = pmov %p3800_p2 }
  0x9e   : > { %v2805_v0 = vld [vmem:[%s3749_s2] sm:$0xff]   ;;  %v2806_v1 = vld [vmem:[%s3749_s2 + $0x8] sm:$0xff]   ;;  %vm594_vm0 = vcmask 261120   ;;  %v561_v4 = vld [vmem:[%s3400_s28 + $0x10] sm:$0xff]  ;;  %v3089_v16 = vmov 0.0   ;;  %vm3090_vm1 = vmmov 0  }
  0x9f   : > { %3060 = vsyncadd (%p3801_p0), [#allocation9], 4294967040  ;;  %2534 = vmatprep.subr.bf16.mxu1 %v2805_v0  ;;  %v559_v2 = vld [vmem:[%s3400_s28] sm:$0xff]  ;;  %v560_v3 = vld [vmem:[%s3400_s28 + $0x8] sm:$0xff]  ;;  %2550 = vmatprep.subr.bf16.mxu0 %v3089_v16  ;;  %vm732_vm2 = vcmask 64512   ;;  %s3091_s0 = smov 96  }
  0xa0   : > { %2535 = vmatpush3.bf16.msra.mxu1 %v2805_v0  ;;  %v3429_v5 = vpack.c.bf16 %v560_v3, %v559_v2  ;;  %v562_v6 = vld [vmem:[%s3400_s28 + $0x18] sm:$0xff]  ;;  %v2807_v7 = vld [vmem:[%s3751_s4] sm:$0xff]   ;;  %v566_v9 = vld [vmem:[%s497_s19 + $0x8] sm:$0xff]  ;;  %2552 = vmatprep.mubr.msk.bf16.mxu0 %vm3090_vm1, %v3089_v16  ;;  %s3092_s27 = smov 120   ;;  %vm831_vm3 = vcmask 130048   ;;  %s3094_s13 = smov 112  }
  0xa1   : > { %2536 = vmatprep.subr.bf16.mxu1 %v2806_v1  ;;  %v565_v8 = vld [vmem:[%s497_s19] sm:$0xff]  ;;  %v3437_v10 = vpack.c.bf16 %v562_v6, %v561_v4  ;;  %v2808_v11 = vld [vmem:[%s3751_s4 + $0x8] sm:$0xff]   ;;  %v567_v13 = vld [vmem:[%s497_s19 + $0x10] sm:$0xff]  ;;  %s3095_s29 = smov 80   ;;  %vm1234_vm4 = vcmask 1043456   ;;  %s3096_s23 = smov 104  }
  0xa2   : > { %2538 = vmatprep.mubr.msk.bf16.mxu1 %vm594_vm0, %v3429_v5  ;;  %v569_v12 = vpack.c.bf16 %v566_v9, %v565_v8  ;;  %v568_v14 = vld [vmem:[%s497_s19 + $0x18] sm:$0xff]  ;;  %v2404_v18 = vld [vmem:[%s3750_s3] ss:$0 sm:$0xff]  ;;  %s3093_s19 = smov 88   ;;  %s3097_s18 = smov 72   ;;  %vm2191_vm9 = vcmask 523264  }
  0xa3   : > { %v570_v15 = vpack.c.bf16 %v568_v14, %v567_v13  ;;  %v2409_v29 = vld [vmem:[%s3752_s5] ss:$0 sm:$0xff]  ;;  %s3802_s21 = sld [smem:[#allocation23_spill]]  ;;  %s3804_s24 = sld [smem:[#allocation25_spill]] }
  0xa4   : > { %2537 = vmatpush3.bf16.msra.mxu1 %v2806_v1  ;;  %s554_s10 = scalar_lea.vmem [#allocation10], %s3396_s14  ;;  %s2467_s25 = sshll.u32 %s3197_s17, 9 }
  0xa5   : > { %2542 = vmatprep.subr.bf16.mxu1 %v2807_v7  ;;  %s2270_s20 = sshll.u32 %s554_s10, 4  ;;  %s3806_s17 = sld [smem:[#allocation26_spill]]  ;;  %s3691_s20 = int_to_ptr.vmem [resolvable:$true] %s2270_s20 }
  0xa6   : > { %s3001_s11 = scalar_lea.vmem %s3691_s20, 512 }
  0xa7   : > { %2539 = vmatmul.mubr.msk.bf16.vlgmr.msra.gmra.mrb[0].mxu1 %vm594_vm0, %v3437_v10  ;;  %p3002_p7 = scmp.ne.s32.totalorder %s3691_s20, %s3001_s11 }
  0xa8   : > { %2543 = vmatpush3.bf16.msra.mxu1 %v2807_v7  ;;  %2546 = vmatprep.mubr.msk.bf16.mxu1 %vm594_vm0, %v569_v12 }
  0xa9   : > { %2544 = vmatprep.subr.bf16.mxu1 %v2808_v11 }
  0xab   : > { %s3699_s22 = scalar_lea.hbm %s3806_s17, %s2467_s25 }
  0xac   : > { %2545 = vmatpush3.bf16.msra.mxu1 %v2808_v11 }
  0xad   : > { %2556 = vmatprep.subr.bf16.mxu1 %v3089_v16 }
  0xaf   : > { %2547 = vmatmul.mubr.msk.bf16.vlgmr.msra.gmra.mrb[4].mxu1 %vm594_vm0, %v570_v15 }
  0xb0   : > { %2558 = vmatprep.mubr.msk.bf16.mxu1 %vm3090_vm1, %v3089_v16 }
 0x17a   : > { %v2540_v17 = vpop.f32.mrb[0].mxu1 }
 0x17b   : > { %v635_v19 = vpop.f32.mrb[1].mxu1  ;;  %v644_v21 = vadd.f32 %v2540_v17, %v2404_v18 }
 0x17c   : > { %v2541_v20 = vpop.f32.mrb[2].mxu1  ;;  %v636_v24 = vadd.f32 %v2404_v18, %v635_v19 }
 0x17d   : > { %v647_v22 = vadd.f32 %v2541_v20, %v2404_v18  ;;  %v638_v23 = vpop.f32.mrb[3].mxu1 }
 0x17e   : > { %v639_v25 = vadd.f32 %v2404_v18, %v638_v23 }
 0x17f   : > { %v3455_v26 = vpack.c.bf16 %v647_v22, %v644_v21 }
 0x180   : > { %v3457_v27 = vpack.c.bf16 %v639_v25, %v636_v24 }
 0x182   : > { %v2548_v28 = vpop.f32.mrb[4].mxu1 }
 0x183   : > { %v713_v30 = vpop.f32.mrb[5].mxu1  ;;  %v722_v32 = vadd.f32 %v2548_v28, %v2409_v29 }
 0x184   : > { %v2549_v31 = vpop.f32.mrb[6].mxu1  ;;  %v714_v35 = vadd.f32 %v2409_v29, %v713_v30 }
 0x185   : > { %v725_v33 = vadd.f32 %v2549_v31, %v2409_v29  ;;  %v716_v34 = vpop.f32.mrb[7].mxu1 }
 0x186   : > { %v717_v36 = vadd.f32 %v2409_v29, %v716_v34 }
 0x187   : > { %v3462_v37 = vpack.c.bf16 %v725_v33, %v722_v32 }
 0x188   : > { %v3464_v38 = vpack.c.bf16 %v717_v36, %v714_v35 }
 0x189   : > { %919 = vrot.lane.b32.xlu1 %v3462_v37, %s3091_s0  ;;  %v784_v39 = vsel %vm732_vm2, %v3462_v37, 0 }
 0x18a   : > { %2557 = vmatpush3.bf16.xpose.msra.mxu1 %v784_v39  ;;  %v737_v40 = vsel %vm732_vm2, %v3464_v38, 0 }
 0x18b   : > { %2551 = vmatpush3.bf16.xpose.msra.mxu0 %v737_v40  ;;  %2568 = vmatprep.subr.bf16.mxu1 %v3089_v16 }
 0x18c   : > { %2562 = vmatprep.subr.bf16.mxu0 %v3089_v16 }
 0x18d   : > { %1032 = vrot.lane.b32.xlu1 %v3462_v37, %s3092_s27 }
 0x191   : > { %2559 = vmatmul.mubr.msk.bf16.vlgmr.msra.gmra.mrb[8].mxu1 %vm732_vm2, %v3455_v26 }
 0x192   : > { %2553 = vmatmul.mubr.msk.bf16.vlgmr.msra.gmra.mrb[0].mxu0 %vm732_vm2, %v3457_v27  ;;  %2570 = vmatprep.mubr.msk.bf16.mxu1 %vm3090_vm1, %v3089_v16 }
 0x193   : > { %2564 = vmatprep.mubr.msk.bf16.mxu0 %vm3090_vm1, %v3089_v16 }
 0x1fb   : > { %v920_v41 = vpop.permute.xlu1 %919 }
 0x1fc   : > { %2569 = vmatpush3.bf16.msra.mxu1 %v920_v41 }
 0x1fd   : > { %2580 = vmatprep.subr.bf16.mxu1 %v3089_v16 }
 0x1ff   : > { %v1033_v58 = vpop.permute.xlu1 %1032 }
 0x200   : > { %v1038_v7 = vsel %vm732_vm2, %v1033_v58, 0 }
 0x264   : > { %v820_v42 = vpop.f32.mrb[8].mxu1 }
 0x265   : > { %v829_v43 = vmul.f32 0.35355338, %v820_v42  ;;  %v773_v44 = vpop.f32.mrb[0].mxu0  ;;  %v2560_v45 = vpop.f32.mrb[9].mxu1 }
 0x266   : > { %v827_v46 = vmul.f32 0.35355338, %v773_v44  ;;  %v2554_v47 = vpop.f32.mrb[1].mxu0  ;;  %v823_v48 = vpop.f32.mrb[10].mxu1 }
 0x267   : > { %v830_v49 = vmul.f32 0.35355338, %v823_v48  ;;  %v776_v50 = vpop.f32.mrb[2].mxu0  ;;  %v2561_v51 = vpop.f32.mrb[11].mxu1  ;;  %v838_v52 = vsel %vm831_vm3, %v829_v43, -inf }
 0x268   : > { %839 = vmax.xlane.f32.xlu0 %v838_v52  ;;  %v2555_v53 = vpop.f32.mrb[3].mxu0  ;;  %v832_v54 = vsel %vm831_vm3, %v827_v46, -inf  ;;  %v828_v56 = vmul.f32 0.35355338, %v776_v50 }
 0x269   : > { %833 = vmax.xlane.f32.xlu1 %v832_v54  ;;  %v841_v55 = vsel %vm831_vm3, %v830_v49, -inf }
 0x26a   : > { %v835_v57 = vsel %vm831_vm3, %v828_v56, -inf }
 0x26c   : > { %842 = vmax.xlane.f32.xlu0 %v841_v55 }
 0x27a   : > { %871 = vrot.lane.b32.xlu1 %v3464_v38, %s3091_s0 }
 0x27e   : > { %978 = vrot.lane.b32.xlu1 %v3457_v27, %s3092_s27 }
 0x282   : > { %1030 = vrot.lane.b32.xlu0 %v3455_v26, %s3092_s27  ;;  %1170 = vrot.lane.b32.xlu1 %v3462_v37, %s3093_s19 }
 0x2a1   : > { %836 = vmax.xlane.f32.xlu0 %v835_v57 }
 0x2b7   : > { %980 = vrot.lane.b32.xlu0 %v3464_v38, %s3092_s27 }
 0x2f5   : > { %v840_v59 = vpop.xlane.xlu0 %839 }
 0x2f6   : > { %v846_v60 = vsub.f32 %v829_v43, %v840_v59  ;;  %v834_v61 = vpop.xlane.xlu1 %833 }
 0x2f7   : > { %v844_v12 = vsub.f32 %v827_v46, %v834_v61 }
 0x2f8   : > { %v852_v62 = vmul.f32 1.442695, %v846_v60 }
 0x2f9   : > { %v843_v63 = vpop.xlane.xlu0 %842  ;;  %v848_v13 = vmul.f32 1.442695, %v844_v12 }
 0x2fa   : > { %v847_v0 = vsub.f32 %v830_v49, %v843_v63  ;;  %v872_v1 = vpop.permute.xlu1 %871  ;;  %2817 = vpow2.f32 %v852_v62 }
 0x2fb   : > { %2563 = vmatpush3.bf16.msra.mxu0 %v872_v1 }
 0x2fc   : > { %v854_v2 = vmul.f32 1.442695, %v847_v0  ;;  %2574 = vmatprep.subr.bf16.mxu0 %v3089_v16 }
 0x2fd   : > { %v1031_v9 = vpop.permute.xlu0 %1030 }
 0x2fe   : > { %2819 = vpow2.f32 %v854_v2  ;;  %v979_v8 = vpop.permute.xlu1 %978 }
 0x2ff   : > { %2821 = vpow2.f32 %v848_v13 }
 0x302   : > { %v1171_v11 = vpop.permute.xlu1 %1170 }
 0x304   : > { %v3500_v3 = vpop.eup %2817 }
 0x305   : > { %v862_v52 = vsel %vm831_vm3, %v3500_v3, 0.0 }
 0x308   : > { %v3502_v4 = vpop.eup %2819 }
 0x309   : > { %v869_v6 = vpack.c.bf16 %v3502_v4, %v3500_v3  ;;  %v2822_v18 = vpop.eup %2821  ;;  %v865_v53 = vsel %vm831_vm3, %v3502_v4, 0.0 }
 0x30a   : > { %v856_v50 = vsel %vm831_vm3, %v2822_v18, 0.0 }
 0x30b   : > { %2571 = vmatmul.mubr.msk.bf16.vlgmr.msra.gmra.mrb[12].mxu1 %vm831_vm3, %v869_v6 }
 0x30c   : > { %2581 = vmatpush3.bf16.xpose.msra.mxu1 %v1038_v7  ;;  %2582 = vmatprep.mubr.msk.bf16.mxu1 %vm3090_vm1, %v3089_v16 }
 0x30d   : > { %2592 = vmatprep.subr.bf16.mxu1 %v3089_v16 }
 0x313   : > { %2583 = vmatmul.mubr.msk.bf16.vlgmr.msra.gmra.mrb[16].mxu1 %vm732_vm2, %v1031_v9 }
 0x314   : > { %2593 = vmatpush3.bf16.msra.mxu1 %v1171_v11  ;;  %2594 = vmatprep.mubr.msk.bf16.mxu1 %vm3090_vm1, %v3089_v16 }
 0x315   : > { %2610 = vmatprep.subr.bf16.mxu1 %v3089_v16 }
 0x32e   : > { %v837_v14 = vpop.xlane.xlu0 %836 }
 0x32f   : > { %v845_v15 = vsub.f32 %v828_v56, %v837_v14 }
 0x331   : > { %v850_v17 = vmul.f32 1.442695, %v845_v15 }
 0x332   : > { %v981_v20 = vpop.permute.xlu0 %980 }
 0x333   : > { %2823 = vpow2.f32 %v850_v17  ;;  %v986_v22 = vsel %vm732_vm2, %v981_v20, 0 }
 0x33d   : > { %v2824_v19 = vpop.eup %2823 }
 0x33e   : > { %v868_v21 = vpack.c.bf16 %v2824_v19, %v2822_v18  ;;  %v859_v54 = vsel %vm831_vm3, %v2824_v19, 0.0 }
 0x340   : > { %2565 = vmatmul.mubr.msk.bf16.vlgmr.msra.gmra.mrb[4].mxu0 %vm831_vm3, %v868_v21 }
 0x341   : > { %2575 = vmatpush3.bf16.xpose.msra.mxu0 %v986_v22  ;;  %2576 = vmatprep.mubr.msk.bf16.mxu0 %vm3090_vm1, %v3089_v16 }
 0x342   : > { %2586 = vmatprep.subr.bf16.mxu0 %v3089_v16 }
 0x348   : > { %2577 = vmatmul.mubr.msk.bf16.vlgmr.msra.gmra.mrb[8].mxu0 %vm732_vm2, %v979_v8 }
 0x349   : > { %2588 = vmatprep.mubr.msk.bf16.mxu0 %vm3090_vm1, %v3089_v16 }
 0x3de   : > { %v3523_v23 = vpop.f32.mrb[12].mxu1 }
 0x3df   : > { %v2572_v24 = vpop.f32.mrb[13].mxu1 }
 0x3e0   : > { %v3525_v25 = vpop.f32.mrb[14].mxu1 }
 0x3e1   : > { %v2573_v28 = vpop.f32.mrb[15].mxu1 }
 0x3e6   : > { %v1074_v29 = vpop.f32.mrb[16].mxu1 }
 0x3e7   : > { %v1083_v30 = vmul.f32 0.35355338, %v1074_v29  ;;  %v2584_v31 = vpop.f32.mrb[17].mxu1 }
 0x3e8   : > { %v1077_v32 = vpop.f32.mrb[18].mxu1 }
 0x3e9   : > { %v1084_v33 = vmul.f32 0.35355338, %v1077_v32  ;;  %v2585_v34 = vpop.f32.mrb[19].mxu1  ;;  %v1091_v35 = vsel %vm831_vm3, %v1083_v30, -inf }
 0x3ea   : > { %1092 = vmax.xlane.f32.xlu1 %v1091_v35 }
 0x3eb   : > { %v1094_v36 = vsel %vm831_vm3, %v1084_v33, -inf }
 0x3ec   : > { %1095 = vmax.xlane.f32.xlu0 %v1094_v36 }
 0x3fb   : > { %1345 = vrot.lane.b32.xlu1 %v3457_v27, %s3094_s13 }
 0x3ff   : > { %1398 = vrot.lane.b32.xlu1 %v3462_v37, %s3094_s13 }
 0x402   : > { %1347 = vrot.lane.b32.xlu0 %v3464_v38, %s3094_s13 }
 0x403   : > { %1396 = vrot.lane.b32.xlu1 %v3455_v26, %s3094_s13 }
 0x413   : > { %v3533_v39 = vpop.f32.mrb[4].mxu0 }
 0x414   : > { %v2566_v40 = vpop.f32.mrb[5].mxu0 }
 0x415   : > { %v3535_v41 = vpop.f32.mrb[6].mxu0 }
 0x416   : > { %v2567_v42 = vpop.f32.mrb[7].mxu0 }
 0x41b   : > { %v1022_v43 = vpop.f32.mrb[8].mxu0 }
 0x41c   : > { %v2578_v44 = vpop.f32.mrb[9].mxu0  ;;  %v1081_v49 = vmul.f32 0.35355338, %v1022_v43 }
 0x41d   : > { %v1025_v45 = vpop.f32.mrb[10].mxu0  ;;  %v1227_v44 = vld [vmem:[%s3753_s6 + $0x4] sm:$0xf] }
 0x41e   : > { %v1082_v46 = vmul.f32 0.35355338, %v1025_v45  ;;  %v2579_v47 = vpop.f32.mrb[11].mxu0  ;;  %v1085_v51 = vsel %vm831_vm3, %v1081_v49, -inf  ;;  %v1236_v45 = vsel %vm1234_vm4, %v1227_v44, 0 }
 0x420   : > { %v1088_v48 = vsel %vm831_vm3, %v1082_v46, -inf }
 0x421   : > { %1089 = vmax.xlane.f32.xlu0 %v1088_v48 }
 0x425   : > { %857 = vadd.xlane.f32.xlu0 %v856_v50 }
 0x427   : > { %1086 = vmax.xlane.f32.xlu1 %v1085_v51 }
 0x429   : > { %863 = vadd.xlane.f32.xlu0 %v862_v52 }
 0x42d   : > { %866 = vadd.xlane.f32.xlu0 %v865_v53 }
 0x438   : > { %1123 = vrot.lane.b32.xlu1 %v3464_v38, %s3093_s19  ;;  %s3803_s19 = sld [smem:[#allocation24_spill]] }
 0x45c   : > { %860 = vadd.xlane.f32.xlu1 %v859_v54 }
 0x46d   : > { %1536 = vrot.lane.b32.xlu1 %v3462_v37, %s3095_s29 }
 0x477   : > { %v1093_v55 = vpop.xlane.xlu1 %1092 }
 0x478   : > { %v1099_v56 = vsub.f32 %v1083_v30, %v1093_v55 }
 0x479   : > { %v1096_v57 = vpop.xlane.xlu0 %1095 }
 0x47a   : > { %v1105_v58 = vmul.f32 1.442695, %v1099_v56  ;;  %v1100_v59 = vsub.f32 %v1084_v33, %v1096_v57 }
 0x47b   : > { %v1346_v2 = vpop.permute.xlu1 %1345 }
 0x47c   : > { %2825 = vpow2.f32 %v1105_v58  ;;  %v1107_v60 = vmul.f32 1.442695, %v1100_v59 }
 0x47d   : > { %v1348_v0 = vpop.permute.xlu0 %1347 }
 0x47e   : > { %2827 = vpow2.f32 %v1107_v60  ;;  %v1353_v3 = vsel %vm732_vm2, %v1348_v0, 0 }
 0x47f   : > { %v1399_v4 = vpop.permute.xlu1 %1398 }
 0x480   : > { %v1404_v6 = vsel %vm732_vm2, %v1399_v4, 0 }
 0x483   : > { %v1397_v7 = vpop.permute.xlu1 %1396 }
 0x486   : > { %v2826_v61 = vpop.eup %2825 }
 0x487   : > { %v1115_v62 = vsel %vm831_vm3, %v2826_v61, 0.0 }
 0x488   : > { %v2828_v63 = vpop.eup %2827  ;;  %1116 = vadd.xlane.f32.xlu0 %v1115_v62 }
 0x489   : > { %v1122_v1 = vpack.c.bf16 %v2828_v63, %v2826_v61  ;;  %v1118_v32 = vsel %vm831_vm3, %v2828_v63, 0.0 }
 0x48b   : > { %2595 = vmatmul.mubr.msk.bf16.vlgmr.msra.gmra.mrb[20].mxu1 %vm831_vm3, %v1122_v1 }
 0x48c   : > { %2611 = vmatpush3.bf16.xpose.msra.mxu1 %v1353_v3  ;;  %2612 = vmatprep.mubr.msk.bf16.mxu1 %vm3090_vm1, %v3089_v16 }
 0x48d   : > { %2616 = vmatprep.subr.bf16.mxu1 %v3089_v16 }
 0x493   : > { %2613 = vmatmul.mubr.msk.bf16.vlgmr.msra.gmra.mrb[24].mxu1 %vm732_vm2, %v1346_v2 }
 0x494   : > { %2617 = vmatpush3.bf16.xpose.msra.mxu1 %v1404_v6  ;;  %2618 = vmatprep.mubr.msk.bf16.mxu1 %vm3090_vm1, %v3089_v16 }
 0x495   : > { %2628 = vmatprep.subr.bf16.mxu1 %v3089_v16 }
 0x49b   : > { %2619 = vmatmul.mubr.msk.bf16.vlgmr.msra.gmra.mrb[28].mxu1 %vm732_vm2, %v1397_v7 }
 0x49c   : > { %2630 = vmatprep.mubr.msk.bf16.mxu1 %vm3090_vm1, %v3089_v16 }
 0x4ae   : > { %v1090_v8 = vpop.xlane.xlu0 %1089 }
 0x4af   : > { %v1098_v9 = vsub.f32 %v1082_v46, %v1090_v8  ;;  %v976_v46 = vld [vmem:[%s3753_s6] sm:$0xf] }
 0x4b1   : > { %v1103_v12 = vmul.f32 1.442695, %v1098_v9 }
 0x4b2   : > { %v858_v11 = vpop.xlane.xlu0 %857 }
 0x4b3   : > { %2829 = vpow2.f32 %v1103_v12 }
 0x4b4   : > { %v1087_v13 = vpop.xlane.xlu1 %1086 }
 0x4b5   : > { %v1097_v14 = vsub.f32 %v1081_v49, %v1087_v13 }
 0x4b6   : > { %v864_v15 = vpop.xlane.xlu0 %863 }
 0x4b7   : > { %v1101_v17 = vmul.f32 1.442695, %v1097_v14  ;;  %2831 = vrcp.f32 %v864_v15 }
 0x4b8   : > { %v1124_v18 = vpop.permute.xlu1 %1123 }
 0x4b9   : > { %2833 = vpow2.f32 %v1101_v17  ;;  %2587 = vmatpush3.bf16.msra.mxu0 %v1124_v18 }
 0x4ba   : > { %v867_v19 = vpop.xlane.xlu0 %866  ;;  %2714 = vmatprep.subr.msk.bf16.mxu0 %vm1234_vm4, %v1227_v44 }
 0x4bb   : > { %2835 = vrcp.f32 %v867_v19 }
 0x4bc   : > { %2837 = vrcp.f32 %v858_v11 }
 0x4bd   : > { %v2830_v20 = vpop.eup %2829 }
 0x4be   : > { %v1112_v34 = vsel %vm831_vm3, %v2830_v20, 0.0 }
 0x4c1   : > { %v2832_v21 = vpop.eup %2831 }
 0x4c2   : > { %v3565_v30 = vmul.f32 %v2832_v21, %v3523_v23 }
 0x4c3   : > { %v2834_v22 = vpop.eup %2833 }
 0x4c4   : > { %v1109_v24 = vsel %vm831_vm3, %v2834_v22, 0.0  ;;  %v1121_v28 = vpack.c.bf16 %v2830_v20, %v2834_v22  ;;  %v1294_v22 = vsel %vm1234_vm4, %v976_v46, 0 }
 0x4c5   : > { %v2836_v29 = vpop.eup %2835  ;;  %1110 = vadd.xlane.f32.xlu0 %v1109_v24 }
 0x4c6   : > { %v3568_v31 = vmul.f32 %v2836_v29, %v3525_v25  ;;  %2589 = vmatmul.mubr.msk.bf16.vlgmr.msra.gmra.mrb[12].mxu0 %vm831_vm3, %v1121_v28  ;;  %v2838_v23 = vpop.eup %2837 }
 0x4c7   : > { %v970_v40 = vmul.f32 %v2838_v23, %v3533_v39  ;;  %2599 = vmatpush3.bf16.msra.mxu0 %v1236_v45 }
 0x4c8   : > { %v975_v33 = vpack.c.bf16 %v3568_v31, %v3565_v30  ;;  %2715 = vmatprep.subr.msk.bf16.mxu0 %vm1234_vm4, %v976_v46 }
 0x4c9   : > { %1119 = vadd.xlane.f32.xlu0 %v1118_v32 }
 0x4cd   : > { %1113 = vadd.xlane.f32.xlu0 %v1112_v34 }
 0x4e9   : > { %v861_v35 = vpop.xlane.xlu1 %860 }
 0x4ea   : > { %2839 = vrcp.f32 %v861_v35 }
 0x4ed   : > { %v1537_v36 = vpop.permute.xlu1 %1536 }
 0x4ee   : > { %2629 = vmatpush3.bf16.msra.mxu1 %v1537_v36 }
 0x4ef   : > { %2640 = vmatprep.subr.bf16.mxu1 %v3089_v16 }
 0x4f4   : > { %v2840_v25 = vpop.eup %2839 }
 0x4f5   : > { %v971_v42 = vmul.f32 %v2840_v25, %v3535_v41 }
 0x4f7   : > { %v974_v43 = vpack.c.bf16 %v971_v42, %v970_v40 }
 0x515   : > { %v1117_v39 = vpop.xlane.xlu0 %1116 }
 0x516   : > { %2841 = vrcp.f32 %v1117_v39 }
 0x520   : > { %v2842_v50 = vpop.eup %2841 }
 0x552   : > { %v1111_v47 = vpop.xlane.xlu0 %1110 }
 0x556   : > { %v1120_v41 = vpop.xlane.xlu0 %1119 }
 0x557   : > { %2843 = vrcp.f32 %v1120_v41 }
 0x558   : > { %2845 = vrcp.f32 %v1111_v47 }
 0x55a   : > { %v1114_v11 = vpop.xlane.xlu0 %1113 }
 0x55b   : > { %2847 = vrcp.f32 %v1114_v11 }
 0x55e   : > { %v1210_v48 = vpop.f32.mrb[20].mxu1 }
 0x55f   : > { %v2596_v49 = vpop.f32.mrb[21].mxu1  ;;  %v1223_v54 = vmul.f32 %v2842_v50, %v1210_v48  ;;  %v1593_v50 = vld [vmem:[%s3753_s6 + $0x8] sm:$0xf] }
 0x560   : > { %v1213_v51 = vpop.f32.mrb[22].mxu1 }
 0x561   : > { %v2844_v52 = vpop.eup %2843  ;;  %v2597_v53 = vpop.f32.mrb[23].mxu1 }
 0x562   : > { %v1224_v55 = vmul.f32 %v2844_v52, %v1213_v51  ;;  %v2846_v13 = vpop.eup %2845  ;;  %v1601_v51 = vsel %vm1234_vm4, %v1593_v50, 0 }
 0x564   : > { %v1226_v56 = vpack.c.bf16 %v1224_v55, %v1223_v54 }
 0x565   : > { %v2848_v15 = vpop.eup %2847 }
 0x566   : > { %v1389_v57 = vpop.f32.mrb[24].mxu1 }
 0x567   : > { %v1447_v58 = vmul.f32 0.35355338, %v1389_v57  ;;  %v2614_v59 = vpop.f32.mrb[25].mxu1 }
 0x568   : > { %v1392_v60 = vpop.f32.mrb[26].mxu1 }
 0x569   : > { %v1448_v61 = vmul.f32 0.35355338, %v1392_v60  ;;  %v2615_v62 = vpop.f32.mrb[27].mxu1  ;;  %v1451_v63 = vsel %vm831_vm3, %v1447_v58, -inf }
 0x56a   : > { %1452 = vmax.xlane.f32.xlu0 %v1451_v63 }
 0x56b   : > { %v1454_v0 = vsel %vm831_vm3, %v1448_v61, -inf }
 0x56e   : > { %v1440_v1 = vpop.f32.mrb[28].mxu1  ;;  %1455 = vmax.xlane.f32.xlu0 %v1454_v0 }
 0x56f   : > { %v1449_v2 = vmul.f32 0.35355338, %v1440_v1  ;;  %v2620_v3 = vpop.f32.mrb[29].mxu1 }
 0x570   : > { %v1443_v4 = vpop.f32.mrb[30].mxu1 }
 0x571   : > { %v1450_v6 = vmul.f32 0.35355338, %v1443_v4  ;;  %v2621_v7 = vpop.f32.mrb[31].mxu1  ;;  %v1457_v8 = vsel %vm831_vm3, %v1449_v2, -inf }
 0x572   : > { %1458 = vmax.xlane.f32.xlu0 %v1457_v8 }
 0x573   : > { %v1460_v9 = vsel %vm831_vm3, %v1450_v6, -inf }
 0x576   : > { %1461 = vmax.xlane.f32.xlu0 %v1460_v9 }
 0x58c   : > { %1489 = vrot.lane.b32.xlu0 %v3464_v38, %s3095_s29 }
 0x599   : > { %v1163_v12 = vpop.f32.mrb[12].mxu0 }
 0x59a   : > { %v2590_v14 = vpop.f32.mrb[13].mxu0  ;;  %v1221_v18 = vmul.f32 %v2846_v13, %v1163_v12 }
 0x59b   : > { %v1166_v17 = vpop.f32.mrb[14].mxu0 }
 0x59c   : > { %v1222_v19 = vmul.f32 %v2848_v15, %v1166_v17  ;;  %v2591_v20 = vpop.f32.mrb[15].mxu0 }
 0x59e   : > { %v1225_v21 = vpack.c.bf16 %v1222_v19, %v1221_v18 }
 0x5a0   : > { %2600 = vmatprep.mubr.msk.bf16.mxu0 %vm732_vm2, %v1225_v21 }
 0x5a1   : > { %2601 = vmatmul.mubr.msk.bf16.vlgmr.msra.gmra.mrb[16].mxu0 %vm732_vm2, %v1226_v56 }
 0x5a2   : > { %2606 = vmatprep.mubr.msk.bf16.mxu0 %vm732_vm2, %v974_v43  ;;  %2605 = vmatpush3.bf16.msra.mxu0 %v1294_v22 }
 0x5a3   : > { %2622 = vmatprep.subr.bf16.mxu0 %v3089_v16 }
 0x5ad   : > { %2607 = vmatmul.mubr.msk.bf16.vlgmr.msra.gmra.mrb[16].mxu0 %vm732_vm2, %v975_v33 }
 0x5ae   : > { %2624 = vmatprep.mubr.msk.bf16.mxu0 %vm3090_vm1, %v3089_v16 }
 0x5f7   : > { %v1453_v24 = vpop.xlane.xlu0 %1452 }
 0x5f8   : > { %v1463_v28 = vsub.f32 %v1447_v58, %v1453_v24 }
 0x5fa   : > { %v1467_v29 = vmul.f32 1.442695, %v1463_v28 }
 0x5fb   : > { %v1456_v32 = vpop.xlane.xlu0 %1455 }
 0x5fc   : > { %2849 = vpow2.f32 %v1467_v29  ;;  %v1464_v34 = vsub.f32 %v1448_v61, %v1456_v32 }
 0x5fe   : > { %v1469_v35 = vmul.f32 1.442695, %v1464_v34 }
 0x5ff   : > { %v1459_v36 = vpop.xlane.xlu0 %1458 }
 0x600   : > { %2851 = vpow2.f32 %v1469_v35  ;;  %v1465_v23 = vsub.f32 %v1449_v2, %v1459_v36 }
 0x602   : > { %v1471_v25 = vmul.f32 1.442695, %v1465_v23 }
 0x603   : > { %v1462_v40 = vpop.xlane.xlu0 %1461 }
 0x604   : > { %2853 = vpow2.f32 %v1471_v25  ;;  %v1466_v42 = vsub.f32 %v1450_v6, %v1462_v40 }
 0x606   : > { %v2850_v30 = vpop.eup %2849  ;;  %v1473_v31 = vmul.f32 1.442695, %v1466_v42 }
 0x607   : > { %v1490_v33 = vpop.permute.xlu0 %1489  ;;  %v1475_v43 = vsel %vm831_vm3, %v2850_v30, 0.0 }
 0x608   : > { %2855 = vpow2.f32 %v1473_v31  ;;  %1476 = vadd.xlane.f32.xlu0 %v1475_v43  ;;  %2623 = vmatpush3.bf16.msra.mxu0 %v1490_v33 }
 0x609   : > { %2716 = vmatprep.subr.msk.bf16.mxu0 %vm1234_vm4, %v1593_v50 }
 0x60a   : > { %v2852_v44 = vpop.eup %2851 }
 0x60b   : > { %v1478_v45 = vsel %vm831_vm3, %v2852_v44, 0.0  ;;  %v1487_v46 = vpack.c.bf16 %v2852_v44, %v2850_v30 }
 0x60c   : > { %1479 = vadd.xlane.f32.xlu1 %v1478_v45 }
 0x60d   : > { %2625 = vmatmul.mubr.msk.bf16.vlgmr.msra.gmra.mrb[20].mxu0 %vm831_vm3, %v1487_v46 }
 0x60e   : > { %v2854_v39 = vpop.eup %2853  ;;  %2635 = vmatpush3.bf16.msra.mxu0 %v1601_v51 }
 0x60f   : > { %v1481_v47 = vsel %vm831_vm3, %v2854_v39, 0.0  ;;  %2646 = vmatprep.subr.bf16.mxu0 %v3089_v16 }
 0x610   : > { %1482 = vadd.xlane.f32.xlu0 %v1481_v47 }
 0x612   : > { %v2856_v41 = vpop.eup %2855 }
 0x613   : > { %v1484_v48 = vsel %vm831_vm3, %v2856_v41, 0.0  ;;  %v1488_v49 = vpack.c.bf16 %v2856_v41, %v2854_v39 }
 0x614   : > { %1485 = vadd.xlane.f32.xlu0 %v1484_v48 }
 0x615   : > { %2631 = vmatmul.mubr.msk.bf16.vlgmr.msra.gmra.mrb[32].mxu1 %vm831_vm3, %v1488_v49 }
 0x616   : > { %2642 = vmatprep.mubr.msk.bf16.mxu1 %vm3090_vm1, %v3089_v16 }
 0x61d   : > { %1709 = vrot.lane.b32.xlu1 %v3462_v37, %s3096_s23 }
 0x621   : > { %1656 = vrot.lane.b32.xlu1 %v3457_v27, %s3096_s23 }
 0x625   : > { %1707 = vrot.lane.b32.xlu1 %v3455_v26, %s3096_s23 }
 0x62a   : > { %1658 = vrot.lane.b32.xlu0 %v3464_v38, %s3096_s23  ;;  %s3805_s23 = sld [smem:[#allocation19_spill]] }
 0x630   : > { %p3807_p6 = scmp.ne.s32.totalorder %s3805_s23, 0 }
 0x632   : > { %p3003_p12 = pnand %p3002_p7, %p3807_p6 }
 0x634   : > { %p3004_p13 = pneg %p3003_p12 }
 0x695   : > { %v1477_v52 = vpop.xlane.xlu0 %1476 }
 0x696   : > { %2857 = vrcp.f32 %v1477_v52 }
 0x699   : > { %v1480_v54 = vpop.xlane.xlu1 %1479 }
 0x69a   : > { %2859 = vrcp.f32 %v1480_v54 }
 0x69d   : > { %v1483_v53 = vpop.xlane.xlu0 %1482  ;;  %v1710_v56 = vpop.permute.xlu1 %1709 }
 0x69e   : > { %2861 = vrcp.f32 %v1483_v53  ;;  %v1715_v14 = vsel %vm732_vm2, %v1710_v56, 0  ;;  %v1904_v56 = vld [vmem:[%s3753_s6 + $0xc] sm:$0xf] }
 0x6a0   : > { %v2858_v59 = vpop.eup %2857 }
 0x6a1   : > { %v1486_v55 = vpop.xlane.xlu0 %1485  ;;  %v1657_v57 = vpop.permute.xlu1 %1656 }
 0x6a2   : > { %2863 = vrcp.f32 %v1486_v55 }
 0x6a4   : > { %v2860_v61 = vpop.eup %2859 }
 0x6a5   : > { %v1659_v27 = vpop.permute.xlu0 %1658  ;;  %v1708_v15 = vpop.permute.xlu1 %1707 }
 0x6a6   : > { %v1664_v26 = vsel %vm732_vm2, %v1659_v27, 0 }
 0x6a7   : > { %2641 = vmatpush3.bf16.xpose.msra.mxu1 %v1664_v26 }
 0x6a8   : > { %2652 = vmatprep.subr.bf16.mxu1 %v3089_v16  ;;  %v2862_v3 = vpop.eup %2861 }
 0x6ac   : > { %v2864_v8 = vpop.eup %2863 }
 0x6ae   : > { %2643 = vmatmul.mubr.msk.bf16.vlgmr.msra.gmra.mrb[36].mxu1 %vm732_vm2, %v1657_v57  ;;  %v1912_v57 = vsel %vm1234_vm4, %v1904_v56, 0 }
 0x6af   : > { %2654 = vmatprep.mubr.msk.bf16.mxu1 %vm3090_vm1, %v3089_v16 }
 0x6e0   : > { %v1529_v58 = vpop.f32.mrb[20].mxu0 }
 0x6e1   : > { %v2626_v60 = vpop.f32.mrb[21].mxu0  ;;  %v1587_v63 = vmul.f32 %v2858_v59, %v1529_v58 }
 0x6e2   : > { %v1532_v62 = vpop.f32.mrb[22].mxu0 }
 0x6e3   : > { %v1588_v0 = vmul.f32 %v2860_v61, %v1532_v62  ;;  %v2627_v1 = vpop.f32.mrb[23].mxu0 }
 0x6e5   : > { %v1591_v2 = vpack.c.bf16 %v1588_v0, %v1587_v63 }
 0x6e7   : > { %2636 = vmatprep.mubr.msk.bf16.mxu0 %vm732_vm2, %v1591_v2 }
 0x6e8   : > { %v1576_v4 = vpop.f32.mrb[32].mxu1 }
 0x6e9   : > { %v1589_v6 = vmul.f32 %v2862_v3, %v1576_v4  ;;  %v2632_v7 = vpop.f32.mrb[33].mxu1 }
 0x6ea   : > { %v1579_v9 = vpop.f32.mrb[34].mxu1 }
 0x6eb   : > { %v1590_v11 = vmul.f32 %v2864_v8, %v1579_v9  ;;  %v2633_v12 = vpop.f32.mrb[35].mxu1 }
 0x6ed   : > { %v1592_v13 = vpack.c.bf16 %v1590_v11, %v1589_v6 }
 0x6ef   : > { %2637 = vmatmul.mubr.msk.bf16.vlgmr.msra.gmra.mrb[16].mxu0 %vm732_vm2, %v1592_v13 }
 0x6f0   : > { %2647 = vmatpush3.bf16.xpose.msra.mxu0 %v1715_v14  ;;  %2648 = vmatprep.mubr.msk.bf16.mxu0 %vm3090_vm1, %v3089_v16 }
 0x6f1   : > { %2658 = vmatprep.subr.bf16.mxu0 %v3089_v16 }
 0x6f7   : > { %2649 = vmatmul.mubr.msk.bf16.vlgmr.msra.gmra.mrb[24].mxu0 %vm732_vm2, %v1708_v15 }
 0x6f8   : > { %2660 = vmatprep.mubr.msk.bf16.mxu0 %vm3090_vm1, %v3089_v16 }
 0x781   : > { %v1700_v17 = vpop.f32.mrb[36].mxu1 }
 0x782   : > { %v1758_v18 = vmul.f32 0.35355338, %v1700_v17  ;;  %v2644_v19 = vpop.f32.mrb[37].mxu1 }
 0x783   : > { %v1703_v20 = vpop.f32.mrb[38].mxu1  ;;  %v2809_v19 = vld [vmem:[%s3756_s9] sm:$0xff]  }
 0x784   : > { %v1759_v21 = vmul.f32 0.35355338, %v1703_v20  ;;  %v2645_v22 = vpop.f32.mrb[39].mxu1  ;;  %v1762_v24 = vsel %vm831_vm3, %v1758_v18, -inf  ;;  %v2810_v20 = vld [vmem:[%s3756_s9 + $0x8] sm:$0xff]  }
 0x785   : > { %1763 = vmax.xlane.f32.xlu0 %v1762_v24  ;;  %v2813_v22 = vld [vmem:[%s3759_s12] sm:$0xff]  }
 0x786   : > { %v1765_v28 = vsel %vm831_vm3, %v1759_v21, -inf }
 0x787   : > { %1766 = vmax.xlane.f32.xlu1 %v1765_v28  ;;  %v2438_v28 = vld [vmem:[#allocation7] ss:$0 sm:$0xff] }
 0x798   : > { %1847 = vrot.lane.b32.xlu1 %v3462_v37, %s3097_s18 }
 0x7ca   : > { %v1751_v29 = vpop.f32.mrb[24].mxu0 }
 0x7cb   : > { %v1760_v32 = vmul.f32 0.35355338, %v1751_v29  ;;  %v2650_v34 = vpop.f32.mrb[25].mxu0 }
 0x7cc   : > { %v1754_v35 = vpop.f32.mrb[26].mxu0 }
 0x7cd   : > { %v1761_v16 = vmul.f32 0.35355338, %v1754_v35  ;;  %v2651_v36 = vpop.f32.mrb[27].mxu0  ;;  %v1768_v23 = vsel %vm831_vm3, %v1760_v32, -inf }
 0x7ce   : > { %1769 = vmax.xlane.f32.xlu0 %v1768_v23 }
 0x7cf   : > { %v1771_v25 = vsel %vm831_vm3, %v1761_v16, -inf }
 0x7d2   : > { %1772 = vmax.xlane.f32.xlu0 %v1771_v25 }
 0x7e8   : > { %1800 = vrot.lane.b32.xlu0 %v3464_v38, %s3097_s18  ;;  %s2256_s18 = scalar_lea.sflag [#allocation4], %s3393_s7 }
 0x812   : > { %v1764_v40 = vpop.xlane.xlu0 %1763 }
 0x813   : > { %v1774_v42 = vsub.f32 %v1758_v18, %v1764_v40 }
 0x814   : > { %v1767_v30 = vpop.xlane.xlu1 %1766 }
 0x815   : > { %v1778_v31 = vmul.f32 1.442695, %v1774_v42  ;;  %v1775_v33 = vsub.f32 %v1759_v21, %v1767_v30  ;;  %v2811_v21 = vld [vmem:[#allocation8] sm:$0xff]   ;;  %v2812_v42 = vld [vmem:[#allocation8 + $0x8] sm:$0xff]  }
 0x816   : > { %v2814_v30 = vld [vmem:[%s3759_s12 + $0x8] sm:$0xff]  }
 0x817   : > { %2865 = vpow2.f32 %v1778_v31  ;;  %v1780_v37 = vmul.f32 1.442695, %v1775_v33  ;;  %v2815_v31 = vld [vmem:[%s3759_s12 + $0x10] sm:$0xff]  }
 0x818   : > { %v1848_v43 = vpop.permute.xlu1 %1847 }
 0x819   : > { %2867 = vpow2.f32 %v1780_v37  ;;  %2659 = vmatpush3.bf16.msra.mxu0 %v1848_v43  ;;  %v2448_v37 = vld [vmem:[%s3803_s19] ss:$0 sm:$0xff] }
 0x81a   : > { %2717 = vmatprep.subr.msk.bf16.mxu0 %vm1234_vm4, %v1904_v56 }
 0x821   : > { %v2866_v44 = vpop.eup %2865 }
 0x822   : > { %v1786_v45 = vsel %vm831_vm3, %v2866_v44, 0.0 }
 0x823   : > { %v2868_v46 = vpop.eup %2867  ;;  %1787 = vadd.xlane.f32.xlu1 %v1786_v45 }
 0x824   : > { %v1789_v39 = vsel %vm831_vm3, %v2868_v46, 0.0  ;;  %v1798_v47 = vpack.c.bf16 %v2868_v46, %v2866_v44 }
 0x825   : > { %1790 = vadd.xlane.f32.xlu0 %v1789_v39 }
 0x85b   : > { %v1770_v38 = vpop.xlane.xlu0 %1769 }
 0x85c   : > { %v1776_v41 = vsub.f32 %v1760_v32, %v1770_v38 }
 0x85e   : > { %v1782_v48 = vmul.f32 1.442695, %v1776_v41 }
 0x85f   : > { %v1773_v49 = vpop.xlane.xlu0 %1772 }
 0x860   : > { %2869 = vpow2.f32 %v1782_v48  ;;  %v1777_v50 = vsub.f32 %v1761_v16, %v1773_v49 }
 0x862   : > { %v1784_v51 = vmul.f32 1.442695, %v1777_v50 }
 0x863   : > { %v1801_v52 = vpop.permute.xlu0 %1800 }
 0x864   : > { %2871 = vpow2.f32 %v1784_v51  ;;  %2653 = vmatpush3.bf16.msra.mxu1 %v1801_v52 }
 0x865   : > { %2670 = vmatprep.subr.bf16.mxu1 %v2809_v19 }
 0x867   : > { %2655 = vmatmul.mubr.msk.bf16.vlgmr.msra.gmra.mrb[40].mxu1 %vm831_vm3, %v1798_v47 }
 0x868   : > { %2671 = vmatpush3.bf16.msra.mxu1 %v2809_v19 }
 0x869   : > { %2672 = vmatprep.subr.bf16.mxu1 %v2810_v20 }
 0x86a   : > { %v2870_v53 = vpop.eup %2869 }
 0x86b   : > { %v1792_v54 = vsel %vm831_vm3, %v2870_v53, 0.0 }
 0x86c   : > { %1793 = vadd.xlane.f32.xlu0 %v1792_v54  ;;  %2673 = vmatpush3.bf16.msra.mxu1 %v2810_v20 }
 0x86d   : > { %2678 = vmatprep.subr.bf16.mxu1 %v2811_v21 }
 0x86e   : > { %v2872_v55 = vpop.eup %2871 }
 0x86f   : > { %v1795_v27 = vsel %vm831_vm3, %v2872_v55, 0.0  ;;  %v1799_v26 = vpack.c.bf16 %v2872_v55, %v2870_v53 }
 0x870   : > { %1796 = vadd.xlane.f32.xlu1 %v1795_v27 }
 0x871   : > { %2661 = vmatmul.mubr.msk.bf16.vlgmr.msra.gmra.mrb[28].mxu0 %vm831_vm3, %v1799_v26 }
 0x872   : > { %2665 = vmatpush3.bf16.msra.mxu0 %v1912_v57 }
 0x873   : > { %2686 = vmatprep.subr.bf16.mxu0 %v2813_v22 }
 0x8b0   : > { %v1788_v58 = vpop.xlane.xlu1 %1787 }
 0x8b1   : > { %2873 = vrcp.f32 %v1788_v58 }
 0x8b2   : > { %v1791_v59 = vpop.xlane.xlu0 %1790 }
 0x8b3   : > { %2875 = vrcp.f32 %v1791_v59  ;;  %v2449_v59 = vld [vmem:[%s3804_s24] ss:$0 sm:$0xff] }
 0x8bb   : > { %v2874_v63 = vpop.eup %2873 }
 0x8bd   : > { %v2876_v1 = vpop.eup %2875 }
 0x8f9   : > { %v1794_v60 = vpop.xlane.xlu0 %1793 }
 0x8fa   : > { %2877 = vrcp.f32 %v1794_v60 }
 0x8fd   : > { %v1797_v61 = vpop.xlane.xlu1 %1796 }
 0x8fe   : > { %2879 = vrcp.f32 %v1797_v61 }
 0x904   : > { %v2878_v9 = vpop.eup %2877 }
 0x908   : > { %v2880_v12 = vpop.eup %2879 }
 0x93a   : > { %v1840_v62 = vpop.f32.mrb[40].mxu1 }
 0x93b   : > { %v2656_v0 = vpop.f32.mrb[41].mxu1  ;;  %v1898_v3 = vmul.f32 %v2874_v63, %v1840_v62 }
 0x93c   : > { %v1843_v2 = vpop.f32.mrb[42].mxu1 }
 0x93d   : > { %v1899_v4 = vmul.f32 %v2876_v1, %v1843_v2  ;;  %v2657_v6 = vpop.f32.mrb[43].mxu1  ;;  %v2881_v1 = vld [vmem:[%s3400_s28 + $0x10] sm:$0xff] }
 0x93e   : > { %v2882_v6 = vld [vmem:[%s3400_s28] sm:$0xff] }
 0x93f   : > { %v1902_v7 = vpack.c.bf16 %v1899_v4, %v1898_v3 }
 0x941   : > { %2666 = vmatprep.mubr.msk.bf16.mxu0 %vm732_vm2, %v1902_v7 }
 0x944   : > { %v1887_v8 = vpop.f32.mrb[28].mxu0 }
 0x945   : > { %v2662_v11 = vpop.f32.mrb[29].mxu0  ;;  %v1900_v14 = vmul.f32 %v2878_v9, %v1887_v8  ;;  %v2883_v9 = vld [vmem:[%s3400_s28 + $0x18] sm:$0xff] }
 0x946   : > { %v1890_v13 = vpop.f32.mrb[30].mxu0 }
 0x947   : > { %v1901_v15 = vmul.f32 %v2880_v12, %v1890_v13  ;;  %v2663_v17 = vpop.f32.mrb[31].mxu0  ;;  %v2884_v12 = vld [vmem:[%s3400_s28 + $0x8] sm:$0xff] }
 0x949   : > { %v1903_v18 = vpack.c.bf16 %v1901_v15, %v1900_v14 }
 0x94b   : > { %2667 = vmatmul.mubr.msk.bf16.vlgmr.msra.gmra.mrb[16].mxu0 %vm732_vm2, %v1903_v18 }
 0x94c   : > { %2687 = vmatpush3.bf16.msra.mxu0 %v2813_v22 }
 0x94d   : > { %2688 = vmatprep.subr.bf16.mxu0 %v2814_v30 }
 0x950   : > { %2689 = vmatpush3.bf16.msra.mxu0 %v2814_v30 }
 0x951   : > { %2690 = vmatprep.subr.bf16.mxu0 %v2815_v31 }
 0x954   : > { %2691 = vmatpush3.bf16.msra.mxu0 %v2815_v31 }
 0xa1e   : > { %v2668_v24 = vpop.f32.mrb[16].mxu0 }
 0xa1f   : > { %v1948_v29 = vpop.f32.mrb[17].mxu0  ;;  %v1976_v34 = vadd.f32 %v2668_v24, %v2438_v28 }
 0xa20   : > { %v2669_v32 = vpop.f32.mrb[18].mxu0  ;;  %v1974_v36 = vadd.f32 %v2438_v28, %v1948_v29 }
 0xa21   : > { %v1977_v35 = vadd.f32 %v2669_v32, %v2438_v28  ;;  %v1951_v16 = vpop.f32.mrb[19].mxu0 }
 0xa22   : > { %v1975_v23 = vadd.f32 %v2438_v28, %v1951_v16 }
 0xa23   : > { %v1983_v25 = vpack.c.bf16 %v1977_v35, %v1976_v34 }
 0xa24   : > { %v1982_v40 = vpack.c.bf16 %v1975_v23, %v1974_v36 }
 0xa26   : > { %2674 = vmatprep.mubr.msk.bf16.mxu1 %vm594_vm0, %v1982_v40 }
 0xa27   : > { %2675 = vmatmul.mubr.msk.bf16.vlgmr.msra.gmra.mrb[44].mxu1 %vm594_vm0, %v1983_v25 }
 0xa28   : > { %2679 = vmatpush3.bf16.msra.mxu1 %v2811_v21  ;;  %2682 = vmatprep.mubr.msk.bf16.mxu1 %vm594_vm0, %v3429_v5  ;;  %v2816_v5 = vld [vmem:[%s3759_s12 + $0x18] sm:$0xff]  }
 0xa29   : > { %2680 = vmatprep.subr.bf16.mxu1 %v2812_v42  ;;  %2692 = vmatprep.subr.bf16.mxu0 %v2816_v5 }
 0xa2a   : > { %2693 = vmatpush3.bf16.msra.mxu0 %v2816_v5 }
 0xa2c   : > { %2681 = vmatpush3.bf16.msra.mxu1 %v2812_v42 }
 0xa33   : > { %2683 = vmatmul.mubr.msk.bf16.vlgmr.msra.gmra.mrb[44].mxu1 %vm594_vm0, %v3437_v10  ;;  %v2447_v10 = vld [vmem:[%s3802_s21] ss:$0 sm:$0xff]  ;;  %s3098_s21 = smov [#allocation10]  }
 0xa34   : > { %s3005_s0 = sshll.u32 %s3098_s21, 4  ;;  %s3006_s0 = int_to_ptr.vmem [resolvable:$false] %s3005_s0 }
 0xa35   : > { %s3007_s27 = scalar_lea.vmem %s3006_s0, 1024  ;;  %p3008_p11 = scmp.lt.s32.totalorder %s3691_s20, %s3006_s0 }
 0xa36   : > { %p3009_p3 = scmp.lt.s32.totalorder %s3007_s27, %s3001_s11 }
 0xa38   : > { %p3010_p4 = por %p3009_p3, %p3008_p11 }
 0xa3a   : > { %p3011_p5 = pnand %p3010_p4, %p3004_p13 }
 0xb06   : > { %v2684_v33 = vpop.f32.mrb[44].mxu1 }
 0xb07   : > { %v2125_v43 = vmul.f32 %v2684_v33, %v2447_v10  ;;  %v2101_v44 = vpop.f32.mrb[45].mxu1 }
 0xb08   : > { %v2123_v45 = vmul.f32 %v2447_v10, %v2101_v44  ;;  %v2685_v46 = vpop.f32.mrb[46].mxu1 }
 0xb09   : > { %v2136_v39 = vadd.f32 %v2448_v37, %v2125_v43  ;;  %v2126_v47 = vmul.f32 %v2685_v46, %v2447_v10  ;;  %v2104_v38 = vpop.f32.mrb[47].mxu1 }
 0xb0a   : > { %v2134_v41 = vadd.f32 %v2448_v37, %v2123_v45  ;;  %v2124_v48 = vmul.f32 %v2447_v10, %v2104_v38 }
 0xb0b   : > { %v2144_v49 = vmul.f32 0.2, %v2136_v39  ;;  %v2137_v50 = vadd.f32 %v2448_v37, %v2126_v47  ;;  %vm2140_vm5 = vcmp.gt.f32.partialorder %v2136_v39, 0.0 }
 0xb0c   : > { %v2142_v51 = vmul.f32 0.2, %v2134_v41  ;;  %v2135_v52 = vadd.f32 %v2448_v37, %v2124_v48  ;;  %vm2138_vm6 = vcmp.gt.f32.partialorder %v2134_v41, 0.0 }
 0xb0d   : > { %vm2141_vm7 = vcmp.gt.f32.partialorder %v2137_v50, 0.0  ;;  %v2145_v53 = vmul.f32 0.2, %v2137_v50  ;;  %v2148_v55 = vsel %vm2140_vm5, %v2136_v39, %v2144_v49 }
 0xb0e   : > { %vm2139_vm8 = vcmp.gt.f32.partialorder %v2135_v52, 0.0  ;;  %v2143_v54 = vmul.f32 0.2, %v2135_v52  ;;  %v2146_v26 = vsel %vm2138_vm6, %v2134_v41, %v2142_v51 }
 0xb0f   : > { %v2149_v27 = vsel %vm2141_vm7, %v2137_v50, %v2145_v53 }
 0xb10   : > { %v2151_v56 = vpack.c.bf16 %v2149_v27, %v2148_v55  ;;  %v2147_v57 = vsel %vm2139_vm8, %v2135_v52, %v2143_v54 }
 0xb11   : > { %v2150_v58 = vpack.c.bf16 %v2147_v57, %v2146_v26 }
 0xb13   : > { %2694 = vmatprep.mubr.msk.bf16.mxu0 %vm2191_vm9, %v2150_v58 }
 0xb14   : > { %2695 = vmatmul.mubr.msk.bf16.vlgmr.msra.gmra.mrb[32].mxu0 %vm2191_vm9, %v2151_v56 }
 0xbe7   : > { %v2696_v60 = vpop.f32.mrb[32].mxu0 }
 0xbe8   : > { %v2241_v61 = vadd.f32 %v2696_v60, %v2449_v59  ;;  %v2232_v62 = vpop.f32.mrb[33].mxu0 }
 0xbe9   : > { %v2233_v63 = vadd.f32 %v2449_v59, %v2232_v62  ;;  %v2697_v0 = vpop.f32.mrb[34].mxu0 }
 0xbea   : > { %v2249_v2 = vadd.f32 %v2881_v1, %v2241_v61  ;;  %v2244_v3 = vadd.f32 %v2697_v0, %v2449_v59  ;;  %v2235_v4 = vpop.f32.mrb[35].mxu0 }
 0xbeb   : > { %v2247_v7 = vadd.f32 %v2882_v6, %v2233_v63  ;;  %v2236_v8 = vadd.f32 %v2449_v59, %v2235_v4 }
 0xbec   : > { %2253 = vst.msk [vmem:[%s554_s10 + $0x10] sm:$0xff] %vm594_vm0, %v2249_v2  ;;  %v2250_v11 = vadd.f32 %v2883_v9, %v2244_v3 }
 0xbed   : > { %2251 = vst.msk [vmem:[%s554_s10] sm:$0xff] %vm594_vm0, %v2247_v7  ;;  %v2248_v13 = vadd.f32 %v2884_v12, %v2236_v8 }
 0xbee   : > { %2254 = vst.msk [vmem:[%s554_s10 + $0x18] sm:$0xff] %vm594_vm0, %v2250_v11 }
 0xbef   : > { %2252 = vst.msk [vmem:[%s554_s10 + $0x8] sm:$0xff] %vm594_vm0, %v2248_v13 }
 0xbf0   : > { %3014 = shalt.err (!%p3011_p5)
}
 0xbf1   : > { %s3015_s28 = scalar_lea.hbm %s3699_s22, 512  ;;  %s3019_s29 = scalar_lea.hbm %s3806_s17, 1024 }
 0xbf2   : > { %p3016_p1 = scmp.ne.s32.totalorder %s3699_s22, %s3015_s28  ;;  %p3020_p10 = scmp.lt.u32.totalorder %s3699_s22, %s3806_s17 }
 0xbf3   : > { %p3021_p2 = scmp.lt.u32.totalorder %s3019_s29, %s3015_s28  ;;  %p3023_p7 = scmp.lt.u32.totalorder %s3015_s28, %s3699_s22 }
 0xbf4   : > { %p3017_p8 = pnand %p3016_p1, %p3807_p6 }
 0xbf5   : > { %p3022_p0 = por %p3021_p2, %p3020_p10 }
 0xbf6   : > { %p3018_p9 = pneg %p3017_p8 }
 0xbf7   : > { %p3024_p12 = por %p3023_p7, %p3022_p0 }
 0xbf9   : > { %p3025_p13 = pnand %p3024_p12, %p3018_p9 }
 0xbfb   : > { %3028 = shalt.err (!%p3025_p13)
}
 0xbfc   : > { %s3099_s25 = smov 128   ;;  %s3100_s14 = smov 8  }
 0xbfd   : > { %2730 = dma.vmem_to_hbm [thread:$0]  (%p3807_p6), %s3691_s20, 512, %s3699_s22, %s2256_s18, %s3099_s25, %s3099_s25, %s3100_s14  }
 0xbfe PF: > { %s3808_s26 = sld [smem:[#allocation16_spill]]  ;;  %s3809_s11 = sld [smem:[#allocation20_spill]] }
 0xbff   : > { %p3811_p3 = scmp.ge.s32.totalorder %s3079_s16, 2 }
 0xc04   : > { %s2285_s21 = sand.u32 1, %s3808_s26   ;;  %p3810_p11 = scmp.ne.s32.totalorder %s3809_s11, 0 }
 0xc05   : > { %s2286_s0 = scalar_lea.sflag [#allocation4], %s2285_s21 }
 0xc06   : > { %p2747_p4 = pnand %p3811_p3, %p3810_p11 }
 0xc08   : > { %3062 = dma.done.wait (!%p2747_p4), %s2286_s0, 512  }
 0xc09   : > { %3064 = vsyncadd (!%p2747_p4), %s2286_s0, 4294966784  ;;  %s3812_s16 = sld [smem:[#allocation17_spill]]  ;;  %s3813_s27 = sld [smem:[#allocation18_spill]] }
 0xc0a   : > { %s3814_s29 = smov %s3071_s30  ;;  %s3815_s30 = smov %s3075_s15 }
 0xc0f   : > { %p31_p5 = scmp.ge.s32.totalorder %s3812_s16, 4   ;;  %s3816_s15 = smov %s3813_s27 }
 0xc11   :  { %33 = sbr.rel (!%p31_p5) target bundleno = 15 (0xf), region = 142 }
 0xc18   :  { %2291 = vsyncpa [#allocation3], 1 }
 0xc19   :  { %2293 = vsyncpa [#allocation3 + $0x1], 1 }
 0xc1a   :  { %2294 = vsyncpa [#allocation6], 1 }
 0xc1b   :  { %2296 = vsyncpa [#allocation6 + $0x1], 1 }
 0xc1c   :  { %2297 = vsyncpa [#allocation9], 1 }
 0xc1d   :  { %2298 = vsyncpa [#allocation4], 1 }
 0xc1e   :  { %2300 = vsyncpa [#allocation4 + $0x1], 1 }

</bundles_post_ra>
